<compile_context>
chip_gen: v7x
topology: tpu7x:2x2x1
jax: 0.10.0
libtpu: 0.0.40
codegen_flags: <defaults>
</compile_context>

<pallas_src>
import numpy as np
import jax
import jax.numpy as jnp
from jax.experimental import pallas as pl
from jax.experimental.pallas import tpu as pltpu

C_IN, C_OUT, K, STRIDE = 32, 64, 3, 2
GROUPS = 8
CH_PER_G = C_OUT // GROUPS
KP = 4 * C_IN          # unified (padded) K per phase = 128 -> MXU aligned
EPS = 1e-5


def _round_up(v, m):
    return (v + m - 1) // m * m


def _make_kernel(tp, p_valid, n_pad_rows):
    """tp: rows per P tile; p_valid: number of real output positions;
    n_pad_rows: number of all-zero padding rows over the 4 phases (each such
    row produces exactly y == 0.5 after the hardsigmoid)."""

    def kernel(patches_ref, w_ref, g_ref, gamma_ref, beta_ref,
               o_ref, sum_ref, sq_ref):
        j = pl.program_id(0)           # phase pair: 0 -> (EE, EO), 1 -> (OE, OO)
        t = pl.program_id(1)           # P tile
        nj = pl.num_programs(0)
        nt = pl.num_programs(1)

        @pl.when(jnp.logical_and(j == 0, t == 0))
        def _init():
            sum_ref[...] = jnp.zeros_like(sum_ref)
            sq_ref[...] = jnp.zeros_like(sq_ref)

        # Two phase matmuls on the MXU: bf16 inputs, f32 accumulation.
        ya = jnp.dot(patches_ref[0], w_ref[0],
                     preferred_element_type=jnp.float32)
        yb = jnp.dot(patches_ref[1], w_ref[1],
                     preferred_element_type=jnp.float32)
        # lane-dense (128-wide) tile: [phase 2j | phase 2j+1]
        y = jnp.concatenate([ya, yb], axis=1)
        y = jnp.clip(y + 3.0, 0.0, 6.0) * (1.0 / 6.0)   # (x+3).clamp(0,6)/6

        row0 = pl.multiple_of(t * tp, tp)
        o_ref[j, pl.ds(row0, tp), :] = y                 # resident output block

        sum_ref[...] += jnp.sum(y, axis=0, keepdims=True)
        sq_ref[...] += jnp.sum(y * y, axis=0, keepdims=True)

        @pl.when(jnp.logical_and(j == nj - 1, t == nt - 1))
        def _finalize():
            s = sum_ref[...]
            q = sq_ref[...]
            # fold the two lane halves back onto the 64 real channels
            ch_sum = s[:, :C_OUT] + s[:, C_OUT:]
            ch_sq = q[:, :C_OUT] + q[:, C_OUT:]
            # analytic removal of the all-zero padding rows (y == 0.5 there)
            ch_sum = ch_sum - 0.5 * n_pad_rows
            ch_sq = ch_sq - 0.25 * n_pad_rows
            # per-group sums broadcast back to channels via the precomputed
            # (64,64) same-group indicator; tiny matmul, exact precision.
            g_sum = jnp.dot(ch_sum, g_ref[...],
                            preferred_element_type=jnp.float32,
                            precision=jax.lax.Precision.HIGHEST)
            g_sq = jnp.dot(ch_sq, g_ref[...],
                           preferred_element_type=jnp.float32,
                           precision=jax.lax.Precision.HIGHEST)
            n = jnp.float32(p_valid * CH_PER_G)
            mean = g_sum / n
            var = g_sq / n - mean * mean                 # biased var (PyTorch GN)
            inv = jax.lax.rsqrt(var + EPS)
            scale = inv * gamma_ref[...]
            shift = beta_ref[...] - mean * scale
            scale2 = jnp.concatenate([scale, scale], axis=1)   # (1, 128)
            shift2 = jnp.concatenate([shift, shift], axis=1)
            o_ref[...] = o_ref[...] * scale2 + shift2

    return kernel


def _phase_patches(xp, w, a, b, H, W):
    """Patches + weight matrix for output parity (a, b)."""
    # (kernel tap, offset into the 1-padded input) along rows / cols
    row_taps = [(0, 1), (2, 0)] if a == 0 else [(1, 1)]
    col_taps = [(0, 1), (2, 0)] if b == 0 else [(1, 1)]
    ma = H + 1 if a == 0 else H
    nb = W + 1 if b == 0 else W
    slabs, wrows = [], []
    for kh, ro in row_taps:
        for kw, co in col_taps:
            slabs.append(xp[ro:ro + ma, co:co + nb, :])   # (ma, nb, Cin)
            wrows.append(w[:, :, kh, kw])                 # (Cin, Cout)
    pat = jnp.stack(slabs, axis=2).reshape(ma * nb, len(slabs) * C_IN)
    wmat = jnp.concatenate(wrows, axis=0)                 # (ntaps*Cin, Cout)
    return pat, wmat, ma, nb


def model_forward(x, w, gamma, beta):
    # x: (1, C_in, H, W) NCHW like PyTorch
    N, Cin, H, W = x.shape
    assert N == 1 and Cin == C_IN   # GroupNorm stats below are per-sample (N==1)
    OH = (H - 1) * STRIDE + K
    OW = (W - 1) * STRIDE + K

    xt = jnp.transpose(x[0], (1, 2, 0))                    # (H, W, Cin) NHWC
    xp = jnp.pad(xt, ((1, 1), (1, 1), (0, 0)))             # zero border of 1

    phases = [(0, 0), (0, 1), (1, 0), (1, 1)]              # EE, EO, OE, OO
    pats, wms, dims = [], [], []
    for a, b in phases:
        p_, w_, ma, nb = _phase_patches(xp, w, a, b, H, W)
        pats.append(p_)
        wms.append(w_)
        dims.append((ma, nb))

    max_p = max(ma * nb for ma, nb in dims)
    tp = 256 if max_p >= 256 else _round_up(max_p, 8)      # P-tile size
    p_pad = _round_up(max_p, tp)
    n_pt = p_pad // tp

    patches = jnp.stack(
        [jnp.pad(p_, ((0, p_pad - p_.shape[0]), (0, KP - p_.shape[1])))
         for p_ in pats]).astype(jnp.bfloat16)             # (4, p_pad, 128)
    weights = jnp.stack(
        [jnp.pad(w_, ((0, KP - w_.shape[0]), (0, 0)))
         for w_ in wms]).astype(jnp.bfloat16)              # (4, 128, 64)

    gi = np.arange(C_OUT) // CH_PER_G
    g_mat = jnp.asarray((gi[:, None] == gi[None, :]).astype(np.float32))

    p_valid = OH * OW
    n_pad_rows = 4 * p_pad - p_valid

    out = pl.pallas_call(
        _make_kernel(tp, p_valid, n_pad_rows),
        out_shape=jax.ShapeDtypeStruct((2, p_pad, 2 * C_OUT), jnp.float32),
        grid=(2, n_pt),
        in_specs=[
            pl.BlockSpec((2, tp, KP), lambda j, t: (j, t, 0)),       # patches
            pl.BlockSpec((2, KP, C_OUT), lambda j, t: (j, 0, 0)),    # weights
            pl.BlockSpec((C_OUT, C_OUT), lambda j, t: (0, 0)),       # group mat
            pl.BlockSpec((1, C_OUT), lambda j, t: (0, 0)),           # gamma
            pl.BlockSpec((1, C_OUT), lambda j, t: (0, 0)),           # beta
        ],
        out_specs=pl.BlockSpec((2, p_pad, 2 * C_OUT), lambda j, t: (0, 0, 0)),
        scratch_shapes=[pltpu.VMEM((1, 2 * C_OUT), jnp.float32),
                        pltpu.VMEM((1, 2 * C_OUT), jnp.float32)],
        compiler_params=pltpu.CompilerParams(
            dimension_semantics=("arbitrary", "arbitrary"),
            vmem_limit_bytes=32 * 1024 * 1024),
    )(patches, weights, g_mat,
      gamma.reshape(1, C_OUT).astype(jnp.float32),
      beta.reshape(1, C_OUT).astype(jnp.float32))

    # un-pack: out[j, :, :64] = phase 2j, out[j, :, 64:] = phase 2j+1
    (m0, n0), (m1, n1), (m2, n2), (m3, n3) = dims
    y_ee = out[0, :m0 * n0, :C_OUT].reshape(m0, n0, C_OUT)
    y_eo = out[0, :m1 * n1, C_OUT:].reshape(m1, n1, C_OUT)
    y_oe = out[1, :m2 * n2, :C_OUT].reshape(m2, n2, C_OUT)
    y_oo = out[1, :m3 * n3, C_OUT:].reshape(m3, n3, C_OUT)

    # interleave the 4 parity grids back into (OH, OW)
    y_eo = jnp.pad(y_eo, ((0, 0), (0, 1), (0, 0)))
    y_oe = jnp.pad(y_oe, ((0, 1), (0, 0), (0, 0)))
    y_oo = jnp.pad(y_oo, ((0, 1), (0, 1), (0, 0)))
    quad = jnp.stack([jnp.stack([y_ee, y_eo], axis=2),
                      jnp.stack([y_oe, y_oo], axis=2)], axis=1)
    full = quad.reshape(2 * (H + 1), 2 * (W + 1), C_OUT)[:OH, :OW, :]
    return jnp.transpose(full, (2, 0, 1))[None]            # (1, C_out, OH, OW)


def reference(x, w, gamma, beta):
    # Independent numpy reference (direct scatter form of conv transpose).
    x = np.asarray(x, np.float64)
    w = np.asarray(w, np.float64)
    N, Cin, H, W = x.shape
    OH = (H - 1) * STRIDE + K
    OW = (W - 1) * STRIDE + K
    out = np.zeros((N, C_OUT, OH, OW))
    for kh in range(K):
        for kw in range(K):
            contrib = np.einsum('nchw,co->nohw', x, w[:, :, kh, kw])
            out[:, :, kh:kh + STRIDE * (H - 1) + 1:STRIDE,
                      kw:kw + STRIDE * (W - 1) + 1:STRIDE] += contrib
    v = np.clip(out + 3.0, 0.0, 6.0) / 6.0
    vg = v.reshape(N, GROUPS, CH_PER_G, OH, OW)
    mean = vg.mean(axis=(2, 3, 4), keepdims=True)
    var = vg.var(axis=(2, 3, 4), keepdims=True)
    norm = ((vg - mean) / np.sqrt(var + EPS)).reshape(N, C_OUT, OH, OW)
    g = np.asarray(gamma, np.float64).reshape(1, C_OUT, 1, 1)
    b = np.asarray(beta, np.float64).reshape(1, C_OUT, 1, 1)
    return norm * g + b


if __name__ == "__main__":
    key = jax.random.PRNGKey(0)
    k1, k2, k3, k4 = jax.random.split(key, 4)

    H = W = 16  # small spatial size (module uses 64x64; semantics identical)
    x = jax.random.normal(k1, (1, C_IN, H, W), jnp.float32)
    # ConvTranspose2d weight shape: (in_channels, out_channels, kH, kW), no bias
    w = jax.random.normal(k2, (C_IN, C_OUT, K, K), jnp.float32) * 0.1
    gamma = 1.0 + 0.1 * jax.random.normal(k3, (C_OUT,), jnp.float32)
    beta = 0.1 * jax.random.normal(k4, (C_OUT,), jnp.float32)

    # The kernel feeds the MXU in bf16; round inputs to bf16 up front so the
    # float64 reference sees the same values and tight tolerances still hold.
    x = x.astype(jnp.bfloat16).astype(jnp.float32)
    w = w.astype(jnp.bfloat16).astype(jnp.float32)

    out = jax.jit(model_forward)(x, w, gamma, beta)
    out = jax.block_until_ready(out)

    ref = reference(x, w, gamma, beta)
    assert out.shape == ref.shape, (out.shape, ref.shape)
    if not np.allclose(np.asarray(out), ref, rtol=3e-3, atol=3e-3):
        max_err = float(np.max(np.abs(np.asarray(out) - ref)))
        raise AssertionError(f"mismatch vs reference, max abs err = {max_err}")
    print("KERNEL_OK")
</pallas_src>

<mosaic_0001>
module attributes {stable_mosaic.version = 11 : i64} {
  func.func @kernel(%arg0: i32, %arg1: i32, %arg2: memref<2x256x128xbf16, #tpu.memory_space<vmem>>, %arg3: memref<2x128x64xbf16, #tpu.memory_space<vmem>>, %arg4: memref<64x64xf32, #tpu.memory_space<vmem>>, %arg5: memref<1x64xf32, #tpu.memory_space<vmem>>, %arg6: memref<1x64xf32, #tpu.memory_space<vmem>>, %arg7: memref<2x512x128xf32, #tpu.memory_space<vmem>>, %arg8: memref<1x128xf32, #tpu.memory_space<vmem>>, %arg9: memref<1x128xf32, #tpu.memory_space<vmem>>) attributes {dimension_semantics = [#tpu.dimension_semantics<arbitrary>, #tpu.dimension_semantics<arbitrary>], iteration_bounds = array<i64: 2, 2>, scalar_prefetch = 0 : i64, scratch_operands = 2 : i64, tpu.core_type = #tpu.core_type<tc>, window_params = [{transform_indices = @transform_0, window_bounds = array<i64: 2, 256, 128>}, {transform_indices = @transform_1, window_bounds = array<i64: 2, 128, 64>}, {pipeline_mode = #tpu.pipeline_mode<synchronous>, transform_indices = @transform_2, window_bounds = array<i64: 64, 64>}, {pipeline_mode = #tpu.pipeline_mode<synchronous>, transform_indices = @transform_3, window_bounds = array<i64: 1, 64>}, {pipeline_mode = #tpu.pipeline_mode<synchronous>, transform_indices = @transform_4, window_bounds = array<i64: 1, 64>}, {pipeline_mode = #tpu.pipeline_mode<synchronous>, transform_indices = @transform_5, window_bounds = array<i64: 2, 512, 128>}]} {
    %c0_i32 = arith.constant 0 : i32
    %0 = arith.cmpi eq, %arg0, %c0_i32 : i32
    %c0_i32_0 = arith.constant 0 : i32
    %1 = arith.cmpi eq, %arg1, %c0_i32_0 : i32
    %2 = arith.andi %0, %1 : i1
    %3 = arith.extui %2 : i1 to i32
    %c0_i32_1 = arith.constant 0 : i32
    %4 = arith.cmpi ne, %3, %c0_i32_1 : i32
    scf.if %4 {
      %cst_30 = arith.constant 0.000000e+00 : f32
      %47 = vector.broadcast %cst_30 : f32 to vector<1x128xf32>
      %c0_31 = arith.constant 0 : index
      %c0_32 = arith.constant 0 : index
      %48 = vector.load %arg8[%c0_31, %c0_32] : memref<1x128xf32, #tpu.memory_space<vmem>>, vector<1x128xf32>
      tpu.vector_store %arg8[%c0_31, %c0_32], %47 {strides = array<i32>} : memref<1x128xf32, #tpu.memory_space<vmem>>, vector<1x128xf32>,
      %cst_33 = arith.constant 0.000000e+00 : f32
      %49 = vector.broadcast %cst_33 : f32 to vector<1x128xf32>
      %c0_34 = arith.constant 0 : index
      %c0_35 = arith.constant 0 : index
      %50 = vector.load %arg9[%c0_34, %c0_35] : memref<1x128xf32, #tpu.memory_space<vmem>>, vector<1x128xf32>
      tpu.vector_store %arg9[%c0_34, %c0_35], %49 {strides = array<i32>} : memref<1x128xf32, #tpu.memory_space<vmem>>, vector<1x128xf32>,
    } else {
    }
    %c0 = arith.constant 0 : index
    %c0_2 = arith.constant 0 : index
    %c0_3 = arith.constant 0 : index
    %5 = vector.load %arg2[%c0, %c0_2, %c0_3] : memref<2x256x128xbf16, #tpu.memory_space<vmem>>, vector<1x256x128xbf16>
    %6 = vector.shape_cast %5 : vector<1x256x128xbf16> to vector<256x128xbf16>
    %c0_4 = arith.constant 0 : index
    %c0_5 = arith.constant 0 : index
    %c0_6 = arith.constant 0 : index
    %7 = vector.load %arg3[%c0_4, %c0_5, %c0_6] : memref<2x128x64xbf16, #tpu.memory_space<vmem>>, vector<1x128x64xbf16>
    %8 = vector.shape_cast %7 : vector<1x128x64xbf16> to vector<128x64xbf16>
    %cst = arith.constant dense<0.000000e+00> : vector<256x64xf32>
    %9 = tpu.matmul %6, %8, %cst {dimension_numbers = #tpu.dot_dimension_numbers<[1], [0], [0], [1], [0, 0, 1, 1], [], []>} : vector<256x128xbf16>, vector<128x64xbf16>, vector<256x64xf32> -> vector<256x64xf32>
    %c1 = arith.constant 1 : index
    %c0_7 = arith.constant 0 : index
    %c0_8 = arith.constant 0 : index
    %10 = vector.load %arg2[%c1, %c0_7, %c0_8] : memref<2x256x128xbf16, #tpu.memory_space<vmem>>, vector<1x256x128xbf16>
    %11 = vector.shape_cast %10 : vector<1x256x128xbf16> to vector<256x128xbf16>
    %c1_9 = arith.constant 1 : index
    %c0_10 = arith.constant 0 : index
    %c0_11 = arith.constant 0 : index
    %12 = vector.load %arg3[%c1_9, %c0_10, %c0_11] : memref<2x128x64xbf16, #tpu.memory_space<vmem>>, vector<1x128x64xbf16>
    %13 = vector.shape_cast %12 : vector<1x128x64xbf16> to vector<128x64xbf16>
    %cst_12 = arith.constant dense<0.000000e+00> : vector<256x64xf32>
    %14 = tpu.matmul %11, %13, %cst_12 {dimension_numbers = #tpu.dot_dimension_numbers<[1], [0], [0], [1], [0, 0, 1, 1], [], []>} : vector<256x128xbf16>, vector<128x64xbf16>, vector<256x64xf32> -> vector<256x64xf32>
    %15 = tpu.concatenate %9, %14 in 1 : vector<256x64xf32>, vector<256x64xf32> -> vector<256x128xf32>
    %cst_13 = arith.constant 3.000000e+00 : f32
    %16 = vector.broadcast %cst_13 : f32 to vector<256x128xf32>
    %17 = arith.addf %15, %16 : vector<256x128xf32>
    %cst_14 = arith.constant 0.000000e+00 : f32
    %cst_15 = arith.constant 6.000000e+00 : f32
    %18 = vector.broadcast %cst_14 : f32 to vector<256x128xf32>
    %19 = arith.maximumf %18, %17 : vector<256x128xf32>
    %20 = vector.broadcast %cst_15 : f32 to vector<256x128xf32>
    %21 = arith.minimumf %20, %19 : vector<256x128xf32>
    %cst_16 = arith.constant 0.166666672 : f32
    %22 = vector.broadcast %cst_16 : f32 to vector<256x128xf32>
    %23 = arith.mulf %21, %22 : vector<256x128xf32>
    %c256_i32 = arith.constant 256 : i32
    %24 = arith.muli %arg1, %c256_i32 : i32
    %25 = tpu.assume_multiple %24, 256 : i32
    %26 = arith.index_cast %arg0 : i32 to index
    %27 = arith.index_cast %25 : i32 to index
    %c0_17 = arith.constant 0 : index
    %28 = vector.load %arg7[%26, %27, %c0_17] : memref<2x512x128xf32, #tpu.memory_space<vmem>>, vector<1x256x128xf32>
    %29 = vector.shape_cast %28 : vector<1x256x128xf32> to vector<256x128xf32>
    %30 = vector.shape_cast %23 : vector<256x128xf32> to vector<1x256x128xf32>
    tpu.vector_store %arg7[%26, %27, %c0_17], %30 {strides = array<i32>} : memref<2x512x128xf32, #tpu.memory_space<vmem>>, vector<1x256x128xf32>,
    %c0_18 = arith.constant 0 : index
    %c0_19 = arith.constant 0 : index
    %31 = vector.load %arg8[%c0_18, %c0_19] : memref<1x128xf32, #tpu.memory_space<vmem>>, vector<1x128xf32>
    %cst_20 = arith.constant dense<0.000000e+00> : vector<128xf32>
    %32 = vector.multi_reduction <add>, %23, %cst_20 [0] : vector<256x128xf32> to vector<128xf32>
    %33 = vector.shape_cast %32 : vector<128xf32> to vector<1x128xf32>
    %34 = arith.addf %31, %33 : vector<1x128xf32>
    %c0_21 = arith.constant 0 : index
    %c0_22 = arith.constant 0 : index
    %35 = vector.load %arg8[%c0_21, %c0_22] : memref<1x128xf32, #tpu.memory_space<vmem>>, vector<1x128xf32>
    tpu.vector_store %arg8[%c0_21, %c0_22], %34 {strides = array<i32>} : memref<1x128xf32, #tpu.memory_space<vmem>>, vector<1x128xf32>,
    %c0_23 = arith.constant 0 : index
    %c0_24 = arith.constant 0 : index
    %36 = vector.load %arg9[%c0_23, %c0_24] : memref<1x128xf32, #tpu.memory_space<vmem>>, vector<1x128xf32>
    %37 = arith.mulf %23, %23 : vector<256x128xf32>
    %cst_25 = arith.constant dense<0.000000e+00> : vector<128xf32>
    %38 = vector.multi_reduction <add>, %37, %cst_25 [0] : vector<256x128xf32> to vector<128xf32>
    %39 = vector.shape_cast %38 : vector<128xf32> to vector<1x128xf32>
    %40 = arith.addf %36, %39 : vector<1x128xf32>
    %c0_26 = arith.constant 0 : index
    %c0_27 = arith.constant 0 : index
    %41 = vector.load %arg9[%c0_26, %c0_27] : memref<1x128xf32, #tpu.memory_space<vmem>>, vector<1x128xf32>
    tpu.vector_store %arg9[%c0_26, %c0_27], %40 {strides = array<i32>} : memref<1x128xf32, #tpu.memory_space<vmem>>, vector<1x128xf32>,
    %c1_i32 = arith.constant 1 : i32
    %42 = arith.cmpi eq, %arg0, %c1_i32 : i32
    %c1_i32_28 = arith.constant 1 : i32
    %43 = arith.cmpi eq, %arg1, %c1_i32_28 : i32
    %44 = arith.andi %42, %43 : i1
    %45 = arith.extui %44 : i1 to i32
    %c0_i32_29 = arith.constant 0 : i32
    %46 = arith.cmpi ne, %45, %c0_i32_29 : i32
    scf.if %46 {
      %c0_30 = arith.constant 0 : index
      %c0_31 = arith.constant 0 : index
      %47 = vector.load %arg8[%c0_30, %c0_31] : memref<1x128xf32, #tpu.memory_space<vmem>>, vector<1x128xf32>
      %c0_32 = arith.constant 0 : index
      %c0_33 = arith.constant 0 : index
      %48 = vector.load %arg9[%c0_32, %c0_33] : memref<1x128xf32, #tpu.memory_space<vmem>>, vector<1x128xf32>
      %49 = vector.extract_strided_slice %47 {offsets = [0, 0], sizes = [1, 64], strides = [1, 1]} : vector<1x128xf32> to vector<1x64xf32>
      %50 = vector.extract_strided_slice %47 {offsets = [0, 64], sizes = [1, 64], strides = [1, 1]} : vector<1x128xf32> to vector<1x64xf32>
      %51 = arith.addf %49, %50 : vector<1x64xf32>
      %52 = vector.extract_strided_slice %48 {offsets = [0, 0], sizes = [1, 64], strides = [1, 1]} : vector<1x128xf32> to vector<1x64xf32>
      %53 = vector.extract_strided_slice %48 {offsets = [0, 64], sizes = [1, 64], strides = [1, 1]} : vector<1x128xf32> to vector<1x64xf32>
      %54 = arith.addf %52, %53 : vector<1x64xf32>
      %cst_34 = arith.constant 4.795000e+02 : f32
      %55 = vector.broadcast %cst_34 : f32 to vector<1x64xf32>
      %56 = arith.subf %51, %55 : vector<1x64xf32>
      %cst_35 = arith.constant 2.397500e+02 : f32
      %57 = vector.broadcast %cst_35 : f32 to vector<1x64xf32>
      %58 = arith.subf %54, %57 : vector<1x64xf32>
      %c0_36 = arith.constant 0 : index
      %c0_37 = arith.constant 0 : index
      %59 = vector.load %arg4[%c0_36, %c0_37] : memref<64x64xf32, #tpu.memory_space<vmem>>, vector<64x64xf32>
      %cst_38 = arith.constant dense<0.000000e+00> : vector<1x64xf32>
      %60 = tpu.matmul %56, %59, %cst_38 {dimension_numbers = #tpu.dot_dimension_numbers<[1], [0], [0], [1], [0, 0, 1, 1], [], []>, precision = #tpu.contract_precision<fp32>} : vector<1x64xf32>, vector<64x64xf32>, vector<1x64xf32> -> vector<1x64xf32>
      %c0_39 = arith.constant 0 : index
      %c0_40 = arith.constant 0 : index
      %61 = vector.load %arg4[%c0_39, %c0_40] : memref<64x64xf32, #tpu.memory_space<vmem>>, vector<64x64xf32>
      %cst_41 = arith.constant dense<0.000000e+00> : vector<1x64xf32>
      %62 = tpu.matmul %58, %61, %cst_41 {dimension_numbers = #tpu.dot_dimension_numbers<[1], [0], [0], [1], [0, 0, 1, 1], [], []>, precision = #tpu.contract_precision<fp32>} : vector<1x64xf32>, vector<64x64xf32>, vector<1x64xf32> -> vector<1x64xf32>
      %cst_42 = arith.constant 8.712000e+03 : f32
      %63 = vector.broadcast %cst_42 : f32 to vector<1x64xf32>
      %64 = arith.divf %60, %63 : vector<1x64xf32>
      %cst_43 = arith.constant 8.712000e+03 : f32
      %65 = vector.broadcast %cst_43 : f32 to vector<1x64xf32>
      %66 = arith.divf %62, %65 : vector<1x64xf32>
      %67 = arith.mulf %64, %64 : vector<1x64xf32>
      %68 = arith.subf %66, %67 : vector<1x64xf32>
      %cst_44 = arith.constant 9.99999974E-6 : f32
      %69 = vector.broadcast %cst_44 : f32 to vector<1x64xf32>
      %70 = arith.addf %68, %69 : vector<1x64xf32>
      %71 = math.rsqrt %70 : vector<1x64xf32>
      %c0_45 = arith.constant 0 : index
      %c0_46 = arith.constant 0 : index
      %72 = vector.load %arg5[%c0_45, %c0_46] : memref<1x64xf32, #tpu.memory_space<vmem>>, vector<1x64xf32>
      %73 = arith.mulf %71, %72 : vector<1x64xf32>
      %c0_47 = arith.constant 0 : index
      %c0_48 = arith.constant 0 : index
      %74 = vector.load %arg6[%c0_47, %c0_48] : memref<1x64xf32, #tpu.memory_space<vmem>>, vector<1x64xf32>
      %75 = arith.mulf %64, %73 : vector<1x64xf32>
      %76 = arith.subf %74, %75 : vector<1x64xf32>
      %77 = tpu.concatenate %73, %73 in 1 : vector<1x64xf32>, vector<1x64xf32> -> vector<1x128xf32>
      %78 = tpu.concatenate %76, %76 in 1 : vector<1x64xf32>, vector<1x64xf32> -> vector<1x128xf32>
      %c0_49 = arith.constant 0 : index
      %c0_50 = arith.constant 0 : index
      %c0_51 = arith.constant 0 : index
      %79 = vector.load %arg7[%c0_49, %c0_50, %c0_51] : memref<2x512x128xf32, #tpu.memory_space<vmem>>, vector<2x512x128xf32>
      %80 = vector.shape_cast %77 : vector<1x128xf32> to vector<1x1x128xf32>
      %81 = vector.broadcast %80 : vector<1x1x128xf32> to vector<2x512x128xf32>
      %82 = arith.mulf %79, %81 : vector<2x512x128xf32>
      %83 = vector.shape_cast %78 : vector<1x128xf32> to vector<1x1x128xf32>
      %84 = vector.broadcast %83 : vector<1x1x128xf32> to vector<2x512x128xf32>
      %85 = arith.addf %82, %84 : vector<2x512x128xf32>
      %c0_52 = arith.constant 0 : index
      %c0_53 = arith.constant 0 : index
      %c0_54 = arith.constant 0 : index
      %86 = vector.load %arg7[%c0_52, %c0_53, %c0_54] : memref<2x512x128xf32, #tpu.memory_space<vmem>>, vector<2x512x128xf32>
      tpu.vector_store %arg7[%c0_52, %c0_53, %c0_54], %85 {strides = array<i32>} : memref<2x512x128xf32, #tpu.memory_space<vmem>>, vector<2x512x128xf32>,
    } else {
    }
    return
  }
  func.func @transform_0(%arg0: i32, %arg1: i32) -> (i32, i32, i32) {
    %c0_i32 = arith.constant 0 : i32
    %c0_i32_0 = arith.constant 0 : i32
    return %arg0, %arg1, %c0_i32 : i32, i32, i32
  }
  func.func @transform_1(%arg0: i32, %arg1: i32) -> (i32, i32, i32) {
    %c0_i32 = arith.constant 0 : i32
    %c0_i32_0 = arith.constant 0 : i32
    %c0_i32_1 = arith.constant 0 : i32
    return %arg0, %c0_i32, %c0_i32_0 : i32, i32, i32
  }
  func.func @transform_2(%arg0: i32, %arg1: i32) -> (i32, i32) {
    %c0_i32 = arith.constant 0 : i32
    %c0_i32_0 = arith.constant 0 : i32
    %c0_i32_1 = arith.constant 0 : i32
    return %c0_i32, %c0_i32_0 : i32, i32
  }
  func.func @transform_3(%arg0: i32, %arg1: i32) -> (i32, i32) {
    %c0_i32 = arith.constant 0 : i32
    %c0_i32_0 = arith.constant 0 : i32
    %c0_i32_1 = arith.constant 0 : i32
    return %c0_i32, %c0_i32_0 : i32, i32
  }
  func.func @transform_4(%arg0: i32, %arg1: i32) -> (i32, i32) {
    %c0_i32 = arith.constant 0 : i32
    %c0_i32_0 = arith.constant 0 : i32
    %c0_i32_1 = arith.constant 0 : i32
    return %c0_i32, %c0_i32_0 : i32, i32
  }
  func.func @transform_5(%arg0: i32, %arg1: i32) -> (i32, i32, i32) {
    %c0_i32 = arith.constant 0 : i32
    %c0_i32_0 = arith.constant 0 : i32
    %c0_i32_1 = arith.constant 0 : i32
    %c0_i32_2 = arith.constant 0 : i32
    return %c0_i32, %c0_i32_0, %c0_i32_1 : i32, i32, i32
  }
}

</mosaic_0001>

<bundles_post_ra>
// kernel: squeeze.27
= control target key start
LH: loop header
LB: loop body
LE: loop exit
PB: predicated region body
PF: predicated region fallthrough
CT: control target
= control target key end

     0   :  { %vm3_vm0 = vcmask 523264   ;;  %s3661_s0 = inlined_call_operand.vmem [shape: f32[1,289,64], index: 0, kind: input, shape index: {}]   ;;  %s3662_s1 = inlined_call_operand.vmem [shape: f32[17,17,1,64], index: 1, kind: output, shape index: {}]  }
   0x1   :  { %v2_v0 = vld [vmem:[%s3661_s0] sm:$0xff]   ;;  %v2276_v1 = vld [vmem:[%s3661_s0 + $0x8] sm:$0xff]   ;;  %v2277_v2 = vld [vmem:[%s3661_s0 + $0x10] sm:$0xff]  }
   0x2   :  { %4 = vst.msk [vmem:[#allocation0] ss:$8 sm:$0xf] %vm3_vm0, %v2_v0   ;;  %5 = vst.msk [vmem:[#allocation0] ss:$8 sm:$0xf0] %vm3_vm0, %v2_v0  }
   0x3   :  { %10 = vst.msk [vmem:[#allocation0 + $0x40] ss:$8 sm:$0xf] %vm3_vm0, %v2276_v1   ;;  %12 = vst.msk [vmem:[#allocation0 + $0x40] ss:$8 sm:$0xf0] %vm3_vm0, %v2276_v1  }
   0x4   :  { %17 = vst.msk [vmem:[#allocation0 + $0x80] ss:$8 sm:$0xf] %vm3_vm0, %v2277_v2   ;;  %19 = vst.msk [vmem:[#allocation0 + $0x80] ss:$8 sm:$0xf0] %vm3_vm0, %v2277_v2  }
   0x5   :  { %v2278_v3 = vld [vmem:[%s3661_s0 + $0x18] sm:$0xff]   ;;  %v2279_v4 = vld [vmem:[%s3661_s0 + $0x20] sm:$0xff]   ;;  %v2280_v5 = vld [vmem:[%s3661_s0 + $0x28] sm:$0xff]  }
   0x6   :  { %24 = vst.msk [vmem:[#allocation0 + $0xc0] ss:$8 sm:$0xf] %vm3_vm0, %v2278_v3   ;;  %26 = vst.msk [vmem:[#allocation0 + $0xc0] ss:$8 sm:$0xf0] %vm3_vm0, %v2278_v3  }
   0x7   :  { %31 = vst.msk [vmem:[#allocation0 + $0x100] ss:$8 sm:$0xf] %vm3_vm0, %v2279_v4   ;;  %33 = vst.msk [vmem:[#allocation0 + $0x100] ss:$8 sm:$0xf0] %vm3_vm0, %v2279_v4  }
   0x8   :  { %38 = vst.msk [vmem:[#allocation0 + $0x140] ss:$8 sm:$0xf] %vm3_vm0, %v2280_v5   ;;  %40 = vst.msk [vmem:[#allocation0 + $0x140] ss:$8 sm:$0xf0] %vm3_vm0, %v2280_v5  }
   0x9   :  { %v2281_v6 = vld [vmem:[%s3661_s0 + $0x30] sm:$0xff]   ;;  %v2282_v7 = vld [vmem:[%s3661_s0 + $0x38] sm:$0xff]   ;;  %v2283_v8 = vld [vmem:[%s3661_s0 + $0x40] sm:$0xff]  }
   0xa   :  { %45 = vst.msk [vmem:[#allocation0 + $0x180] ss:$8 sm:$0xf] %vm3_vm0, %v2281_v6   ;;  %47 = vst.msk [vmem:[#allocation0 + $0x180] ss:$8 sm:$0xf0] %vm3_vm0, %v2281_v6  }
   0xb   :  { %52 = vst.msk [vmem:[#allocation0 + $0x1c0] ss:$8 sm:$0xf] %vm3_vm0, %v2282_v7   ;;  %54 = vst.msk [vmem:[#allocation0 + $0x1c0] ss:$8 sm:$0xf0] %vm3_vm0, %v2282_v7  }
   0xc   :  { %59 = vst.msk [vmem:[#allocation0 + $0x200] ss:$8 sm:$0xf] %vm3_vm0, %v2283_v8   ;;  %61 = vst.msk [vmem:[#allocation0 + $0x200] ss:$8 sm:$0xf0] %vm3_vm0, %v2283_v8  }
   0xd   :  { %v2284_v9 = vld [vmem:[%s3661_s0 + $0x48] sm:$0xff]   ;;  %v2285_v10 = vld [vmem:[%s3661_s0 + $0x50] sm:$0xff]   ;;  %v2286_v11 = vld [vmem:[%s3661_s0 + $0x58] sm:$0xff]  }
   0xe   :  { %66 = vst.msk [vmem:[#allocation0 + $0x240] ss:$8 sm:$0xf] %vm3_vm0, %v2284_v9   ;;  %68 = vst.msk [vmem:[#allocation0 + $0x240] ss:$8 sm:$0xf0] %vm3_vm0, %v2284_v9  }
   0xf   :  { %73 = vst.msk [vmem:[#allocation0 + $0x280] ss:$8 sm:$0xf] %vm3_vm0, %v2285_v10   ;;  %75 = vst.msk [vmem:[#allocation0 + $0x280] ss:$8 sm:$0xf0] %vm3_vm0, %v2285_v10  }
  0x10   :  { %80 = vst.msk [vmem:[#allocation0 + $0x2c0] ss:$8 sm:$0xf] %vm3_vm0, %v2286_v11   ;;  %82 = vst.msk [vmem:[#allocation0 + $0x2c0] ss:$8 sm:$0xf0] %vm3_vm0, %v2286_v11  }
  0x11   :  { %v2287_v12 = vld [vmem:[%s3661_s0 + $0x60] sm:$0xff]   ;;  %v2288_v13 = vld [vmem:[%s3661_s0 + $0x68] sm:$0xff]   ;;  %v2289_v14 = vld [vmem:[%s3661_s0 + $0x70] sm:$0xff]  }
  0x12   :  { %87 = vst.msk [vmem:[#allocation0 + $0x300] ss:$8 sm:$0xf] %vm3_vm0, %v2287_v12   ;;  %89 = vst.msk [vmem:[#allocation0 + $0x300] ss:$8 sm:$0xf0] %vm3_vm0, %v2287_v12  }
  0x13   :  { %94 = vst.msk [vmem:[#allocation0 + $0x340] ss:$8 sm:$0xf] %vm3_vm0, %v2288_v13   ;;  %96 = vst.msk [vmem:[#allocation0 + $0x340] ss:$8 sm:$0xf0] %vm3_vm0, %v2288_v13  }
  0x14   :  { %101 = vst.msk [vmem:[#allocation0 + $0x380] ss:$8 sm:$0xf] %vm3_vm0, %v2289_v14   ;;  %103 = vst.msk [vmem:[#allocation0 + $0x380] ss:$8 sm:$0xf0] %vm3_vm0, %v2289_v14  }
  0x15   :  { %v2290_v15 = vld [vmem:[%s3661_s0 + $0x78] sm:$0xff]   ;;  %v2291_v16 = vld [vmem:[%s3661_s0 + $0x80] sm:$0xff]   ;;  %v2292_v17 = vld [vmem:[%s3661_s0 + $0x88] sm:$0xff]  }
  0x16   :  { %108 = vst.msk [vmem:[#allocation0 + $0x3c0] ss:$8 sm:$0xf] %vm3_vm0, %v2290_v15   ;;  %110 = vst.msk [vmem:[#allocation0 + $0x3c0] ss:$8 sm:$0xf0] %vm3_vm0, %v2290_v15  }
  0x17   :  { %115 = vst.msk [vmem:[#allocation0 + $0x400] ss:$8 sm:$0xf] %vm3_vm0, %v2291_v16   ;;  %117 = vst.msk [vmem:[#allocation0 + $0x400] ss:$8 sm:$0xf0] %vm3_vm0, %v2291_v16  }
  0x18   :  { %122 = vst.msk [vmem:[#allocation0 + $0x440] ss:$8 sm:$0xf] %vm3_vm0, %v2292_v17   ;;  %124 = vst.msk [vmem:[#allocation0 + $0x440] ss:$8 sm:$0xf0] %vm3_vm0, %v2292_v17  }
  0x19   :  { %v2293_v18 = vld [vmem:[%s3661_s0 + $0x90] sm:$0xff]   ;;  %v2294_v19 = vld [vmem:[%s3661_s0 + $0x98] sm:$0xff]   ;;  %v2295_v20 = vld [vmem:[%s3661_s0 + $0xa0] sm:$0xff]  }
  0x1a   :  { %129 = vst.msk [vmem:[#allocation0 + $0x480] ss:$8 sm:$0xf] %vm3_vm0, %v2293_v18   ;;  %131 = vst.msk [vmem:[#allocation0 + $0x480] ss:$8 sm:$0xf0] %vm3_vm0, %v2293_v18  }
  0x1b   :  { %136 = vst.msk [vmem:[#allocation0 + $0x4c0] ss:$8 sm:$0xf] %vm3_vm0, %v2294_v19   ;;  %138 = vst.msk [vmem:[#allocation0 + $0x4c0] ss:$8 sm:$0xf0] %vm3_vm0, %v2294_v19  }
  0x1c   :  { %143 = vst.msk [vmem:[#allocation0 + $0x500] ss:$8 sm:$0xf] %vm3_vm0, %v2295_v20   ;;  %145 = vst.msk [vmem:[#allocation0 + $0x500] ss:$8 sm:$0xf0] %vm3_vm0, %v2295_v20  }
  0x1d   :  { %v2296_v21 = vld [vmem:[%s3661_s0 + $0xa8] sm:$0xff]   ;;  %v2297_v22 = vld [vmem:[%s3661_s0 + $0xb0] sm:$0xff]   ;;  %v2298_v23 = vld [vmem:[%s3661_s0 + $0xb8] sm:$0xff]  }
  0x1e   :  { %150 = vst.msk [vmem:[#allocation0 + $0x540] ss:$8 sm:$0xf] %vm3_vm0, %v2296_v21   ;;  %152 = vst.msk [vmem:[#allocation0 + $0x540] ss:$8 sm:$0xf0] %vm3_vm0, %v2296_v21  }
  0x1f   :  { %157 = vst.msk [vmem:[#allocation0 + $0x580] ss:$8 sm:$0xf] %vm3_vm0, %v2297_v22   ;;  %159 = vst.msk [vmem:[#allocation0 + $0x580] ss:$8 sm:$0xf0] %vm3_vm0, %v2297_v22  }
  0x20   :  { %164 = vst.msk [vmem:[#allocation0 + $0x5c0] ss:$8 sm:$0xf] %vm3_vm0, %v2298_v23   ;;  %166 = vst.msk [vmem:[#allocation0 + $0x5c0] ss:$8 sm:$0xf0] %vm3_vm0, %v2298_v23  }
  0x21   :  { %v2299_v24 = vld [vmem:[%s3661_s0 + $0xc0] sm:$0xff]   ;;  %v2300_v25 = vld [vmem:[%s3661_s0 + $0xc8] sm:$0xff]   ;;  %v2301_v26 = vld [vmem:[%s3661_s0 + $0xd0] sm:$0xff]  }
  0x22   :  { %171 = vst.msk [vmem:[#allocation0 + $0x600] ss:$8 sm:$0xf] %vm3_vm0, %v2299_v24   ;;  %173 = vst.msk [vmem:[#allocation0 + $0x600] ss:$8 sm:$0xf0] %vm3_vm0, %v2299_v24  }
  0x23   :  { %178 = vst.msk [vmem:[#allocation0 + $0x640] ss:$8 sm:$0xf] %vm3_vm0, %v2300_v25   ;;  %180 = vst.msk [vmem:[#allocation0 + $0x640] ss:$8 sm:$0xf0] %vm3_vm0, %v2300_v25  }
  0x24   :  { %185 = vst.msk [vmem:[#allocation0 + $0x680] ss:$8 sm:$0xf] %vm3_vm0, %v2301_v26   ;;  %187 = vst.msk [vmem:[#allocation0 + $0x680] ss:$8 sm:$0xf0] %vm3_vm0, %v2301_v26  }
  0x25   :  { %v2302_v27 = vld [vmem:[%s3661_s0 + $0xd8] sm:$0xff]   ;;  %v2303_v28 = vld [vmem:[%s3661_s0 + $0xe0] sm:$0xff]   ;;  %v2304_v29 = vld [vmem:[%s3661_s0 + $0xe8] sm:$0xff]  }
  0x26   :  { %192 = vst.msk [vmem:[#allocation0 + $0x6c0] ss:$8 sm:$0xf] %vm3_vm0, %v2302_v27   ;;  %194 = vst.msk [vmem:[#allocation0 + $0x6c0] ss:$8 sm:$0xf0] %vm3_vm0, %v2302_v27  }
  0x27   :  { %199 = vst.msk [vmem:[#allocation0 + $0x700] ss:$8 sm:$0xf] %vm3_vm0, %v2303_v28   ;;  %201 = vst.msk [vmem:[#allocation0 + $0x700] ss:$8 sm:$0xf0] %vm3_vm0, %v2303_v28  }
  0x28   :  { %206 = vst.msk [vmem:[#allocation0 + $0x740] ss:$8 sm:$0xf] %vm3_vm0, %v2304_v29   ;;  %208 = vst.msk [vmem:[#allocation0 + $0x740] ss:$8 sm:$0xf0] %vm3_vm0, %v2304_v29  }
  0x29   :  { %v2305_v30 = vld [vmem:[%s3661_s0 + $0xf0] sm:$0xff]   ;;  %v2306_v31 = vld [vmem:[%s3661_s0 + $0xf8] sm:$0xff]   ;;  %v2307_v32 = vld [vmem:[%s3661_s0 + $0x100] sm:$0xff]  }
  0x2a   :  { %213 = vst.msk [vmem:[#allocation0 + $0x780] ss:$8 sm:$0xf] %vm3_vm0, %v2305_v30   ;;  %215 = vst.msk [vmem:[#allocation0 + $0x780] ss:$8 sm:$0xf0] %vm3_vm0, %v2305_v30  }
  0x2b   :  { %220 = vst.msk [vmem:[#allocation0 + $0x7c0] ss:$8 sm:$0xf] %vm3_vm0, %v2306_v31   ;;  %222 = vst.msk [vmem:[#allocation0 + $0x7c0] ss:$8 sm:$0xf0] %vm3_vm0, %v2306_v31  }
  0x2c   :  { %227 = vst.msk [vmem:[#allocation0 + $0x800] ss:$8 sm:$0xf] %vm3_vm0, %v2307_v32   ;;  %229 = vst.msk [vmem:[#allocation0 + $0x800] ss:$8 sm:$0xf0] %vm3_vm0, %v2307_v32  }
  0x2d   :  { %v2308_v33 = vld [vmem:[%s3661_s0 + $0x108] sm:$0xff]   ;;  %v2309_v34 = vld [vmem:[%s3661_s0 + $0x110] sm:$0xff]   ;;  %v2310_v35 = vld [vmem:[%s3661_s0 + $0x118] sm:$0xff]  }
  0x2e   :  { %234 = vst.msk [vmem:[#allocation0 + $0x840] ss:$8 sm:$0xf] %vm3_vm0, %v2308_v33   ;;  %236 = vst.msk [vmem:[#allocation0 + $0x840] ss:$8 sm:$0xf0] %vm3_vm0, %v2308_v33  }
  0x2f   :  { %241 = vst.msk [vmem:[#allocation0 + $0x880] ss:$8 sm:$0xf] %vm3_vm0, %v2309_v34   ;;  %243 = vst.msk [vmem:[#allocation0 + $0x880] ss:$8 sm:$0xf0] %vm3_vm0, %v2309_v34  }
  0x30   :  { %248 = vst.msk [vmem:[#allocation0 + $0x8c0] ss:$8 sm:$0xf] %vm3_vm0, %v2310_v35   ;;  %250 = vst.msk [vmem:[#allocation0 + $0x8c0] ss:$8 sm:$0xf0] %vm3_vm0, %v2310_v35  }
  0x31   :  { %v2311_v36 = vld [vmem:[%s3661_s0 + $0x120] sm:$0x1]   ;;  %v263_v38 = vld [vmem:[#allocation0 + $0x8] sm:$0x1]  ;;  %v268_v39 = vld [vmem:[#allocation0 + $0x10] sm:$0x1] }
  0x32   :  { %v259_v37 = vld [vmem:[#allocation0] sm:$0x1]  ;;  %255 = vst.msk [vmem:[#allocation0 + $0x900] sm:$0x1] %vm3_vm0, %v2311_v36   ;;  %2312 = vst [vmem:[%s3662_s1 + $0x1] sm:$0x1] %v263_v38 }
  0x33   :  { %261 = vst [vmem:[%s3662_s1] sm:$0x1] %v259_v37  ;;  %v274_v40 = vld [vmem:[#allocation0 + $0x18] sm:$0x1]  ;;  %v280_v41 = vld [vmem:[#allocation0 + $0x20] sm:$0x1] }
  0x34   :  { %2313 = vst [vmem:[%s3662_s1 + $0x2] sm:$0x1] %v268_v39  ;;  %2314 = vst [vmem:[%s3662_s1 + $0x3] sm:$0x1] %v274_v40  ;;  %v286_v42 = vld [vmem:[#allocation0 + $0x28] sm:$0x1] }
  0x35   :  { %2315 = vst [vmem:[%s3662_s1 + $0x4] sm:$0x1] %v280_v41  ;;  %v292_v43 = vld [vmem:[#allocation0 + $0x30] sm:$0x1]  ;;  %v298_v44 = vld [vmem:[#allocation0 + $0x38] sm:$0x1] }
  0x36   :  { %2316 = vst [vmem:[%s3662_s1 + $0x5] sm:$0x1] %v286_v42  ;;  %2317 = vst [vmem:[%s3662_s1 + $0x6] sm:$0x1] %v292_v43  ;;  %v304_v45 = vld [vmem:[#allocation0 + $0x40] sm:$0x1] }
  0x37   :  { %2318 = vst [vmem:[%s3662_s1 + $0x7] sm:$0x1] %v298_v44  ;;  %v310_v46 = vld [vmem:[#allocation0 + $0x48] sm:$0x1]  ;;  %v316_v47 = vld [vmem:[#allocation0 + $0x50] sm:$0x1] }
  0x38   :  { %2319 = vst [vmem:[%s3662_s1 + $0x8] sm:$0x1] %v304_v45  ;;  %2320 = vst [vmem:[%s3662_s1 + $0x9] sm:$0x1] %v310_v46  ;;  %v322_v48 = vld [vmem:[#allocation0 + $0x58] sm:$0x1] }
  0x39   :  { %2321 = vst [vmem:[%s3662_s1 + $0xa] sm:$0x1] %v316_v47  ;;  %v328_v49 = vld [vmem:[#allocation0 + $0x60] sm:$0x1]  ;;  %v334_v50 = vld [vmem:[#allocation0 + $0x68] sm:$0x1] }
  0x3a   :  { %2322 = vst [vmem:[%s3662_s1 + $0xb] sm:$0x1] %v322_v48  ;;  %2323 = vst [vmem:[%s3662_s1 + $0xc] sm:$0x1] %v328_v49  ;;  %v340_v51 = vld [vmem:[#allocation0 + $0x70] sm:$0x1] }
  0x3b   :  { %2324 = vst [vmem:[%s3662_s1 + $0xd] sm:$0x1] %v334_v50  ;;  %v346_v52 = vld [vmem:[#allocation0 + $0x78] sm:$0x1]  ;;  %v352_v53 = vld [vmem:[#allocation0 + $0x80] sm:$0x1] }
  0x3c   :  { %2325 = vst [vmem:[%s3662_s1 + $0xe] sm:$0x1] %v340_v51  ;;  %2326 = vst [vmem:[%s3662_s1 + $0xf] sm:$0x1] %v346_v52  ;;  %v358_v54 = vld [vmem:[#allocation0 + $0x88] sm:$0x1] }
  0x3d   :  { %2327 = vst [vmem:[%s3662_s1 + $0x10] sm:$0x1] %v352_v53  ;;  %v364_v55 = vld [vmem:[#allocation0 + $0x90] sm:$0x1]  ;;  %v370_v56 = vld [vmem:[#allocation0 + $0x98] sm:$0x1] }
  0x3e   :  { %2328 = vst [vmem:[%s3662_s1 + $0x11] sm:$0x1] %v358_v54  ;;  %2329 = vst [vmem:[%s3662_s1 + $0x12] sm:$0x1] %v364_v55  ;;  %v376_v57 = vld [vmem:[#allocation0 + $0xa0] sm:$0x1] }
  0x3f   :  { %2330 = vst [vmem:[%s3662_s1 + $0x13] sm:$0x1] %v370_v56  ;;  %v382_v58 = vld [vmem:[#allocation0 + $0xa8] sm:$0x1]  ;;  %v388_v59 = vld [vmem:[#allocation0 + $0xb0] sm:$0x1] }
  0x40   :  { %2331 = vst [vmem:[%s3662_s1 + $0x14] sm:$0x1] %v376_v57  ;;  %2332 = vst [vmem:[%s3662_s1 + $0x15] sm:$0x1] %v382_v58  ;;  %v394_v60 = vld [vmem:[#allocation0 + $0xb8] sm:$0x1] }
  0x41   :  { %2333 = vst [vmem:[%s3662_s1 + $0x16] sm:$0x1] %v388_v59  ;;  %v400_v61 = vld [vmem:[#allocation0 + $0xc0] sm:$0x1]  ;;  %v406_v62 = vld [vmem:[#allocation0 + $0xc8] sm:$0x1] }
  0x42   :  { %2334 = vst [vmem:[%s3662_s1 + $0x17] sm:$0x1] %v394_v60  ;;  %2335 = vst [vmem:[%s3662_s1 + $0x18] sm:$0x1] %v400_v61  ;;  %v412_v63 = vld [vmem:[#allocation0 + $0xd0] sm:$0x1] }
  0x43   :  { %2336 = vst [vmem:[%s3662_s1 + $0x19] sm:$0x1] %v406_v62  ;;  %v418_v0 = vld [vmem:[#allocation0 + $0xd8] sm:$0x1]  ;;  %v424_v1 = vld [vmem:[#allocation0 + $0xe0] sm:$0x1] }
  0x44   :  { %2337 = vst [vmem:[%s3662_s1 + $0x1a] sm:$0x1] %v412_v63  ;;  %2338 = vst [vmem:[%s3662_s1 + $0x1b] sm:$0x1] %v418_v0  ;;  %v430_v2 = vld [vmem:[#allocation0 + $0xe8] sm:$0x1] }
  0x45   :  { %2339 = vst [vmem:[%s3662_s1 + $0x1c] sm:$0x1] %v424_v1  ;;  %v436_v3 = vld [vmem:[#allocation0 + $0xf0] sm:$0x1]  ;;  %v442_v4 = vld [vmem:[#allocation0 + $0xf8] sm:$0x1] }
  0x46   :  { %2340 = vst [vmem:[%s3662_s1 + $0x1d] sm:$0x1] %v430_v2  ;;  %2341 = vst [vmem:[%s3662_s1 + $0x1e] sm:$0x1] %v436_v3  ;;  %v448_v5 = vld [vmem:[#allocation0 + $0x100] sm:$0x1] }
  0x47   :  { %2342 = vst [vmem:[%s3662_s1 + $0x1f] sm:$0x1] %v442_v4  ;;  %v454_v6 = vld [vmem:[#allocation0 + $0x108] sm:$0x1]  ;;  %v460_v7 = vld [vmem:[#allocation0 + $0x110] sm:$0x1] }
  0x48   :  { %2343 = vst [vmem:[%s3662_s1 + $0x20] sm:$0x1] %v448_v5  ;;  %2344 = vst [vmem:[%s3662_s1 + $0x21] sm:$0x1] %v454_v6  ;;  %v466_v8 = vld [vmem:[#allocation0 + $0x118] sm:$0x1] }
  0x49   :  { %2345 = vst [vmem:[%s3662_s1 + $0x22] sm:$0x1] %v460_v7  ;;  %v472_v9 = vld [vmem:[#allocation0 + $0x120] sm:$0x1]  ;;  %v478_v10 = vld [vmem:[#allocation0 + $0x128] sm:$0x1] }
  0x4a   :  { %2346 = vst [vmem:[%s3662_s1 + $0x23] sm:$0x1] %v466_v8  ;;  %2347 = vst [vmem:[%s3662_s1 + $0x24] sm:$0x1] %v472_v9  ;;  %v484_v11 = vld [vmem:[#allocation0 + $0x130] sm:$0x1] }
  0x4b   :  { %2348 = vst [vmem:[%s3662_s1 + $0x25] sm:$0x1] %v478_v10  ;;  %v490_v12 = vld [vmem:[#allocation0 + $0x138] sm:$0x1]  ;;  %v496_v13 = vld [vmem:[#allocation0 + $0x140] sm:$0x1] }
  0x4c   :  { %2349 = vst [vmem:[%s3662_s1 + $0x26] sm:$0x1] %v484_v11  ;;  %2350 = vst [vmem:[%s3662_s1 + $0x27] sm:$0x1] %v490_v12  ;;  %v502_v14 = vld [vmem:[#allocation0 + $0x148] sm:$0x1] }
  0x4d   :  { %2351 = vst [vmem:[%s3662_s1 + $0x28] sm:$0x1] %v496_v13  ;;  %v508_v15 = vld [vmem:[#allocation0 + $0x150] sm:$0x1]  ;;  %v514_v16 = vld [vmem:[#allocation0 + $0x158] sm:$0x1] }
  0x4e   :  { %2352 = vst [vmem:[%s3662_s1 + $0x29] sm:$0x1] %v502_v14  ;;  %2353 = vst [vmem:[%s3662_s1 + $0x2a] sm:$0x1] %v508_v15  ;;  %v520_v17 = vld [vmem:[#allocation0 + $0x160] sm:$0x1] }
  0x4f   :  { %2354 = vst [vmem:[%s3662_s1 + $0x2b] sm:$0x1] %v514_v16  ;;  %v526_v18 = vld [vmem:[#allocation0 + $0x168] sm:$0x1]  ;;  %v532_v19 = vld [vmem:[#allocation0 + $0x170] sm:$0x1] }
  0x50   :  { %2355 = vst [vmem:[%s3662_s1 + $0x2c] sm:$0x1] %v520_v17  ;;  %2356 = vst [vmem:[%s3662_s1 + $0x2d] sm:$0x1] %v526_v18  ;;  %v538_v20 = vld [vmem:[#allocation0 + $0x178] sm:$0x1] }
  0x51   :  { %2357 = vst [vmem:[%s3662_s1 + $0x2e] sm:$0x1] %v532_v19  ;;  %v544_v21 = vld [vmem:[#allocation0 + $0x180] sm:$0x1]  ;;  %v550_v22 = vld [vmem:[#allocation0 + $0x188] sm:$0x1] }
  0x52   :  { %2358 = vst [vmem:[%s3662_s1 + $0x2f] sm:$0x1] %v538_v20  ;;  %2359 = vst [vmem:[%s3662_s1 + $0x30] sm:$0x1] %v544_v21  ;;  %v556_v23 = vld [vmem:[#allocation0 + $0x190] sm:$0x1] }
  0x53   :  { %2360 = vst [vmem:[%s3662_s1 + $0x31] sm:$0x1] %v550_v22  ;;  %v562_v24 = vld [vmem:[#allocation0 + $0x198] sm:$0x1]  ;;  %v568_v25 = vld [vmem:[#allocation0 + $0x1a0] sm:$0x1] }
  0x54   :  { %2361 = vst [vmem:[%s3662_s1 + $0x32] sm:$0x1] %v556_v23  ;;  %2362 = vst [vmem:[%s3662_s1 + $0x33] sm:$0x1] %v562_v24  ;;  %v574_v26 = vld [vmem:[#allocation0 + $0x1a8] sm:$0x1] }
  0x55   :  { %2363 = vst [vmem:[%s3662_s1 + $0x34] sm:$0x1] %v568_v25  ;;  %v580_v27 = vld [vmem:[#allocation0 + $0x1b0] sm:$0x1]  ;;  %v586_v28 = vld [vmem:[#allocation0 + $0x1b8] sm:$0x1] }
  0x56   :  { %2364 = vst [vmem:[%s3662_s1 + $0x35] sm:$0x1] %v574_v26  ;;  %2365 = vst [vmem:[%s3662_s1 + $0x36] sm:$0x1] %v580_v27  ;;  %v592_v29 = vld [vmem:[#allocation0 + $0x1c0] sm:$0x1] }
  0x57   :  { %2366 = vst [vmem:[%s3662_s1 + $0x37] sm:$0x1] %v586_v28  ;;  %v598_v30 = vld [vmem:[#allocation0 + $0x1c8] sm:$0x1]  ;;  %v604_v31 = vld [vmem:[#allocation0 + $0x1d0] sm:$0x1] }
  0x58   :  { %2367 = vst [vmem:[%s3662_s1 + $0x38] sm:$0x1] %v592_v29  ;;  %2368 = vst [vmem:[%s3662_s1 + $0x39] sm:$0x1] %v598_v30  ;;  %v610_v32 = vld [vmem:[#allocation0 + $0x1d8] sm:$0x1] }
  0x59   :  { %2369 = vst [vmem:[%s3662_s1 + $0x3a] sm:$0x1] %v604_v31  ;;  %v616_v33 = vld [vmem:[#allocation0 + $0x1e0] sm:$0x1]  ;;  %v622_v34 = vld [vmem:[#allocation0 + $0x1e8] sm:$0x1] }
  0x5a   :  { %2370 = vst [vmem:[%s3662_s1 + $0x3b] sm:$0x1] %v610_v32  ;;  %2371 = vst [vmem:[%s3662_s1 + $0x3c] sm:$0x1] %v616_v33  ;;  %v628_v35 = vld [vmem:[#allocation0 + $0x1f0] sm:$0x1] }
  0x5b   :  { %2372 = vst [vmem:[%s3662_s1 + $0x3d] sm:$0x1] %v622_v34  ;;  %v634_v36 = vld [vmem:[#allocation0 + $0x1f8] sm:$0x1]  ;;  %v640_v37 = vld [vmem:[#allocation0 + $0x200] sm:$0x1] }
  0x5c   :  { %2373 = vst [vmem:[%s3662_s1 + $0x3e] sm:$0x1] %v628_v35  ;;  %2374 = vst [vmem:[%s3662_s1 + $0x3f] sm:$0x1] %v634_v36  ;;  %v646_v38 = vld [vmem:[#allocation0 + $0x208] sm:$0x1] }
  0x5d   :  { %2375 = vst [vmem:[%s3662_s1 + $0x40] sm:$0x1] %v640_v37  ;;  %v652_v39 = vld [vmem:[#allocation0 + $0x210] sm:$0x1]  ;;  %v658_v40 = vld [vmem:[#allocation0 + $0x218] sm:$0x1] }
  0x5e   :  { %2376 = vst [vmem:[%s3662_s1 + $0x41] sm:$0x1] %v646_v38  ;;  %2377 = vst [vmem:[%s3662_s1 + $0x42] sm:$0x1] %v652_v39  ;;  %v664_v41 = vld [vmem:[#allocation0 + $0x220] sm:$0x1] }
  0x5f   :  { %2378 = vst [vmem:[%s3662_s1 + $0x43] sm:$0x1] %v658_v40  ;;  %v670_v42 = vld [vmem:[#allocation0 + $0x228] sm:$0x1]  ;;  %v676_v43 = vld [vmem:[#allocation0 + $0x230] sm:$0x1] }
  0x60   :  { %2379 = vst [vmem:[%s3662_s1 + $0x44] sm:$0x1] %v664_v41  ;;  %2380 = vst [vmem:[%s3662_s1 + $0x45] sm:$0x1] %v670_v42  ;;  %v682_v44 = vld [vmem:[#allocation0 + $0x238] sm:$0x1] }
  0x61   :  { %2381 = vst [vmem:[%s3662_s1 + $0x46] sm:$0x1] %v676_v43  ;;  %v688_v45 = vld [vmem:[#allocation0 + $0x240] sm:$0x1]  ;;  %v694_v46 = vld [vmem:[#allocation0 + $0x248] sm:$0x1] }
  0x62   :  { %2382 = vst [vmem:[%s3662_s1 + $0x47] sm:$0x1] %v682_v44  ;;  %2383 = vst [vmem:[%s3662_s1 + $0x48] sm:$0x1] %v688_v45  ;;  %v700_v47 = vld [vmem:[#allocation0 + $0x250] sm:$0x1] }
  0x63   :  { %2384 = vst [vmem:[%s3662_s1 + $0x49] sm:$0x1] %v694_v46  ;;  %v706_v48 = vld [vmem:[#allocation0 + $0x258] sm:$0x1]  ;;  %v712_v49 = vld [vmem:[#allocation0 + $0x260] sm:$0x1] }
  0x64   :  { %2385 = vst [vmem:[%s3662_s1 + $0x4a] sm:$0x1] %v700_v47  ;;  %2386 = vst [vmem:[%s3662_s1 + $0x4b] sm:$0x1] %v706_v48  ;;  %v718_v50 = vld [vmem:[#allocation0 + $0x268] sm:$0x1] }
  0x65   :  { %2387 = vst [vmem:[%s3662_s1 + $0x4c] sm:$0x1] %v712_v49  ;;  %v724_v51 = vld [vmem:[#allocation0 + $0x270] sm:$0x1]  ;;  %v730_v52 = vld [vmem:[#allocation0 + $0x278] sm:$0x1] }
  0x66   :  { %2388 = vst [vmem:[%s3662_s1 + $0x4d] sm:$0x1] %v718_v50  ;;  %2389 = vst [vmem:[%s3662_s1 + $0x4e] sm:$0x1] %v724_v51  ;;  %v736_v53 = vld [vmem:[#allocation0 + $0x280] sm:$0x1] }
  0x67   :  { %2390 = vst [vmem:[%s3662_s1 + $0x4f] sm:$0x1] %v730_v52  ;;  %v742_v54 = vld [vmem:[#allocation0 + $0x288] sm:$0x1]  ;;  %v748_v55 = vld [vmem:[#allocation0 + $0x290] sm:$0x1] }
  0x68   :  { %2391 = vst [vmem:[%s3662_s1 + $0x50] sm:$0x1] %v736_v53  ;;  %2392 = vst [vmem:[%s3662_s1 + $0x51] sm:$0x1] %v742_v54  ;;  %v754_v56 = vld [vmem:[#allocation0 + $0x298] sm:$0x1] }
  0x69   :  { %2393 = vst [vmem:[%s3662_s1 + $0x52] sm:$0x1] %v748_v55  ;;  %v760_v57 = vld [vmem:[#allocation0 + $0x2a0] sm:$0x1]  ;;  %v766_v58 = vld [vmem:[#allocation0 + $0x2a8] sm:$0x1] }
  0x6a   :  { %2394 = vst [vmem:[%s3662_s1 + $0x53] sm:$0x1] %v754_v56  ;;  %2395 = vst [vmem:[%s3662_s1 + $0x54] sm:$0x1] %v760_v57  ;;  %v772_v59 = vld [vmem:[#allocation0 + $0x2b0] sm:$0x1] }
  0x6b   :  { %2396 = vst [vmem:[%s3662_s1 + $0x55] sm:$0x1] %v766_v58  ;;  %v778_v60 = vld [vmem:[#allocation0 + $0x2b8] sm:$0x1]  ;;  %v784_v61 = vld [vmem:[#allocation0 + $0x2c0] sm:$0x1] }
  0x6c   :  { %2397 = vst [vmem:[%s3662_s1 + $0x56] sm:$0x1] %v772_v59  ;;  %2398 = vst [vmem:[%s3662_s1 + $0x57] sm:$0x1] %v778_v60  ;;  %v790_v62 = vld [vmem:[#allocation0 + $0x2c8] sm:$0x1] }
  0x6d   :  { %2399 = vst [vmem:[%s3662_s1 + $0x58] sm:$0x1] %v784_v61  ;;  %v796_v63 = vld [vmem:[#allocation0 + $0x2d0] sm:$0x1]  ;;  %v802_v0 = vld [vmem:[#allocation0 + $0x2d8] sm:$0x1] }
  0x6e   :  { %2400 = vst [vmem:[%s3662_s1 + $0x59] sm:$0x1] %v790_v62  ;;  %2401 = vst [vmem:[%s3662_s1 + $0x5a] sm:$0x1] %v796_v63  ;;  %v808_v1 = vld [vmem:[#allocation0 + $0x2e0] sm:$0x1] }
  0x6f   :  { %2402 = vst [vmem:[%s3662_s1 + $0x5b] sm:$0x1] %v802_v0  ;;  %v814_v2 = vld [vmem:[#allocation0 + $0x2e8] sm:$0x1]  ;;  %v820_v3 = vld [vmem:[#allocation0 + $0x2f0] sm:$0x1] }
  0x70   :  { %2403 = vst [vmem:[%s3662_s1 + $0x5c] sm:$0x1] %v808_v1  ;;  %2404 = vst [vmem:[%s3662_s1 + $0x5d] sm:$0x1] %v814_v2  ;;  %v826_v4 = vld [vmem:[#allocation0 + $0x2f8] sm:$0x1] }
  0x71   :  { %2405 = vst [vmem:[%s3662_s1 + $0x5e] sm:$0x1] %v820_v3  ;;  %v832_v5 = vld [vmem:[#allocation0 + $0x300] sm:$0x1]  ;;  %v838_v6 = vld [vmem:[#allocation0 + $0x308] sm:$0x1] }
  0x72   :  { %2406 = vst [vmem:[%s3662_s1 + $0x5f] sm:$0x1] %v826_v4  ;;  %2407 = vst [vmem:[%s3662_s1 + $0x60] sm:$0x1] %v832_v5  ;;  %v844_v7 = vld [vmem:[#allocation0 + $0x310] sm:$0x1] }
  0x73   :  { %2408 = vst [vmem:[%s3662_s1 + $0x61] sm:$0x1] %v838_v6  ;;  %v850_v8 = vld [vmem:[#allocation0 + $0x318] sm:$0x1]  ;;  %v856_v9 = vld [vmem:[#allocation0 + $0x320] sm:$0x1] }
  0x74   :  { %2409 = vst [vmem:[%s3662_s1 + $0x62] sm:$0x1] %v844_v7  ;;  %2410 = vst [vmem:[%s3662_s1 + $0x63] sm:$0x1] %v850_v8  ;;  %v862_v10 = vld [vmem:[#allocation0 + $0x328] sm:$0x1] }
  0x75   :  { %2411 = vst [vmem:[%s3662_s1 + $0x64] sm:$0x1] %v856_v9  ;;  %v868_v11 = vld [vmem:[#allocation0 + $0x330] sm:$0x1]  ;;  %v874_v12 = vld [vmem:[#allocation0 + $0x338] sm:$0x1] }
  0x76   :  { %2412 = vst [vmem:[%s3662_s1 + $0x65] sm:$0x1] %v862_v10  ;;  %2413 = vst [vmem:[%s3662_s1 + $0x66] sm:$0x1] %v868_v11  ;;  %v880_v13 = vld [vmem:[#allocation0 + $0x340] sm:$0x1] }
  0x77   :  { %2414 = vst [vmem:[%s3662_s1 + $0x67] sm:$0x1] %v874_v12  ;;  %v886_v14 = vld [vmem:[#allocation0 + $0x348] sm:$0x1]  ;;  %v892_v15 = vld [vmem:[#allocation0 + $0x350] sm:$0x1] }
  0x78   :  { %2415 = vst [vmem:[%s3662_s1 + $0x68] sm:$0x1] %v880_v13  ;;  %2416 = vst [vmem:[%s3662_s1 + $0x69] sm:$0x1] %v886_v14  ;;  %v898_v16 = vld [vmem:[#allocation0 + $0x358] sm:$0x1] }
  0x79   :  { %2417 = vst [vmem:[%s3662_s1 + $0x6a] sm:$0x1] %v892_v15  ;;  %v904_v17 = vld [vmem:[#allocation0 + $0x360] sm:$0x1]  ;;  %v910_v18 = vld [vmem:[#allocation0 + $0x368] sm:$0x1] }
  0x7a   :  { %2418 = vst [vmem:[%s3662_s1 + $0x6b] sm:$0x1] %v898_v16  ;;  %2419 = vst [vmem:[%s3662_s1 + $0x6c] sm:$0x1] %v904_v17  ;;  %v916_v19 = vld [vmem:[#allocation0 + $0x370] sm:$0x1] }
  0x7b   :  { %2420 = vst [vmem:[%s3662_s1 + $0x6d] sm:$0x1] %v910_v18  ;;  %v922_v20 = vld [vmem:[#allocation0 + $0x378] sm:$0x1]  ;;  %v928_v21 = vld [vmem:[#allocation0 + $0x380] sm:$0x1] }
  0x7c   :  { %2421 = vst [vmem:[%s3662_s1 + $0x6e] sm:$0x1] %v916_v19  ;;  %2422 = vst [vmem:[%s3662_s1 + $0x6f] sm:$0x1] %v922_v20  ;;  %v934_v22 = vld [vmem:[#allocation0 + $0x388] sm:$0x1] }
  0x7d   :  { %2423 = vst [vmem:[%s3662_s1 + $0x70] sm:$0x1] %v928_v21  ;;  %v940_v23 = vld [vmem:[#allocation0 + $0x390] sm:$0x1]  ;;  %v946_v24 = vld [vmem:[#allocation0 + $0x398] sm:$0x1] }
  0x7e   :  { %2424 = vst [vmem:[%s3662_s1 + $0x71] sm:$0x1] %v934_v22  ;;  %2425 = vst [vmem:[%s3662_s1 + $0x72] sm:$0x1] %v940_v23  ;;  %v952_v25 = vld [vmem:[#allocation0 + $0x3a0] sm:$0x1] }
  0x7f   :  { %2426 = vst [vmem:[%s3662_s1 + $0x73] sm:$0x1] %v946_v24  ;;  %v958_v26 = vld [vmem:[#allocation0 + $0x3a8] sm:$0x1]  ;;  %v964_v27 = vld [vmem:[#allocation0 + $0x3b0] sm:$0x1] }
  0x80   :  { %2427 = vst [vmem:[%s3662_s1 + $0x74] sm:$0x1] %v952_v25  ;;  %2428 = vst [vmem:[%s3662_s1 + $0x75] sm:$0x1] %v958_v26  ;;  %v970_v28 = vld [vmem:[#allocation0 + $0x3b8] sm:$0x1] }
  0x81   :  { %2429 = vst [vmem:[%s3662_s1 + $0x76] sm:$0x1] %v964_v27  ;;  %v976_v29 = vld [vmem:[#allocation0 + $0x3c0] sm:$0x1]  ;;  %v982_v30 = vld [vmem:[#allocation0 + $0x3c8] sm:$0x1] }
  0x82   :  { %2430 = vst [vmem:[%s3662_s1 + $0x77] sm:$0x1] %v970_v28  ;;  %2431 = vst [vmem:[%s3662_s1 + $0x78] sm:$0x1] %v976_v29  ;;  %v988_v31 = vld [vmem:[#allocation0 + $0x3d0] sm:$0x1] }
  0x83   :  { %2432 = vst [vmem:[%s3662_s1 + $0x79] sm:$0x1] %v982_v30  ;;  %v994_v32 = vld [vmem:[#allocation0 + $0x3d8] sm:$0x1]  ;;  %v1000_v33 = vld [vmem:[#allocation0 + $0x3e0] sm:$0x1] }
  0x84   :  { %2433 = vst [vmem:[%s3662_s1 + $0x7a] sm:$0x1] %v988_v31  ;;  %2434 = vst [vmem:[%s3662_s1 + $0x7b] sm:$0x1] %v994_v32  ;;  %v1006_v34 = vld [vmem:[#allocation0 + $0x3e8] sm:$0x1] }
  0x85   :  { %2435 = vst [vmem:[%s3662_s1 + $0x7c] sm:$0x1] %v1000_v33  ;;  %v1012_v35 = vld [vmem:[#allocation0 + $0x3f0] sm:$0x1]  ;;  %v1018_v36 = vld [vmem:[#allocation0 + $0x3f8] sm:$0x1] }
  0x86   :  { %2436 = vst [vmem:[%s3662_s1 + $0x7d] sm:$0x1] %v1006_v34  ;;  %2437 = vst [vmem:[%s3662_s1 + $0x7e] sm:$0x1] %v1012_v35  ;;  %v1024_v37 = vld [vmem:[#allocation0 + $0x400] sm:$0x1] }
  0x87   :  { %2438 = vst [vmem:[%s3662_s1 + $0x7f] sm:$0x1] %v1018_v36  ;;  %v1030_v38 = vld [vmem:[#allocation0 + $0x408] sm:$0x1]  ;;  %v1036_v39 = vld [vmem:[#allocation0 + $0x410] sm:$0x1] }
  0x88   :  { %2439 = vst [vmem:[%s3662_s1 + $0x80] sm:$0x1] %v1024_v37  ;;  %2440 = vst [vmem:[%s3662_s1 + $0x81] sm:$0x1] %v1030_v38  ;;  %v1042_v40 = vld [vmem:[#allocation0 + $0x418] sm:$0x1] }
  0x89   :  { %2441 = vst [vmem:[%s3662_s1 + $0x82] sm:$0x1] %v1036_v39  ;;  %v1048_v41 = vld [vmem:[#allocation0 + $0x420] sm:$0x1]  ;;  %v1054_v42 = vld [vmem:[#allocation0 + $0x428] sm:$0x1] }
  0x8a   :  { %2442 = vst [vmem:[%s3662_s1 + $0x83] sm:$0x1] %v1042_v40  ;;  %2443 = vst [vmem:[%s3662_s1 + $0x84] sm:$0x1] %v1048_v41  ;;  %v1060_v43 = vld [vmem:[#allocation0 + $0x430] sm:$0x1] }
  0x8b   :  { %2444 = vst [vmem:[%s3662_s1 + $0x85] sm:$0x1] %v1054_v42  ;;  %v1066_v44 = vld [vmem:[#allocation0 + $0x438] sm:$0x1]  ;;  %v1072_v45 = vld [vmem:[#allocation0 + $0x440] sm:$0x1] }
  0x8c   :  { %2445 = vst [vmem:[%s3662_s1 + $0x86] sm:$0x1] %v1060_v43  ;;  %2446 = vst [vmem:[%s3662_s1 + $0x87] sm:$0x1] %v1066_v44  ;;  %v1078_v46 = vld [vmem:[#allocation0 + $0x448] sm:$0x1] }
  0x8d   :  { %2447 = vst [vmem:[%s3662_s1 + $0x88] sm:$0x1] %v1072_v45  ;;  %v1084_v47 = vld [vmem:[#allocation0 + $0x450] sm:$0x1]  ;;  %v1090_v48 = vld [vmem:[#allocation0 + $0x458] sm:$0x1] }
  0x8e   :  { %2448 = vst [vmem:[%s3662_s1 + $0x89] sm:$0x1] %v1078_v46  ;;  %2449 = vst [vmem:[%s3662_s1 + $0x8a] sm:$0x1] %v1084_v47  ;;  %v1096_v49 = vld [vmem:[#allocation0 + $0x460] sm:$0x1] }
  0x8f   :  { %2450 = vst [vmem:[%s3662_s1 + $0x8b] sm:$0x1] %v1090_v48  ;;  %v1102_v50 = vld [vmem:[#allocation0 + $0x468] sm:$0x1]  ;;  %v1108_v51 = vld [vmem:[#allocation0 + $0x470] sm:$0x1] }
  0x90   :  { %2451 = vst [vmem:[%s3662_s1 + $0x8c] sm:$0x1] %v1096_v49  ;;  %2452 = vst [vmem:[%s3662_s1 + $0x8d] sm:$0x1] %v1102_v50  ;;  %v1114_v52 = vld [vmem:[#allocation0 + $0x478] sm:$0x1] }
  0x91   :  { %2453 = vst [vmem:[%s3662_s1 + $0x8e] sm:$0x1] %v1108_v51  ;;  %v1120_v53 = vld [vmem:[#allocation0 + $0x480] sm:$0x1]  ;;  %v1126_v54 = vld [vmem:[#allocation0 + $0x488] sm:$0x1] }
  0x92   :  { %2454 = vst [vmem:[%s3662_s1 + $0x8f] sm:$0x1] %v1114_v52  ;;  %2455 = vst [vmem:[%s3662_s1 + $0x90] sm:$0x1] %v1120_v53  ;;  %v1132_v55 = vld [vmem:[#allocation0 + $0x490] sm:$0x1] }
  0x93   :  { %2456 = vst [vmem:[%s3662_s1 + $0x91] sm:$0x1] %v1126_v54  ;;  %v1138_v56 = vld [vmem:[#allocation0 + $0x498] sm:$0x1]  ;;  %v1144_v57 = vld [vmem:[#allocation0 + $0x4a0] sm:$0x1] }
  0x94   :  { %2457 = vst [vmem:[%s3662_s1 + $0x92] sm:$0x1] %v1132_v55  ;;  %2458 = vst [vmem:[%s3662_s1 + $0x93] sm:$0x1] %v1138_v56  ;;  %v1150_v58 = vld [vmem:[#allocation0 + $0x4a8] sm:$0x1] }
  0x95   :  { %2459 = vst [vmem:[%s3662_s1 + $0x94] sm:$0x1] %v1144_v57  ;;  %v1156_v59 = vld [vmem:[#allocation0 + $0x4b0] sm:$0x1]  ;;  %v1162_v60 = vld [vmem:[#allocation0 + $0x4b8] sm:$0x1] }
  0x96   :  { %2460 = vst [vmem:[%s3662_s1 + $0x95] sm:$0x1] %v1150_v58  ;;  %2461 = vst [vmem:[%s3662_s1 + $0x96] sm:$0x1] %v1156_v59  ;;  %v1168_v61 = vld [vmem:[#allocation0 + $0x4c0] sm:$0x1] }
  0x97   :  { %2462 = vst [vmem:[%s3662_s1 + $0x97] sm:$0x1] %v1162_v60  ;;  %v1174_v62 = vld [vmem:[#allocation0 + $0x4c8] sm:$0x1]  ;;  %v1180_v63 = vld [vmem:[#allocation0 + $0x4d0] sm:$0x1] }
  0x98   :  { %2463 = vst [vmem:[%s3662_s1 + $0x98] sm:$0x1] %v1168_v61  ;;  %2464 = vst [vmem:[%s3662_s1 + $0x99] sm:$0x1] %v1174_v62  ;;  %v1186_v0 = vld [vmem:[#allocation0 + $0x4d8] sm:$0x1] }
  0x99   :  { %2465 = vst [vmem:[%s3662_s1 + $0x9a] sm:$0x1] %v1180_v63  ;;  %v1192_v1 = vld [vmem:[#allocation0 + $0x4e0] sm:$0x1]  ;;  %v1198_v2 = vld [vmem:[#allocation0 + $0x4e8] sm:$0x1] }
  0x9a   :  { %2466 = vst [vmem:[%s3662_s1 + $0x9b] sm:$0x1] %v1186_v0  ;;  %2467 = vst [vmem:[%s3662_s1 + $0x9c] sm:$0x1] %v1192_v1  ;;  %v1204_v3 = vld [vmem:[#allocation0 + $0x4f0] sm:$0x1] }
  0x9b   :  { %2468 = vst [vmem:[%s3662_s1 + $0x9d] sm:$0x1] %v1198_v2  ;;  %v1210_v4 = vld [vmem:[#allocation0 + $0x4f8] sm:$0x1]  ;;  %v1216_v5 = vld [vmem:[#allocation0 + $0x500] sm:$0x1] }
  0x9c   :  { %2469 = vst [vmem:[%s3662_s1 + $0x9e] sm:$0x1] %v1204_v3  ;;  %2470 = vst [vmem:[%s3662_s1 + $0x9f] sm:$0x1] %v1210_v4  ;;  %v1222_v6 = vld [vmem:[#allocation0 + $0x508] sm:$0x1] }
  0x9d   :  { %2471 = vst [vmem:[%s3662_s1 + $0xa0] sm:$0x1] %v1216_v5  ;;  %v1228_v7 = vld [vmem:[#allocation0 + $0x510] sm:$0x1]  ;;  %v1234_v8 = vld [vmem:[#allocation0 + $0x518] sm:$0x1] }
  0x9e   :  { %2472 = vst [vmem:[%s3662_s1 + $0xa1] sm:$0x1] %v1222_v6  ;;  %2473 = vst [vmem:[%s3662_s1 + $0xa2] sm:$0x1] %v1228_v7  ;;  %v1240_v9 = vld [vmem:[#allocation0 + $0x520] sm:$0x1] }
  0x9f   :  { %2474 = vst [vmem:[%s3662_s1 + $0xa3] sm:$0x1] %v1234_v8  ;;  %v1246_v10 = vld [vmem:[#allocation0 + $0x528] sm:$0x1]  ;;  %v1252_v11 = vld [vmem:[#allocation0 + $0x530] sm:$0x1] }
  0xa0   :  { %2475 = vst [vmem:[%s3662_s1 + $0xa4] sm:$0x1] %v1240_v9  ;;  %2476 = vst [vmem:[%s3662_s1 + $0xa5] sm:$0x1] %v1246_v10  ;;  %v1258_v12 = vld [vmem:[#allocation0 + $0x538] sm:$0x1] }
  0xa1   :  { %2477 = vst [vmem:[%s3662_s1 + $0xa6] sm:$0x1] %v1252_v11  ;;  %v1264_v13 = vld [vmem:[#allocation0 + $0x540] sm:$0x1]  ;;  %v1270_v14 = vld [vmem:[#allocation0 + $0x548] sm:$0x1] }
  0xa2   :  { %2478 = vst [vmem:[%s3662_s1 + $0xa7] sm:$0x1] %v1258_v12  ;;  %2479 = vst [vmem:[%s3662_s1 + $0xa8] sm:$0x1] %v1264_v13  ;;  %v1276_v15 = vld [vmem:[#allocation0 + $0x550] sm:$0x1] }
  0xa3   :  { %2480 = vst [vmem:[%s3662_s1 + $0xa9] sm:$0x1] %v1270_v14  ;;  %v1282_v16 = vld [vmem:[#allocation0 + $0x558] sm:$0x1]  ;;  %v1288_v17 = vld [vmem:[#allocation0 + $0x560] sm:$0x1] }
  0xa4   :  { %2481 = vst [vmem:[%s3662_s1 + $0xaa] sm:$0x1] %v1276_v15  ;;  %2482 = vst [vmem:[%s3662_s1 + $0xab] sm:$0x1] %v1282_v16  ;;  %v1294_v18 = vld [vmem:[#allocation0 + $0x568] sm:$0x1] }
  0xa5   :  { %2483 = vst [vmem:[%s3662_s1 + $0xac] sm:$0x1] %v1288_v17  ;;  %v1300_v19 = vld [vmem:[#allocation0 + $0x570] sm:$0x1]  ;;  %v1306_v20 = vld [vmem:[#allocation0 + $0x578] sm:$0x1] }
  0xa6   :  { %2484 = vst [vmem:[%s3662_s1 + $0xad] sm:$0x1] %v1294_v18  ;;  %2485 = vst [vmem:[%s3662_s1 + $0xae] sm:$0x1] %v1300_v19  ;;  %v1312_v21 = vld [vmem:[#allocation0 + $0x580] sm:$0x1] }
  0xa7   :  { %2486 = vst [vmem:[%s3662_s1 + $0xaf] sm:$0x1] %v1306_v20  ;;  %v1318_v22 = vld [vmem:[#allocation0 + $0x588] sm:$0x1]  ;;  %v1324_v23 = vld [vmem:[#allocation0 + $0x590] sm:$0x1] }
  0xa8   :  { %2487 = vst [vmem:[%s3662_s1 + $0xb0] sm:$0x1] %v1312_v21  ;;  %2488 = vst [vmem:[%s3662_s1 + $0xb1] sm:$0x1] %v1318_v22  ;;  %v1330_v24 = vld [vmem:[#allocation0 + $0x598] sm:$0x1] }
  0xa9   :  { %2489 = vst [vmem:[%s3662_s1 + $0xb2] sm:$0x1] %v1324_v23  ;;  %v1336_v25 = vld [vmem:[#allocation0 + $0x5a0] sm:$0x1]  ;;  %v1342_v26 = vld [vmem:[#allocation0 + $0x5a8] sm:$0x1] }
  0xaa   :  { %2490 = vst [vmem:[%s3662_s1 + $0xb3] sm:$0x1] %v1330_v24  ;;  %2491 = vst [vmem:[%s3662_s1 + $0xb4] sm:$0x1] %v1336_v25  ;;  %v1348_v27 = vld [vmem:[#allocation0 + $0x5b0] sm:$0x1] }
  0xab   :  { %2492 = vst [vmem:[%s3662_s1 + $0xb5] sm:$0x1] %v1342_v26  ;;  %v1354_v28 = vld [vmem:[#allocation0 + $0x5b8] sm:$0x1]  ;;  %v1360_v29 = vld [vmem:[#allocation0 + $0x5c0] sm:$0x1] }
  0xac   :  { %2493 = vst [vmem:[%s3662_s1 + $0xb6] sm:$0x1] %v1348_v27  ;;  %2494 = vst [vmem:[%s3662_s1 + $0xb7] sm:$0x1] %v1354_v28  ;;  %v1366_v30 = vld [vmem:[#allocation0 + $0x5c8] sm:$0x1] }
  0xad   :  { %2495 = vst [vmem:[%s3662_s1 + $0xb8] sm:$0x1] %v1360_v29  ;;  %v1372_v31 = vld [vmem:[#allocation0 + $0x5d0] sm:$0x1]  ;;  %v1378_v32 = vld [vmem:[#allocation0 + $0x5d8] sm:$0x1] }
  0xae   :  { %2496 = vst [vmem:[%s3662_s1 + $0xb9] sm:$0x1] %v1366_v30  ;;  %2497 = vst [vmem:[%s3662_s1 + $0xba] sm:$0x1] %v1372_v31  ;;  %v1384_v33 = vld [vmem:[#allocation0 + $0x5e0] sm:$0x1] }
  0xaf   :  { %2498 = vst [vmem:[%s3662_s1 + $0xbb] sm:$0x1] %v1378_v32  ;;  %v1390_v34 = vld [vmem:[#allocation0 + $0x5e8] sm:$0x1]  ;;  %v1396_v35 = vld [vmem:[#allocation0 + $0x5f0] sm:$0x1] }
  0xb0   :  { %2499 = vst [vmem:[%s3662_s1 + $0xbc] sm:$0x1] %v1384_v33  ;;  %2500 = vst [vmem:[%s3662_s1 + $0xbd] sm:$0x1] %v1390_v34  ;;  %v1402_v36 = vld [vmem:[#allocation0 + $0x5f8] sm:$0x1] }
  0xb1   :  { %2501 = vst [vmem:[%s3662_s1 + $0xbe] sm:$0x1] %v1396_v35  ;;  %v1408_v37 = vld [vmem:[#allocation0 + $0x600] sm:$0x1]  ;;  %v1414_v38 = vld [vmem:[#allocation0 + $0x608] sm:$0x1] }
  0xb2   :  { %2502 = vst [vmem:[%s3662_s1 + $0xbf] sm:$0x1] %v1402_v36  ;;  %2503 = vst [vmem:[%s3662_s1 + $0xc0] sm:$0x1] %v1408_v37  ;;  %v1420_v39 = vld [vmem:[#allocation0 + $0x610] sm:$0x1] }
  0xb3   :  { %2504 = vst [vmem:[%s3662_s1 + $0xc1] sm:$0x1] %v1414_v38  ;;  %v1426_v40 = vld [vmem:[#allocation0 + $0x618] sm:$0x1]  ;;  %v1432_v41 = vld [vmem:[#allocation0 + $0x620] sm:$0x1] }
  0xb4   :  { %2505 = vst [vmem:[%s3662_s1 + $0xc2] sm:$0x1] %v1420_v39  ;;  %2506 = vst [vmem:[%s3662_s1 + $0xc3] sm:$0x1] %v1426_v40  ;;  %v1438_v42 = vld [vmem:[#allocation0 + $0x628] sm:$0x1] }
  0xb5   :  { %2507 = vst [vmem:[%s3662_s1 + $0xc4] sm:$0x1] %v1432_v41  ;;  %v1444_v43 = vld [vmem:[#allocation0 + $0x630] sm:$0x1]  ;;  %v1450_v44 = vld [vmem:[#allocation0 + $0x638] sm:$0x1] }
  0xb6   :  { %2508 = vst [vmem:[%s3662_s1 + $0xc5] sm:$0x1] %v1438_v42  ;;  %2509 = vst [vmem:[%s3662_s1 + $0xc6] sm:$0x1] %v1444_v43  ;;  %v1456_v45 = vld [vmem:[#allocation0 + $0x640] sm:$0x1] }
  0xb7   :  { %2510 = vst [vmem:[%s3662_s1 + $0xc7] sm:$0x1] %v1450_v44  ;;  %v1462_v46 = vld [vmem:[#allocation0 + $0x648] sm:$0x1]  ;;  %v1468_v47 = vld [vmem:[#allocation0 + $0x650] sm:$0x1] }
  0xb8   :  { %2511 = vst [vmem:[%s3662_s1 + $0xc8] sm:$0x1] %v1456_v45  ;;  %2512 = vst [vmem:[%s3662_s1 + $0xc9] sm:$0x1] %v1462_v46  ;;  %v1474_v48 = vld [vmem:[#allocation0 + $0x658] sm:$0x1] }
  0xb9   :  { %2513 = vst [vmem:[%s3662_s1 + $0xca] sm:$0x1] %v1468_v47  ;;  %v1480_v49 = vld [vmem:[#allocation0 + $0x660] sm:$0x1]  ;;  %v1486_v50 = vld [vmem:[#allocation0 + $0x668] sm:$0x1] }
  0xba   :  { %2514 = vst [vmem:[%s3662_s1 + $0xcb] sm:$0x1] %v1474_v48  ;;  %2515 = vst [vmem:[%s3662_s1 + $0xcc] sm:$0x1] %v1480_v49  ;;  %v1492_v51 = vld [vmem:[#allocation0 + $0x670] sm:$0x1] }
  0xbb   :  { %2516 = vst [vmem:[%s3662_s1 + $0xcd] sm:$0x1] %v1486_v50  ;;  %v1498_v52 = vld [vmem:[#allocation0 + $0x678] sm:$0x1]  ;;  %v1504_v53 = vld [vmem:[#allocation0 + $0x680] sm:$0x1] }
  0xbc   :  { %2517 = vst [vmem:[%s3662_s1 + $0xce] sm:$0x1] %v1492_v51  ;;  %2518 = vst [vmem:[%s3662_s1 + $0xcf] sm:$0x1] %v1498_v52  ;;  %v1510_v54 = vld [vmem:[#allocation0 + $0x688] sm:$0x1] }
  0xbd   :  { %2519 = vst [vmem:[%s3662_s1 + $0xd0] sm:$0x1] %v1504_v53  ;;  %v1516_v55 = vld [vmem:[#allocation0 + $0x690] sm:$0x1]  ;;  %v1522_v56 = vld [vmem:[#allocation0 + $0x698] sm:$0x1] }
  0xbe   :  { %2520 = vst [vmem:[%s3662_s1 + $0xd1] sm:$0x1] %v1510_v54  ;;  %2521 = vst [vmem:[%s3662_s1 + $0xd2] sm:$0x1] %v1516_v55  ;;  %v1528_v57 = vld [vmem:[#allocation0 + $0x6a0] sm:$0x1] }
  0xbf   :  { %2522 = vst [vmem:[%s3662_s1 + $0xd3] sm:$0x1] %v1522_v56  ;;  %v1534_v58 = vld [vmem:[#allocation0 + $0x6a8] sm:$0x1]  ;;  %v1540_v59 = vld [vmem:[#allocation0 + $0x6b0] sm:$0x1] }
  0xc0   :  { %2523 = vst [vmem:[%s3662_s1 + $0xd4] sm:$0x1] %v1528_v57  ;;  %2524 = vst [vmem:[%s3662_s1 + $0xd5] sm:$0x1] %v1534_v58  ;;  %v1546_v60 = vld [vmem:[#allocation0 + $0x6b8] sm:$0x1] }
  0xc1   :  { %2525 = vst [vmem:[%s3662_s1 + $0xd6] sm:$0x1] %v1540_v59  ;;  %v1552_v61 = vld [vmem:[#allocation0 + $0x6c0] sm:$0x1]  ;;  %v1558_v62 = vld [vmem:[#allocation0 + $0x6c8] sm:$0x1] }
  0xc2   :  { %2526 = vst [vmem:[%s3662_s1 + $0xd7] sm:$0x1] %v1546_v60  ;;  %2527 = vst [vmem:[%s3662_s1 + $0xd8] sm:$0x1] %v1552_v61  ;;  %v1564_v63 = vld [vmem:[#allocation0 + $0x6d0] sm:$0x1] }
  0xc3   :  { %2528 = vst [vmem:[%s3662_s1 + $0xd9] sm:$0x1] %v1558_v62  ;;  %v1570_v0 = vld [vmem:[#allocation0 + $0x6d8] sm:$0x1]  ;;  %v1576_v1 = vld [vmem:[#allocation0 + $0x6e0] sm:$0x1] }
  0xc4   :  { %2529 = vst [vmem:[%s3662_s1 + $0xda] sm:$0x1] %v1564_v63  ;;  %2530 = vst [vmem:[%s3662_s1 + $0xdb] sm:$0x1] %v1570_v0  ;;  %v1582_v2 = vld [vmem:[#allocation0 + $0x6e8] sm:$0x1] }
  0xc5   :  { %2531 = vst [vmem:[%s3662_s1 + $0xdc] sm:$0x1] %v1576_v1  ;;  %v1588_v3 = vld [vmem:[#allocation0 + $0x6f0] sm:$0x1]  ;;  %v1594_v4 = vld [vmem:[#allocation0 + $0x6f8] sm:$0x1] }
  0xc6   :  { %2532 = vst [vmem:[%s3662_s1 + $0xdd] sm:$0x1] %v1582_v2  ;;  %2533 = vst [vmem:[%s3662_s1 + $0xde] sm:$0x1] %v1588_v3  ;;  %v1600_v5 = vld [vmem:[#allocation0 + $0x700] sm:$0x1] }
  0xc7   :  { %2534 = vst [vmem:[%s3662_s1 + $0xdf] sm:$0x1] %v1594_v4  ;;  %v1606_v6 = vld [vmem:[#allocation0 + $0x708] sm:$0x1]  ;;  %v1612_v7 = vld [vmem:[#allocation0 + $0x710] sm:$0x1] }
  0xc8   :  { %2535 = vst [vmem:[%s3662_s1 + $0xe0] sm:$0x1] %v1600_v5  ;;  %2536 = vst [vmem:[%s3662_s1 + $0xe1] sm:$0x1] %v1606_v6  ;;  %v1618_v8 = vld [vmem:[#allocation0 + $0x718] sm:$0x1] }
  0xc9   :  { %2537 = vst [vmem:[%s3662_s1 + $0xe2] sm:$0x1] %v1612_v7  ;;  %v1624_v9 = vld [vmem:[#allocation0 + $0x720] sm:$0x1]  ;;  %v1630_v10 = vld [vmem:[#allocation0 + $0x728] sm:$0x1] }
  0xca   :  { %2538 = vst [vmem:[%s3662_s1 + $0xe3] sm:$0x1] %v1618_v8  ;;  %2539 = vst [vmem:[%s3662_s1 + $0xe4] sm:$0x1] %v1624_v9  ;;  %v1636_v11 = vld [vmem:[#allocation0 + $0x730] sm:$0x1] }
  0xcb   :  { %2540 = vst [vmem:[%s3662_s1 + $0xe5] sm:$0x1] %v1630_v10  ;;  %v1642_v12 = vld [vmem:[#allocation0 + $0x738] sm:$0x1]  ;;  %v1648_v13 = vld [vmem:[#allocation0 + $0x740] sm:$0x1] }
  0xcc   :  { %2541 = vst [vmem:[%s3662_s1 + $0xe6] sm:$0x1] %v1636_v11  ;;  %2542 = vst [vmem:[%s3662_s1 + $0xe7] sm:$0x1] %v1642_v12  ;;  %v1654_v14 = vld [vmem:[#allocation0 + $0x748] sm:$0x1] }
  0xcd   :  { %2543 = vst [vmem:[%s3662_s1 + $0xe8] sm:$0x1] %v1648_v13  ;;  %v1660_v15 = vld [vmem:[#allocation0 + $0x750] sm:$0x1]  ;;  %v1666_v16 = vld [vmem:[#allocation0 + $0x758] sm:$0x1] }
  0xce   :  { %2544 = vst [vmem:[%s3662_s1 + $0xe9] sm:$0x1] %v1654_v14  ;;  %2545 = vst [vmem:[%s3662_s1 + $0xea] sm:$0x1] %v1660_v15  ;;  %v1672_v17 = vld [vmem:[#allocation0 + $0x760] sm:$0x1] }
  0xcf   :  { %2546 = vst [vmem:[%s3662_s1 + $0xeb] sm:$0x1] %v1666_v16  ;;  %v1678_v18 = vld [vmem:[#allocation0 + $0x768] sm:$0x1]  ;;  %v1684_v19 = vld [vmem:[#allocation0 + $0x770] sm:$0x1] }
  0xd0   :  { %2547 = vst [vmem:[%s3662_s1 + $0xec] sm:$0x1] %v1672_v17  ;;  %2548 = vst [vmem:[%s3662_s1 + $0xed] sm:$0x1] %v1678_v18  ;;  %v1690_v20 = vld [vmem:[#allocation0 + $0x778] sm:$0x1] }
  0xd1   :  { %2549 = vst [vmem:[%s3662_s1 + $0xee] sm:$0x1] %v1684_v19  ;;  %v1696_v21 = vld [vmem:[#allocation0 + $0x780] sm:$0x1]  ;;  %v1702_v22 = vld [vmem:[#allocation0 + $0x788] sm:$0x1] }
  0xd2   :  { %2550 = vst [vmem:[%s3662_s1 + $0xef] sm:$0x1] %v1690_v20  ;;  %2551 = vst [vmem:[%s3662_s1 + $0xf0] sm:$0x1] %v1696_v21  ;;  %v1708_v23 = vld [vmem:[#allocation0 + $0x790] sm:$0x1] }
  0xd3   :  { %2552 = vst [vmem:[%s3662_s1 + $0xf1] sm:$0x1] %v1702_v22  ;;  %v1714_v24 = vld [vmem:[#allocation0 + $0x798] sm:$0x1]  ;;  %v1720_v25 = vld [vmem:[#allocation0 + $0x7a0] sm:$0x1] }
  0xd4   :  { %2553 = vst [vmem:[%s3662_s1 + $0xf2] sm:$0x1] %v1708_v23  ;;  %2554 = vst [vmem:[%s3662_s1 + $0xf3] sm:$0x1] %v1714_v24  ;;  %v1726_v26 = vld [vmem:[#allocation0 + $0x7a8] sm:$0x1] }
  0xd5   :  { %2555 = vst [vmem:[%s3662_s1 + $0xf4] sm:$0x1] %v1720_v25  ;;  %v1732_v27 = vld [vmem:[#allocation0 + $0x7b0] sm:$0x1]  ;;  %v1738_v28 = vld [vmem:[#allocation0 + $0x7b8] sm:$0x1] }
  0xd6   :  { %2556 = vst [vmem:[%s3662_s1 + $0xf5] sm:$0x1] %v1726_v26  ;;  %2557 = vst [vmem:[%s3662_s1 + $0xf6] sm:$0x1] %v1732_v27  ;;  %v1744_v29 = vld [vmem:[#allocation0 + $0x7c0] sm:$0x1] }
  0xd7   :  { %2558 = vst [vmem:[%s3662_s1 + $0xf7] sm:$0x1] %v1738_v28  ;;  %v1750_v30 = vld [vmem:[#allocation0 + $0x7c8] sm:$0x1]  ;;  %v1756_v31 = vld [vmem:[#allocation0 + $0x7d0] sm:$0x1] }
  0xd8   :  { %2559 = vst [vmem:[%s3662_s1 + $0xf8] sm:$0x1] %v1744_v29  ;;  %2560 = vst [vmem:[%s3662_s1 + $0xf9] sm:$0x1] %v1750_v30  ;;  %v1762_v32 = vld [vmem:[#allocation0 + $0x7d8] sm:$0x1] }
  0xd9   :  { %2561 = vst [vmem:[%s3662_s1 + $0xfa] sm:$0x1] %v1756_v31  ;;  %v1768_v33 = vld [vmem:[#allocation0 + $0x7e0] sm:$0x1]  ;;  %v1774_v34 = vld [vmem:[#allocation0 + $0x7e8] sm:$0x1] }
  0xda   :  { %2562 = vst [vmem:[%s3662_s1 + $0xfb] sm:$0x1] %v1762_v32  ;;  %2563 = vst [vmem:[%s3662_s1 + $0xfc] sm:$0x1] %v1768_v33  ;;  %v1780_v35 = vld [vmem:[#allocation0 + $0x7f0] sm:$0x1] }
  0xdb   :  { %2564 = vst [vmem:[%s3662_s1 + $0xfd] sm:$0x1] %v1774_v34  ;;  %v1786_v36 = vld [vmem:[#allocation0 + $0x7f8] sm:$0x1]  ;;  %v1792_v37 = vld [vmem:[#allocation0 + $0x800] sm:$0x1] }
  0xdc   :  { %2565 = vst [vmem:[%s3662_s1 + $0xfe] sm:$0x1] %v1780_v35  ;;  %2566 = vst [vmem:[%s3662_s1 + $0xff] sm:$0x1] %v1786_v36  ;;  %v1798_v38 = vld [vmem:[#allocation0 + $0x808] sm:$0x1] }
  0xdd   :  { %2567 = vst [vmem:[%s3662_s1 + $0x100] sm:$0x1] %v1792_v37  ;;  %v1804_v39 = vld [vmem:[#allocation0 + $0x810] sm:$0x1]  ;;  %v1810_v40 = vld [vmem:[#allocation0 + $0x818] sm:$0x1] }
  0xde   :  { %2568 = vst [vmem:[%s3662_s1 + $0x101] sm:$0x1] %v1798_v38  ;;  %2569 = vst [vmem:[%s3662_s1 + $0x102] sm:$0x1] %v1804_v39  ;;  %v1816_v41 = vld [vmem:[#allocation0 + $0x820] sm:$0x1] }
  0xdf   :  { %2570 = vst [vmem:[%s3662_s1 + $0x103] sm:$0x1] %v1810_v40  ;;  %v1822_v42 = vld [vmem:[#allocation0 + $0x828] sm:$0x1]  ;;  %v1828_v43 = vld [vmem:[#allocation0 + $0x830] sm:$0x1] }
  0xe0   :  { %2571 = vst [vmem:[%s3662_s1 + $0x104] sm:$0x1] %v1816_v41  ;;  %2572 = vst [vmem:[%s3662_s1 + $0x105] sm:$0x1] %v1822_v42  ;;  %v1834_v44 = vld [vmem:[#allocation0 + $0x838] sm:$0x1] }
  0xe1   :  { %2573 = vst [vmem:[%s3662_s1 + $0x106] sm:$0x1] %v1828_v43  ;;  %v1840_v45 = vld [vmem:[#allocation0 + $0x840] sm:$0x1]  ;;  %v1846_v46 = vld [vmem:[#allocation0 + $0x848] sm:$0x1] }
  0xe2   :  { %2574 = vst [vmem:[%s3662_s1 + $0x107] sm:$0x1] %v1834_v44  ;;  %2575 = vst [vmem:[%s3662_s1 + $0x108] sm:$0x1] %v1840_v45  ;;  %v1852_v47 = vld [vmem:[#allocation0 + $0x850] sm:$0x1] }
  0xe3   :  { %2576 = vst [vmem:[%s3662_s1 + $0x109] sm:$0x1] %v1846_v46  ;;  %v1858_v48 = vld [vmem:[#allocation0 + $0x858] sm:$0x1]  ;;  %v1864_v49 = vld [vmem:[#allocation0 + $0x860] sm:$0x1] }
  0xe4   :  { %2577 = vst [vmem:[%s3662_s1 + $0x10a] sm:$0x1] %v1852_v47  ;;  %2578 = vst [vmem:[%s3662_s1 + $0x10b] sm:$0x1] %v1858_v48  ;;  %v1870_v50 = vld [vmem:[#allocation0 + $0x868] sm:$0x1] }
  0xe5   :  { %2579 = vst [vmem:[%s3662_s1 + $0x10c] sm:$0x1] %v1864_v49  ;;  %v1876_v51 = vld [vmem:[#allocation0 + $0x870] sm:$0x1]  ;;  %v1882_v52 = vld [vmem:[#allocation0 + $0x878] sm:$0x1] }
  0xe6   :  { %2580 = vst [vmem:[%s3662_s1 + $0x10d] sm:$0x1] %v1870_v50  ;;  %2581 = vst [vmem:[%s3662_s1 + $0x10e] sm:$0x1] %v1876_v51  ;;  %v1888_v53 = vld [vmem:[#allocation0 + $0x880] sm:$0x1] }
  0xe7   :  { %2582 = vst [vmem:[%s3662_s1 + $0x10f] sm:$0x1] %v1882_v52  ;;  %v1894_v54 = vld [vmem:[#allocation0 + $0x888] sm:$0x1]  ;;  %v1900_v55 = vld [vmem:[#allocation0 + $0x890] sm:$0x1] }
  0xe8   :  { %2583 = vst [vmem:[%s3662_s1 + $0x110] sm:$0x1] %v1888_v53  ;;  %2584 = vst [vmem:[%s3662_s1 + $0x111] sm:$0x1] %v1894_v54  ;;  %v1906_v56 = vld [vmem:[#allocation0 + $0x898] sm:$0x1] }
  0xe9   :  { %2585 = vst [vmem:[%s3662_s1 + $0x112] sm:$0x1] %v1900_v55  ;;  %v1912_v57 = vld [vmem:[#allocation0 + $0x8a0] sm:$0x1]  ;;  %v1918_v58 = vld [vmem:[#allocation0 + $0x8a8] sm:$0x1] }
  0xea   :  { %2586 = vst [vmem:[%s3662_s1 + $0x113] sm:$0x1] %v1906_v56  ;;  %2587 = vst [vmem:[%s3662_s1 + $0x114] sm:$0x1] %v1912_v57  ;;  %v1924_v59 = vld [vmem:[#allocation0 + $0x8b0] sm:$0x1] }
  0xeb   :  { %2588 = vst [vmem:[%s3662_s1 + $0x115] sm:$0x1] %v1918_v58  ;;  %v1930_v60 = vld [vmem:[#allocation0 + $0x8b8] sm:$0x1]  ;;  %v1936_v61 = vld [vmem:[#allocation0 + $0x8c0] sm:$0x1] }
  0xec   :  { %2589 = vst [vmem:[%s3662_s1 + $0x116] sm:$0x1] %v1924_v59  ;;  %2590 = vst [vmem:[%s3662_s1 + $0x117] sm:$0x1] %v1930_v60  ;;  %v1942_v62 = vld [vmem:[#allocation0 + $0x8c8] sm:$0x1] }
  0xed   :  { %2591 = vst [vmem:[%s3662_s1 + $0x118] sm:$0x1] %v1936_v61  ;;  %v1948_v63 = vld [vmem:[#allocation0 + $0x8d0] sm:$0x1]  ;;  %v1954_v0 = vld [vmem:[#allocation0 + $0x8d8] sm:$0x1] }
  0xee   :  { %2592 = vst [vmem:[%s3662_s1 + $0x119] sm:$0x1] %v1942_v62  ;;  %2593 = vst [vmem:[%s3662_s1 + $0x11a] sm:$0x1] %v1948_v63  ;;  %v1960_v1 = vld [vmem:[#allocation0 + $0x8e0] sm:$0x1] }
  0xef   :  { %2594 = vst [vmem:[%s3662_s1 + $0x11b] sm:$0x1] %v1954_v0  ;;  %v1966_v2 = vld [vmem:[#allocation0 + $0x8e8] sm:$0x1]  ;;  %v1972_v3 = vld [vmem:[#allocation0 + $0x8f0] sm:$0x1] }
  0xf0   :  { %2595 = vst [vmem:[%s3662_s1 + $0x11c] sm:$0x1] %v1960_v1  ;;  %2596 = vst [vmem:[%s3662_s1 + $0x11d] sm:$0x1] %v1966_v2  ;;  %v1978_v4 = vld [vmem:[#allocation0 + $0x8f8] sm:$0x1] }
  0xf1   :  { %2597 = vst [vmem:[%s3662_s1 + $0x11e] sm:$0x1] %v1972_v3  ;;  %v1984_v5 = vld [vmem:[#allocation0 + $0x900] sm:$0x1]  ;;  %2598 = vst [vmem:[%s3662_s1 + $0x11f] sm:$0x1] %v1978_v4 }
  0xf2   :  { %2599 = vst [vmem:[%s3662_s1 + $0x120] sm:$0x1] %v1984_v5 }

// kernel: squeeze.25
= control target key start
LH: loop header
LB: loop body
LE: loop exit
PB: predicated region body
PF: predicated region fallthrough
CT: control target
= control target key end

     0   :  { %vm3_vm0 = vcmask 523264   ;;  %s582_s0 = inlined_call_operand.vmem [shape: f32[1,272,64], index: 0, kind: input, shape index: {}]   ;;  %s583_s1 = inlined_call_operand.vmem [shape: f32[16,17,64], index: 1, kind: output, shape index: {}]  }
   0x1   :  { %v2_v0 = vld [vmem:[%s582_s0] sm:$0xff]   ;;  %v198_v1 = vld [vmem:[%s582_s0 + $0x8] sm:$0xff]   ;;  %v200_v2 = vld [vmem:[%s582_s0 + $0x10] sm:$0xff]  }
   0x2   :  { %4 = vst.msk [vmem:[%s583_s1] sm:$0xff] %vm3_vm0, %v2_v0   ;;  %199 = vst.msk [vmem:[%s583_s1 + $0x8] sm:$0xff] %vm3_vm0, %v198_v1   ;;  %v203_v3 = vld [vmem:[%s582_s0 + $0x18] sm:$0xff]   ;;  %v205_v4 = vld [vmem:[%s582_s0 + $0x20] sm:$0xff]  }
   0x3   :  { %201 = vst.msk [vmem:[%s583_s1 + $0x10] ss:$8 sm:$0x3] %vm3_vm0, %v200_v2   ;;  %202 = vst.msk [vmem:[%s583_s1 + $0x17] sm:$0xfc] %vm3_vm0, %v200_v2   ;;  %v208_v5 = vld [vmem:[%s582_s0 + $0x28] sm:$0xff]  }
   0x4   :  { %204 = vst.msk [vmem:[%s583_s1 + $0x1f] sm:$0xff] %vm3_vm0, %v203_v3   ;;  %206 = vst.msk [vmem:[%s583_s1 + $0x27] sm:$0x3] %vm3_vm0, %v205_v4   ;;  %v210_v6 = vld [vmem:[%s582_s0 + $0x30] sm:$0xff]   ;;  %v213_v7 = vld [vmem:[%s582_s0 + $0x38] sm:$0xff]  }
   0x5   :  { %207 = vst.msk [vmem:[%s583_s1 + $0x2e] sm:$0xfc] %vm3_vm0, %v205_v4   ;;  %209 = vst.msk [vmem:[%s583_s1 + $0x36] sm:$0xff] %vm3_vm0, %v208_v5   ;;  %v215_v8 = vld [vmem:[%s582_s0 + $0x40] sm:$0xff]   ;;  %v218_v9 = vld [vmem:[%s582_s0 + $0x48] sm:$0xff]  }
   0x6   :  { %211 = vst.msk [vmem:[%s583_s1 + $0x3e] sm:$0x7] %vm3_vm0, %v210_v6   ;;  %212 = vst.msk [vmem:[%s583_s1 + $0x45] sm:$0xf8] %vm3_vm0, %v210_v6   ;;  %v220_v10 = vld [vmem:[%s582_s0 + $0x50] sm:$0xff]   ;;  %v223_v11 = vld [vmem:[%s582_s0 + $0x58] sm:$0xff]  }
   0x7   :  { %214 = vst.msk [vmem:[%s583_s1 + $0x4d] sm:$0xff] %vm3_vm0, %v213_v7   ;;  %216 = vst.msk [vmem:[%s583_s1 + $0x55] sm:$0xf] %vm3_vm0, %v215_v8   ;;  %v225_v12 = vld [vmem:[%s582_s0 + $0x60] sm:$0xff]   ;;  %v228_v13 = vld [vmem:[%s582_s0 + $0x68] sm:$0xff]  }
   0x8   :  { %217 = vst.msk [vmem:[%s583_s1 + $0x5c] sm:$0xf0] %vm3_vm0, %v215_v8   ;;  %219 = vst.msk [vmem:[%s583_s1 + $0x64] sm:$0xff] %vm3_vm0, %v218_v9   ;;  %v230_v14 = vld [vmem:[%s582_s0 + $0x70] sm:$0xff]   ;;  %v233_v15 = vld [vmem:[%s582_s0 + $0x78] sm:$0xff]  }
   0x9   :  { %221 = vst.msk [vmem:[%s583_s1 + $0x6c] sm:$0x1f] %vm3_vm0, %v220_v10   ;;  %222 = vst.msk [vmem:[%s583_s1 + $0x73] sm:$0xe0] %vm3_vm0, %v220_v10   ;;  %v235_v16 = vld [vmem:[%s582_s0 + $0x80] sm:$0xff]   ;;  %v237_v17 = vld [vmem:[%s582_s0 + $0x88] sm:$0xff]  }
   0xa   :  { %224 = vst.msk [vmem:[%s583_s1 + $0x7b] sm:$0xff] %vm3_vm0, %v223_v11   ;;  %226 = vst.msk [vmem:[%s583_s1 + $0x83] sm:$0x3f] %vm3_vm0, %v225_v12   ;;  %v239_v18 = vld [vmem:[%s582_s0 + $0x90] sm:$0xff]   ;;  %v241_v19 = vld [vmem:[%s582_s0 + $0x98] sm:$0xff]  }
   0xb   :  { %227 = vst.msk [vmem:[%s583_s1 + $0x8a] sm:$0xc0] %vm3_vm0, %v225_v12   ;;  %229 = vst.msk [vmem:[%s583_s1 + $0x92] sm:$0xff] %vm3_vm0, %v228_v13   ;;  %v244_v20 = vld [vmem:[%s582_s0 + $0xa0] sm:$0xff]   ;;  %v246_v21 = vld [vmem:[%s582_s0 + $0xa8] sm:$0xff]  }
   0xc   :  { %231 = vst.msk [vmem:[%s583_s1 + $0x9a] sm:$0x7f] %vm3_vm0, %v230_v14   ;;  %232 = vst.msk [vmem:[%s583_s1 + $0xa1] sm:$0x80] %vm3_vm0, %v230_v14   ;;  %v249_v22 = vld [vmem:[%s582_s0 + $0xb0] sm:$0xff]   ;;  %v251_v23 = vld [vmem:[%s582_s0 + $0xb8] sm:$0xff]  }
   0xd   :  { %234 = vst.msk [vmem:[%s583_s1 + $0xa9] sm:$0xff] %vm3_vm0, %v233_v15   ;;  %236 = vst.msk [vmem:[%s583_s1 + $0xb1] sm:$0xff] %vm3_vm0, %v235_v16   ;;  %v254_v24 = vld [vmem:[%s582_s0 + $0xc0] sm:$0xff]   ;;  %v256_v25 = vld [vmem:[%s582_s0 + $0xc8] sm:$0xff]  }
   0xe   :  { %238 = vst.msk [vmem:[%s583_s1 + $0xc0] sm:$0xff] %vm3_vm0, %v237_v17   ;;  %240 = vst.msk [vmem:[%s583_s1 + $0xc8] sm:$0xff] %vm3_vm0, %v239_v18   ;;  %v259_v26 = vld [vmem:[%s582_s0 + $0xd0] sm:$0xff]   ;;  %v261_v27 = vld [vmem:[%s582_s0 + $0xd8] sm:$0xff]  }
   0xf   :  { %242 = vst.msk [vmem:[%s583_s1 + $0xd0] ss:$8 sm:$0x3] %vm3_vm0, %v241_v19   ;;  %243 = vst.msk [vmem:[%s583_s1 + $0xd7] sm:$0xfc] %vm3_vm0, %v241_v19   ;;  %v264_v28 = vld [vmem:[%s582_s0 + $0xe0] sm:$0xff]  }
  0x10   :  { %245 = vst.msk [vmem:[%s583_s1 + $0xdf] sm:$0xff] %vm3_vm0, %v244_v20   ;;  %247 = vst.msk [vmem:[%s583_s1 + $0xe7] sm:$0x3] %vm3_vm0, %v246_v21   ;;  %v266_v29 = vld [vmem:[%s582_s0 + $0xe8] sm:$0xff]   ;;  %v269_v30 = vld [vmem:[%s582_s0 + $0xf0] sm:$0xff]  }
  0x11   :  { %248 = vst.msk [vmem:[%s583_s1 + $0xee] sm:$0xfc] %vm3_vm0, %v246_v21   ;;  %250 = vst.msk [vmem:[%s583_s1 + $0xf6] sm:$0xff] %vm3_vm0, %v249_v22   ;;  %v271_v31 = vld [vmem:[%s582_s0 + $0xf8] sm:$0xff]   ;;  %v274_v32 = vld [vmem:[%s582_s0 + $0x100] sm:$0xff]  }
  0x12   :  { %252 = vst.msk [vmem:[%s583_s1 + $0xfe] sm:$0x7] %vm3_vm0, %v251_v23   ;;  %253 = vst.msk [vmem:[%s583_s1 + $0x105] sm:$0xf8] %vm3_vm0, %v251_v23   ;;  %v276_v33 = vld [vmem:[%s582_s0 + $0x108] sm:$0xff]  }
  0x13   :  { %255 = vst.msk [vmem:[%s583_s1 + $0x10d] sm:$0xff] %vm3_vm0, %v254_v24   ;;  %257 = vst.msk [vmem:[%s583_s1 + $0x115] sm:$0xf] %vm3_vm0, %v256_v25  }
  0x14   :  { %258 = vst.msk [vmem:[%s583_s1 + $0x11c] sm:$0xf0] %vm3_vm0, %v256_v25   ;;  %260 = vst.msk [vmem:[%s583_s1 + $0x124] sm:$0xff] %vm3_vm0, %v259_v26  }
  0x15   :  { %262 = vst.msk [vmem:[%s583_s1 + $0x12c] sm:$0x1f] %vm3_vm0, %v261_v27   ;;  %263 = vst.msk [vmem:[%s583_s1 + $0x133] sm:$0xe0] %vm3_vm0, %v261_v27  }
  0x16   :  { %265 = vst.msk [vmem:[%s583_s1 + $0x13b] sm:$0xff] %vm3_vm0, %v264_v28   ;;  %267 = vst.msk [vmem:[%s583_s1 + $0x143] sm:$0x3f] %vm3_vm0, %v266_v29  }
  0x17   :  { %268 = vst.msk [vmem:[%s583_s1 + $0x14a] sm:$0xc0] %vm3_vm0, %v266_v29   ;;  %270 = vst.msk [vmem:[%s583_s1 + $0x152] sm:$0xff] %vm3_vm0, %v269_v30  }
  0x18   :  { %272 = vst.msk [vmem:[%s583_s1 + $0x15a] sm:$0x7f] %vm3_vm0, %v271_v31   ;;  %273 = vst.msk [vmem:[%s583_s1 + $0x161] sm:$0x80] %vm3_vm0, %v271_v31  }
  0x19   :  { %275 = vst.msk [vmem:[%s583_s1 + $0x169] sm:$0xff] %vm3_vm0, %v274_v32   ;;  %277 = vst.msk [vmem:[%s583_s1 + $0x171] sm:$0xff] %vm3_vm0, %v276_v33  }

// kernel: model_forward.1
= control target key start
LH: loop header
LB: loop body
LE: loop exit
PB: predicated region body
PF: predicated region fallthrough
CT: control target
= control target key end

     0   :  { %s4385_s18 = smov 0   ;;  %s4387_s19 = smov 0   ;;  %s6419_s0 = inlined_call_operand.vmem [shape: bf16[4,512,128], index: 0, kind: input, shape index: {}]   ;;  %s6420_s1 = inlined_call_operand.vmem [shape: bf16[4,128,64], index: 1, kind: input, shape index: {}]   ;;  %s6421_s2 = inlined_call_operand.vmem [shape: f32[64,64], index: 2, kind: input, shape index: {}]   ;;  %s6422_s3 = inlined_call_operand.vmem [shape: f32[1,64], index: 3, kind: input, shape index: {}]   ;;  %s6423_s4 = inlined_call_operand.vmem [shape: f32[1,64], index: 4, kind: input, shape index: {}]   ;;  %s6424_s5 = inlined_call_operand.vmem [shape: f32[2,512,128], index: 5, kind: output, shape index: {}]  }
   0x1   :  { %s4389_s20 = smov 0   ;;  %s4391_s21 = smov 0  }
   0x2   :  { %s4393_s22 = smov 0   ;;  %s4395_s23 = smov 0  }
   0x3   :  { %s4397_s24 = smov 0  }
   0x4 LB: > { %s24_s25 = sadd.s32 1, %s4339_s22  ;;  %s27_s26 = sadd.s32 1, %s4343_s23  ;;  %s4347_s24 = sphi %s4397_s24, %s15_s24   ;;  %s4343_s23 = sphi %s4395_s23, %s6581_s23   ;;  %s4339_s22 = sphi %s4393_s22, %s6580_s22   ;;  %s4335_s21 = sphi %s4391_s21, %s6579_s21   ;;  %s4331_s20 = sphi %s4389_s20, %s6578_s20   ;;  %s4327_s19 = sphi %s4387_s19, %s6577_s19   ;;  %s4323_s18 = sphi %s4385_s18, %s6576_s18  }
   0x5   : > { %p25_p0 = scmp.ge.s32.totalorder %s24_s25, 2  ;;  %p43_p1 = scmp.ne.s32.totalorder %s4327_s19, %s4323_s18 }
   0x6   : > { %p44_p2 = scmp.eq.s32.totalorder %s4347_s24, 0  ;;  %s36_s30 = sadd.s32 1, %s4327_s19 }
   0x7   : > { %s6583_s25 = smov (%p25_p0, %s24_s25), 0  ;;  %s6585_s26 = smov (!%p25_p0, %s27_s26), %s4343_s23 }
   0x8   : > { %p45_p3 = por %p44_p2, %p43_p1  ;;  %p29_p4 = scmp.ge.s32.totalorder %s6585_s26, 2 }
   0x9   : > { %s32_s27 = ssub.s32 %s4339_s22, %s6583_s25  ;;  %p3422_p6 = scmp.ge.s32.totalorder %s4347_s24, 4 }
   0xa   : > { %s6587_s26 = smov (%p29_p4, %s6585_s26), 0 }
   0xb   : > { %s31_s28 = ssub.s32 %s4343_s23, %s6587_s26  ;;  %188 = sbr.rel (%p3422_p6) target bundleno = 41 (0x29), region = 28 }
   0xc   : > { %s33_s29 = sor.u32 %s32_s27, %s31_s28 }
   0xd   : > { %p34_p5 = scmp.eq.s32.totalorder %s33_s29, 0 }
   0xf   : > { %s4436_s6 = scalar_select %p34_p5, %s4327_s19, %s36_s30  }
  0x12   : > { %191 = sbr.rel (!%p45_p3) target bundleno = 41 (0x29), region = 32  ;;  %s193_s7 = sand.u32 (%p45_p3), 1, %s4327_s19  }
  0x13   : > { %s3425_s8 = sshll.u32 (%p45_p3), %s4339_s22, 5  ;;  %s3423_s9 = sshll.u32 (%p45_p3), %s193_s7, 8 }
  0x14   : > { %s3535_s10 = sshll.u32 (%p45_p3), %s4343_s23, 7  ;;  %s4450_s16 = scalar_lea.vmem (%p45_p3), [#allocation4], %s3423_s9 }
  0x15   : > { %s199_s11 = sadd.s32 (%p45_p3), %s3535_s10, %s3425_s8 }
  0x16   : > { %s3427_s12 = sshll.u32 (%p45_p3), %s199_s11, 2 }
  0x17   : > { %s4445_s15 = scalar_lea.vmem (%p45_p3), %s6419_s0, %s3427_s12 }
  0x18   : > { %v217_v0 = vld [vmem:[%s4445_s15] sm:$0xff] (%p45_p3)   ;;  %v221_v1 = vld [vmem:[%s4445_s15 + $0x8] sm:$0xff] (%p45_p3)   ;;  %v225_v2 = vld [vmem:[%s4445_s15 + $0x10] sm:$0xff] (%p45_p3)  }
  0x19   : > { %218 = vst [vmem:[%s4450_s16] sm:$0xff] %v217_v0   ;;  %222 = vst [vmem:[%s4450_s16 + $0x8] sm:$0xff] %v221_v1   ;;  %v229_v3 = vld [vmem:[%s4445_s15 + $0x18] sm:$0xff]   ;;  %v233_v4 = vld [vmem:[%s4445_s15 + $0x20] sm:$0xff]  }
  0x1a   : > { %226 = vst [vmem:[%s4450_s16 + $0x10] sm:$0xff] %v225_v2   ;;  %v237_v5 = vld [vmem:[%s4445_s15 + $0x28] sm:$0xff]   ;;  %230 = vst [vmem:[%s4450_s16 + $0x18] sm:$0xff] %v229_v3   ;;  %v241_v6 = vld [vmem:[%s4445_s15 + $0x30] sm:$0xff]  }
  0x1b   : > { %234 = vst [vmem:[%s4450_s16 + $0x20] sm:$0xff] %v233_v4   ;;  %238 = vst [vmem:[%s4450_s16 + $0x28] sm:$0xff] %v237_v5   ;;  %v245_v7 = vld [vmem:[%s4445_s15 + $0x38] sm:$0xff]   ;;  %v249_v8 = vld [vmem:[%s4445_s15 + $0x40] sm:$0xff]  }
  0x1c   : > { %242 = vst [vmem:[%s4450_s16 + $0x30] sm:$0xff] %v241_v6   ;;  %246 = vst [vmem:[%s4450_s16 + $0x38] sm:$0xff] %v245_v7   ;;  %v253_v9 = vld [vmem:[%s4445_s15 + $0x48] sm:$0xff]   ;;  %v257_v10 = vld [vmem:[%s4445_s15 + $0x50] sm:$0xff]  }
  0x1d   : > { %250 = vst [vmem:[%s4450_s16 + $0x40] sm:$0xff] %v249_v8   ;;  %v261_v11 = vld [vmem:[%s4445_s15 + $0x58] sm:$0xff]   ;;  %254 = vst [vmem:[%s4450_s16 + $0x48] sm:$0xff] %v253_v9   ;;  %v265_v12 = vld [vmem:[%s4445_s15 + $0x60] sm:$0xff]  }
  0x1e   : > { %258 = vst [vmem:[%s4450_s16 + $0x50] sm:$0xff] %v257_v10   ;;  %262 = vst [vmem:[%s4450_s16 + $0x58] sm:$0xff] %v261_v11   ;;  %v269_v13 = vld [vmem:[%s4445_s15 + $0x68] sm:$0xff]   ;;  %v273_v14 = vld [vmem:[%s4445_s15 + $0x70] sm:$0xff]  }
  0x1f   : > { %266 = vst [vmem:[%s4450_s16 + $0x60] sm:$0xff] %v265_v12   ;;  %270 = vst [vmem:[%s4450_s16 + $0x68] sm:$0xff] %v269_v13   ;;  %v277_v15 = vld [vmem:[%s4445_s15 + $0x78] sm:$0xff]   ;;  %v281_v16 = vld [vmem:[%s4445_s15 + $0x100] sm:$0xff]  }
  0x20   : > { %274 = vst [vmem:[%s4450_s16 + $0x70] sm:$0xff] %v273_v14   ;;  %v285_v17 = vld [vmem:[%s4445_s15 + $0x108] sm:$0xff]   ;;  %278 = vst [vmem:[%s4450_s16 + $0x78] sm:$0xff] %v277_v15   ;;  %v289_v18 = vld [vmem:[%s4445_s15 + $0x110] sm:$0xff]  }
  0x21   : > { %282 = vst [vmem:[%s4450_s16 + $0x80] sm:$0xff] %v281_v16   ;;  %286 = vst [vmem:[%s4450_s16 + $0x88] sm:$0xff] %v285_v17   ;;  %v293_v19 = vld [vmem:[%s4445_s15 + $0x118] sm:$0xff]   ;;  %v297_v20 = vld [vmem:[%s4445_s15 + $0x120] sm:$0xff]  }
  0x22   : > { %290 = vst [vmem:[%s4450_s16 + $0x90] sm:$0xff] %v289_v18   ;;  %294 = vst [vmem:[%s4450_s16 + $0x98] sm:$0xff] %v293_v19   ;;  %v301_v21 = vld [vmem:[%s4445_s15 + $0x128] sm:$0xff]   ;;  %v305_v22 = vld [vmem:[%s4445_s15 + $0x130] sm:$0xff]  }
  0x23   : > { %298 = vst [vmem:[%s4450_s16 + $0xa0] sm:$0xff] %v297_v20   ;;  %v309_v23 = vld [vmem:[%s4445_s15 + $0x138] sm:$0xff]   ;;  %302 = vst [vmem:[%s4450_s16 + $0xa8] sm:$0xff] %v301_v21   ;;  %v313_v24 = vld [vmem:[%s4445_s15 + $0x140] sm:$0xff]  }
  0x24   : > { %306 = vst [vmem:[%s4450_s16 + $0xb0] sm:$0xff] %v305_v22   ;;  %310 = vst [vmem:[%s4450_s16 + $0xb8] sm:$0xff] %v309_v23   ;;  %v317_v25 = vld [vmem:[%s4445_s15 + $0x148] sm:$0xff]   ;;  %v321_v26 = vld [vmem:[%s4445_s15 + $0x150] sm:$0xff]  }
  0x25   : > { %314 = vst [vmem:[%s4450_s16 + $0xc0] sm:$0xff] %v313_v24   ;;  %318 = vst [vmem:[%s4450_s16 + $0xc8] sm:$0xff] %v317_v25   ;;  %v325_v27 = vld [vmem:[%s4445_s15 + $0x158] sm:$0xff]   ;;  %v329_v28 = vld [vmem:[%s4445_s15 + $0x160] sm:$0xff]  }
  0x26   : > { %322 = vst [vmem:[%s4450_s16 + $0xd0] sm:$0xff] %v321_v26   ;;  %v333_v29 = vld [vmem:[%s4445_s15 + $0x168] sm:$0xff]   ;;  %326 = vst [vmem:[%s4450_s16 + $0xd8] sm:$0xff] %v325_v27   ;;  %v337_v30 = vld [vmem:[%s4445_s15 + $0x170] sm:$0xff]  }
  0x27   : > { %330 = vst [vmem:[%s4450_s16 + $0xe0] sm:$0xff] %v329_v28   ;;  %334 = vst [vmem:[%s4450_s16 + $0xe8] sm:$0xff] %v333_v29   ;;  %v341_v31 = vld [vmem:[%s4445_s15 + $0x178] sm:$0xff]  }
  0x28   : > { %338 = vst [vmem:[%s4450_s16 + $0xf0] sm:$0xff] %v337_v30   ;;  %342 = vst [vmem:[%s4450_s16 + $0xf8] sm:$0xff] %v341_v31  }
  0x29 PF: > { %p3428_p7 = scmp.ge.s32.totalorder %s4347_s24, 1  ;;  %p504_p8 = scmp.lt.s32.totalorder %s4347_s24, 5 }
  0x2b   : > { %p505_p9 = pnand %p3428_p7, %p504_p8 }
  0x2c   : > { %s511_s17 = sand.u32 (!%p505_p9), 1, %s4323_s18   ;;  %s3430_s27 = sshll.u32 (!%p505_p9), %s4335_s21, 1 }
  0x2d   : > { %508 = sbr.rel (%p505_p9) target bundleno = 1198 (0x4ae), region = 77  ;;  %s3429_s28 = sshll.u32 (!%p505_p9), %s511_s17, 8 }
  0x2e   : > { %p542_p10 = scmp.lt.s32.totalorder (!%p505_p9), %s3430_s27, 3  ;;  %p549_p11 = scmp.eq.s32.totalorder (!%p505_p9), %s4335_s21, 0 }
  0x2f   : > { %p550_p12 = scmp.eq.s32.totalorder (!%p505_p9), %s4331_s20, 0  ;;  %s4524_s9 = scalar_lea.vmem (!%p505_p9), [#allocation4], %s3429_s28 }
  0x31   : > { %p551_p13 = pnand (!%p505_p9), %p550_p12, %p549_p11 }
  0x34   : > { %s6589_s27 = smov (!%p542_p10, %s3430_s27), 3  ;;  %554 = sbr.rel (%p551_p13) target bundleno = 59 (0x3b), region = 85 }
  0x35   : > { %s3536_s29 = sshll.u32 %s6589_s27, 6  ;;  %v4349_v32 = vmov (!%p551_p13), 0.0  }
  0x36   : > { %s4522_s8 = scalar_lea.vmem %s6420_s1, %s3536_s29  ;;  %555 = vst [vmem:[#allocation2] sm:$0x1] (!%p551_p13), %v4349_v32  ;;  %556 = vst [vmem:[#allocation3] sm:$0x1] (!%p551_p13), %v4349_v32 }
  0x3b PF: > { %v4243_v33 = vld [vmem:[%s4522_s8 + $0x40] sm:$0xff]   ;;  %v4244_v34 = vld [vmem:[%s4522_s8 + $0x48] sm:$0xff]   ;;  %v4245_v35 = vld [vmem:[%s4522_s8 + $0x50] sm:$0xff]   ;;  %s4350_s18 = smov 64   ;;  %p1702_p0 = scmp.eq.s32.totalorder %s4335_s21, 1  ;;  %vm1393_vm0 = vcmask 523264  }
  0x3c   : > { %3741 = vmatprep.subr.bf16.mxu1 %v4243_v33  ;;  %v4246_v36 = vld [vmem:[%s4522_s8 + $0x58] sm:$0xff]   ;;  %v4251_v37 = vld [vmem:[%s4524_s9 + $0x80] sm:$0xff]   ;;  %v4249_v40 = vld [vmem:[%s4522_s8 + $0x70] sm:$0xff]   ;;  %p1703_p1 = scmp.eq.s32.totalorder %s4331_s20, 1  ;;  %s3529_s11 = sshll.u32 %s4331_s20, 8 }
  0x3d   : > { %3742 = vmatpush3.bf16.msra.mxu1 %v4243_v33  ;;  %3757 = vmatprep.mubr.bf16.mxu1 %v4251_v37  ;;  %v4247_v38 = vld [vmem:[%s4522_s8 + $0x60] sm:$0xff]   ;;  %v4248_v39 = vld [vmem:[%s4522_s8 + $0x68] sm:$0xff]   ;;  %v4250_v41 = vld [vmem:[%s4522_s8 + $0x78] sm:$0xff]   ;;  %s3530_s12 = sshll.u32 %s4335_s21, 9 }
  0x3e   : > { %3743 = vmatprep.subr.bf16.mxu1 %v4244_v34  ;;  %v4267_v42 = vld [vmem:[%s4522_s8] sm:$0xff]   ;;  %v4268_v43 = vld [vmem:[%s4522_s8 + $0x8] sm:$0xff]   ;;  %v4269_v44 = vld [vmem:[%s4522_s8 + $0x10] sm:$0xff]   ;;  %p4668_p2 = pnand %p1703_p1, %p1702_p0  ;;  %s1556_s13 = sadd.s32 %s3530_s12, %s3529_s11 }
  0x3f   : > { %3693 = vmatprep.subr.bf16.mxu0 %v4267_v42  ;;  %v4252_v45 = vld [vmem:[%s4524_s9 + $0x88] sm:$0xff]   ;;  %v4253_v46 = vld [vmem:[%s4524_s9 + $0x90] sm:$0xff]   ;;  %v4275_v48 = vld [vmem:[%s4524_s9] sm:$0xff]   ;;  %s4689_s14 = scalar_lea.vmem %s6424_s5, %s1556_s13 }
  0x40   : > { %3694 = vmatpush3.bf16.msra.mxu0 %v4267_v42  ;;  %v4270_v47 = vld [vmem:[%s4522_s8 + $0x18] sm:$0xff]   ;;  %3709 = vmatprep.mubr.bf16.mxu0 %v4275_v48  ;;  %v4271_v49 = vld [vmem:[%s4522_s8 + $0x20] sm:$0xff]   ;;  %v4272_v52 = vld [vmem:[%s4522_s8 + $0x28] sm:$0xff]  }
  0x41   : > { %3744 = vmatpush3.bf16.msra.mxu1 %v4244_v34  ;;  %3695 = vmatprep.subr.bf16.mxu0 %v4268_v43  ;;  %v4254_v50 = vld [vmem:[%s4524_s9 + $0x98] sm:$0xff]   ;;  %v4255_v51 = vld [vmem:[%s4524_s9 + $0xa0] sm:$0xff]   ;;  %v4273_v53 = vld [vmem:[%s4522_s8 + $0x30] sm:$0xff]  }
  0x42   : > { %3745 = vmatprep.subr.bf16.mxu1 %v4245_v35  ;;  %v4256_v54 = vld [vmem:[%s4524_s9 + $0xa8] sm:$0xff]   ;;  %v4257_v55 = vld [vmem:[%s4524_s9 + $0xb0] sm:$0xff]   ;;  %v4258_v57 = vld [vmem:[%s4524_s9 + $0xb8] sm:$0xff]  }
  0x43   : > { %v4274_v56 = vld [vmem:[%s4522_s8 + $0x38] sm:$0xff]   ;;  %v4276_v58 = vld [vmem:[%s4524_s9 + $0x8] sm:$0xff]   ;;  %v4259_v59 = vld [vmem:[%s4524_s9 + $0xc0] sm:$0xff]  }
  0x44   : > { %3696 = vmatpush3.bf16.msra.mxu0 %v4268_v43  ;;  %v4277_v60 = vld [vmem:[%s4524_s9 + $0x10] sm:$0xff]   ;;  %v4260_v61 = vld [vmem:[%s4524_s9 + $0xc8] sm:$0xff]   ;;  %v4278_v62 = vld [vmem:[%s4524_s9 + $0x18] sm:$0xff]  }
  0x45   : > { %3746 = vmatpush3.bf16.msra.mxu1 %v4245_v35  ;;  %3697 = vmatprep.subr.bf16.mxu0 %v4269_v44  ;;  %v4261_v63 = vld [vmem:[%s4524_s9 + $0xd0] sm:$0xff]   ;;  %v4279_v0 = vld [vmem:[%s4524_s9 + $0x20] sm:$0xff]   ;;  %v4262_v1 = vld [vmem:[%s4524_s9 + $0xd8] sm:$0xff]  }
  0x46   : > { %3747 = vmatprep.subr.bf16.mxu1 %v4246_v36  ;;  %v4280_v2 = vld [vmem:[%s4524_s9 + $0x28] sm:$0xff]   ;;  %v4263_v3 = vld [vmem:[%s4524_s9 + $0xe0] sm:$0xff]   ;;  %v4281_v4 = vld [vmem:[%s4524_s9 + $0x30] sm:$0xff]  }
  0x47   : > { %v4264_v5 = vld [vmem:[%s4524_s9 + $0xe8] sm:$0xff]   ;;  %v4282_v6 = vld [vmem:[%s4524_s9 + $0x38] sm:$0xff]   ;;  %v4265_v7 = vld [vmem:[%s4524_s9 + $0xf0] sm:$0xff]  }
  0x48   : > { %3698 = vmatpush3.bf16.msra.mxu0 %v4269_v44  ;;  %v4283_v8 = vld [vmem:[%s4524_s9 + $0x40] sm:$0xff]   ;;  %v4266_v9 = vld [vmem:[%s4524_s9 + $0xf8] sm:$0xff]   ;;  %v4284_v10 = vld [vmem:[%s4524_s9 + $0x48] sm:$0xff]  }
  0x49   : > { %3748 = vmatpush3.bf16.msra.mxu1 %v4246_v36  ;;  %3699 = vmatprep.subr.bf16.mxu0 %v4270_v47  ;;  %v4285_v11 = vld [vmem:[%s4524_s9 + $0x50] sm:$0xff]   ;;  %v4286_v12 = vld [vmem:[%s4524_s9 + $0x58] sm:$0xff]   ;;  %v4287_v13 = vld [vmem:[%s4524_s9 + $0x60] sm:$0xff]  }
  0x4a   : > { %3749 = vmatprep.subr.bf16.mxu1 %v4247_v38  ;;  %v4288_v14 = vld [vmem:[%s4524_s9 + $0x68] sm:$0xff]   ;;  %v4289_v15 = vld [vmem:[%s4524_s9 + $0x70] sm:$0xff]   ;;  %v4290_v16 = vld [vmem:[%s4524_s9 + $0x78] sm:$0xff]  }
  0x4c   : > { %3700 = vmatpush3.bf16.msra.mxu0 %v4270_v47 }
  0x4d   : > { %3750 = vmatpush3.bf16.msra.mxu1 %v4247_v38  ;;  %3701 = vmatprep.subr.bf16.mxu0 %v4271_v49 }
  0x4e   : > { %3751 = vmatprep.subr.bf16.mxu1 %v4248_v39 }
  0x50   : > { %3702 = vmatpush3.bf16.msra.mxu0 %v4271_v49 }
  0x51   : > { %3752 = vmatpush3.bf16.msra.mxu1 %v4248_v39  ;;  %3703 = vmatprep.subr.bf16.mxu0 %v4272_v52 }
  0x52   : > { %3753 = vmatprep.subr.bf16.mxu1 %v4249_v40 }
  0x54   : > { %3704 = vmatpush3.bf16.msra.mxu0 %v4272_v52 }
  0x55   : > { %3754 = vmatpush3.bf16.msra.mxu1 %v4249_v40  ;;  %3705 = vmatprep.subr.bf16.mxu0 %v4273_v53 }
  0x56   : > { %3755 = vmatprep.subr.bf16.mxu1 %v4250_v41 }
  0x58   : > { %3706 = vmatpush3.bf16.msra.mxu0 %v4273_v53 }
  0x59   : > { %3756 = vmatpush3.bf16.msra.mxu1 %v4250_v41  ;;  %3707 = vmatprep.subr.bf16.mxu0 %v4274_v56 }
  0x5c   : > { %3758 = vmatmul.mubr.bf16.vlgmr.msra.gmra.mrb[0].mxu1 %v4252_v45  ;;  %3708 = vmatpush3.bf16.msra.mxu0 %v4274_v56 }
  0x5d   : > { %3761 = vmatprep.mubr.bf16.mxu1 %v4253_v46 }
  0x5f   : > { %3710 = vmatmul.mubr.bf16.vlgmr.msra.gmra.mrb[0].mxu0 %v4276_v58 }
  0x60   : > { %3713 = vmatprep.mubr.bf16.mxu0 %v4277_v60 }
  0x64   : > { %3762 = vmatmul.mubr.bf16.gmra.mrb[4].mxu1 %v4254_v50 }
  0x65   : > { %3765 = vmatprep.mubr.bf16.mxu1 %v4255_v51 }
  0x67   : > { %3714 = vmatmul.mubr.bf16.gmra.mrb[4].mxu0 %v4278_v62 }
  0x68   : > { %3717 = vmatprep.mubr.bf16.mxu0 %v4279_v0 }
  0x6c   : > { %3766 = vmatmul.mubr.bf16.gmra.mrb[8].mxu1 %v4256_v54 }
  0x6d   : > { %3769 = vmatprep.mubr.bf16.mxu1 %v4257_v55 }
  0x6f   : > { %3718 = vmatmul.mubr.bf16.gmra.mrb[8].mxu0 %v4280_v2 }
  0x70   : > { %3721 = vmatprep.mubr.bf16.mxu0 %v4281_v4 }
  0x74   : > { %3770 = vmatmul.mubr.bf16.gmra.mrb[12].mxu1 %v4258_v57 }
  0x75   : > { %3773 = vmatprep.mubr.bf16.mxu1 %v4259_v59 }
  0x77   : > { %3722 = vmatmul.mubr.bf16.gmra.mrb[12].mxu0 %v4282_v6 }
  0x78   : > { %3725 = vmatprep.mubr.bf16.mxu0 %v4283_v8 }
  0x7c   : > { %3774 = vmatmul.mubr.bf16.gmra.mrb[16].mxu1 %v4260_v61 }
  0x7d   : > { %3777 = vmatprep.mubr.bf16.mxu1 %v4261_v63 }
  0x7f   : > { %3726 = vmatmul.mubr.bf16.gmra.mrb[16].mxu0 %v4284_v10 }
  0x80   : > { %3729 = vmatprep.mubr.bf16.mxu0 %v4285_v11 }
  0x84   : > { %3778 = vmatmul.mubr.bf16.gmra.mrb[20].mxu1 %v4262_v1 }
  0x85   : > { %3781 = vmatprep.mubr.bf16.mxu1 %v4263_v3 }
  0x87   : > { %3730 = vmatmul.mubr.bf16.gmra.mrb[20].mxu0 %v4286_v12 }
  0x88   : > { %3733 = vmatprep.mubr.bf16.mxu0 %v4287_v13 }
  0x8c   : > { %3782 = vmatmul.mubr.bf16.gmra.mrb[24].mxu1 %v4264_v5 }
  0x8d   : > { %3785 = vmatprep.mubr.bf16.mxu1 %v4265_v7 }
  0x8f   : > { %3734 = vmatmul.mubr.bf16.gmra.mrb[24].mxu0 %v4288_v14 }
  0x90   : > { %3737 = vmatprep.mubr.bf16.mxu0 %v4289_v15 }
  0x94   : > { %3786 = vmatmul.mubr.bf16.gmra.mrb[28].mxu1 %v4266_v9 }
  0x97   : > { %3738 = vmatmul.mubr.bf16.gmra.mrb[28].mxu0 %v4290_v16 }
 0x12f   : > { %v3759_v17 = vpop.f32.mrb[0].mxu1 }
 0x130   : > { %1301 = vrot.lane.b32.xlu1 %v3759_v17, %s4350_s18  ;;  %v1138_v18 = vpop.f32.mrb[1].mxu1 }
 0x131   : > { %1297 = vrot.lane.b32.xlu0 %v1138_v18, %s4350_s18  ;;  %v3760_v19 = vpop.f32.mrb[2].mxu1 }
 0x132   : > { %v1141_v20 = vpop.f32.mrb[3].mxu1  ;;  %v4586_v30 = vpop.f32.mrb[0].mxu0 }
 0x133   : > { %v4588_v32 = vpop.f32.mrb[1].mxu0 }
 0x134   : > { %1303 = vrot.lane.b32.xlu1 %v3760_v19, %s4350_s18  ;;  %v4591_v34 = vpop.f32.mrb[2].mxu0 }
 0x135   : > { %1299 = vrot.lane.b32.xlu0 %v1141_v20, %s4350_s18  ;;  %v4593_v36 = vpop.f32.mrb[3].mxu0 }
 0x137   : > { %v3763_v21 = vpop.f32.mrb[4].mxu1 }
 0x138   : > { %v1154_v22 = vpop.f32.mrb[5].mxu1 }
 0x139   : > { %1305 = vrot.lane.b32.xlu0 %v1154_v22, %s4350_s18  ;;  %v3764_v23 = vpop.f32.mrb[6].mxu1 }
 0x13a   : > { %v1157_v24 = vpop.f32.mrb[7].mxu1  ;;  %v4598_v38 = vpop.f32.mrb[4].mxu0 }
 0x13b   : > { %1307 = vrot.lane.b32.xlu1 %v1157_v24, %s4350_s18  ;;  %v4600_v40 = vpop.f32.mrb[5].mxu0 }
 0x13c   : > { %v4603_v42 = vpop.f32.mrb[6].mxu0 }
 0x13d   : > { %1309 = vrot.lane.b32.xlu0 %v3763_v21, %s4350_s18  ;;  %v4605_v44 = vpop.f32.mrb[7].mxu0 }
 0x13f   : > { %1311 = vrot.lane.b32.xlu1 %v3764_v23, %s4350_s18  ;;  %v3767_v25 = vpop.f32.mrb[8].mxu1 }
 0x140   : > { %v1170_v26 = vpop.f32.mrb[9].mxu1 }
 0x141   : > { %1313 = vrot.lane.b32.xlu0 %v1170_v26, %s4350_s18  ;;  %v3768_v27 = vpop.f32.mrb[10].mxu1 }
 0x142   : > { %v1173_v28 = vpop.f32.mrb[11].mxu1  ;;  %v4610_v46 = vpop.f32.mrb[8].mxu0 }
 0x143   : > { %1315 = vrot.lane.b32.xlu1 %v1173_v28, %s4350_s18  ;;  %v4612_v48 = vpop.f32.mrb[9].mxu0 }
 0x144   : > { %v4615_v50 = vpop.f32.mrb[10].mxu0 }
 0x145   : > { %1317 = vrot.lane.b32.xlu0 %v3767_v25, %s4350_s18  ;;  %v4617_v52 = vpop.f32.mrb[11].mxu0 }
 0x147   : > { %1319 = vrot.lane.b32.xlu1 %v3768_v27, %s4350_s18  ;;  %v3771_v29 = vpop.f32.mrb[12].mxu1 }
 0x148   : > { %v1186_v31 = vpop.f32.mrb[13].mxu1 }
 0x149   : > { %1321 = vrot.lane.b32.xlu0 %v1186_v31, %s4350_s18  ;;  %v3772_v33 = vpop.f32.mrb[14].mxu1 }
 0x14a   : > { %v1189_v35 = vpop.f32.mrb[15].mxu1  ;;  %v4622_v54 = vpop.f32.mrb[12].mxu0 }
 0x14b   : > { %1323 = vrot.lane.b32.xlu1 %v1189_v35, %s4350_s18  ;;  %v4624_v56 = vpop.f32.mrb[13].mxu0 }
 0x14c   : > { %v4627_v58 = vpop.f32.mrb[14].mxu0 }
 0x14d   : > { %1325 = vrot.lane.b32.xlu0 %v3771_v29, %s4350_s18  ;;  %v4629_v60 = vpop.f32.mrb[15].mxu0 }
 0x14f   : > { %1327 = vrot.lane.b32.xlu1 %v3772_v33, %s4350_s18  ;;  %v3775_v37 = vpop.f32.mrb[16].mxu1 }
 0x150   : > { %v1202_v39 = vpop.f32.mrb[17].mxu1 }
 0x151   : > { %1329 = vrot.lane.b32.xlu0 %v1202_v39, %s4350_s18  ;;  %v3776_v41 = vpop.f32.mrb[18].mxu1 }
 0x152   : > { %v1205_v43 = vpop.f32.mrb[19].mxu1  ;;  %v4634_v62 = vpop.f32.mrb[16].mxu0 }
 0x153   : > { %1331 = vrot.lane.b32.xlu1 %v1205_v43, %s4350_s18  ;;  %v4636_v0 = vpop.f32.mrb[17].mxu0 }
 0x154   : > { %v4639_v2 = vpop.f32.mrb[18].mxu0 }
 0x155   : > { %1333 = vrot.lane.b32.xlu0 %v3775_v37, %s4350_s18  ;;  %v4641_v4 = vpop.f32.mrb[19].mxu0 }
 0x157   : > { %1335 = vrot.lane.b32.xlu1 %v3776_v41, %s4350_s18  ;;  %v3779_v45 = vpop.f32.mrb[20].mxu1 }
 0x158   : > { %v1218_v47 = vpop.f32.mrb[21].mxu1 }
 0x159   : > { %1337 = vrot.lane.b32.xlu0 %v1218_v47, %s4350_s18  ;;  %v3780_v49 = vpop.f32.mrb[22].mxu1 }
 0x15a   : > { %v1221_v51 = vpop.f32.mrb[23].mxu1  ;;  %v4646_v5 = vpop.f32.mrb[20].mxu0 }
 0x15b   : > { %1339 = vrot.lane.b32.xlu1 %v1221_v51, %s4350_s18  ;;  %v4648_v6 = vpop.f32.mrb[21].mxu0 }
 0x15c   : > { %v4650_v7 = vpop.f32.mrb[22].mxu0 }
 0x15d   : > { %1341 = vrot.lane.b32.xlu0 %v3779_v45, %s4350_s18  ;;  %v4652_v8 = vpop.f32.mrb[23].mxu0 }
 0x15f   : > { %1343 = vrot.lane.b32.xlu1 %v3780_v49, %s4350_s18  ;;  %v3783_v53 = vpop.f32.mrb[24].mxu1 }
 0x160   : > { %v1234_v55 = vpop.f32.mrb[25].mxu1 }
 0x161   : > { %1345 = vrot.lane.b32.xlu0 %v1234_v55, %s4350_s18  ;;  %v3784_v57 = vpop.f32.mrb[26].mxu1 }
 0x162   : > { %v1237_v59 = vpop.f32.mrb[27].mxu1  ;;  %v4654_v9 = vpop.f32.mrb[24].mxu0 }
 0x163   : > { %1347 = vrot.lane.b32.xlu1 %v1237_v59, %s4350_s18  ;;  %v4656_v10 = vpop.f32.mrb[25].mxu0 }
 0x164   : > { %v4658_v11 = vpop.f32.mrb[26].mxu0 }
 0x165   : > { %1349 = vrot.lane.b32.xlu0 %v3783_v53, %s4350_s18  ;;  %v4660_v12 = vpop.f32.mrb[27].mxu0 }
 0x167   : > { %1351 = vrot.lane.b32.xlu1 %v3784_v57, %s4350_s18  ;;  %v3787_v61 = vpop.f32.mrb[28].mxu1 }
 0x168   : > { %v1250_v63 = vpop.f32.mrb[29].mxu1 }
 0x169   : > { %1353 = vrot.lane.b32.xlu0 %v1250_v63, %s4350_s18  ;;  %v3788_v1 = vpop.f32.mrb[30].mxu1 }
 0x16a   : > { %v1253_v3 = vpop.f32.mrb[31].mxu1  ;;  %v4664_v13 = vpop.f32.mrb[28].mxu0 }
 0x16b   : > { %1355 = vrot.lane.b32.xlu1 %v1253_v3, %s4350_s18  ;;  %v4666_v14 = vpop.f32.mrb[29].mxu0 }
 0x16c   : > { %v4672_v15 = vpop.f32.mrb[30].mxu0 }
 0x16d   : > { %1357 = vrot.lane.b32.xlu0 %v3787_v61, %s4350_s18  ;;  %v4674_v16 = vpop.f32.mrb[31].mxu0 }
 0x16f   : > { %1359 = vrot.lane.b32.xlu1 %v3788_v1, %s4350_s18 }
 0x1a2   : > { %v1302_v17 = vpop.permute.xlu1 %1301 }
 0x1a3   : > { %v1396_v18 = vsel %vm1393_vm0, %v4586_v30, %v1302_v17  ;;  %v1298_v19 = vpop.permute.xlu0 %1297 }
 0x1a4   : > { %v1428_v20 = vadd.f32 3.0, %v1396_v18  ;;  %v1394_v21 = vsel %vm1393_vm0, %v4588_v32, %v1298_v19 }
 0x1a5   : > { %v1426_v22 = vadd.f32 3.0, %v1394_v21 }
 0x1a6   : > { %v1460_v23 = vmax.f32 %v1428_v20, 0.0  ;;  %v1304_v24 = vpop.permute.xlu1 %1303 }
 0x1a7   : > { %v1458_v25 = vmax.f32 %v1426_v22, 0.0  ;;  %v1397_v26 = vsel %vm1393_vm0, %v4591_v34, %v1304_v24  ;;  %v1300_v27 = vpop.permute.xlu0 %1299 }
 0x1a8   : > { %v1492_v28 = vmin.f32 %v1460_v23, 6.0  ;;  %v1429_v29 = vadd.f32 3.0, %v1397_v26  ;;  %v1395_v31 = vsel %vm1393_vm0, %v4593_v36, %v1300_v27 }
 0x1a9   : > { %v1490_v30 = vmin.f32 %v1458_v25, 6.0  ;;  %v1427_v32 = vadd.f32 3.0, %v1395_v31 }
 0x1aa   : > { %v1524_v33 = vmul.f32 0.16666667, %v1492_v28  ;;  %v1461_v35 = vmax.f32 %v1429_v29, 0.0 }
 0x1ab   : > { %v1522_v37 = vmul.f32 0.16666667, %v1490_v30  ;;  %v1459_v39 = vmax.f32 %v1427_v32, 0.0  ;;  %v1306_v34 = vpop.permute.xlu0 %1305 }
 0x1ac   : > { %1560 = vst [vmem:[%s4689_s14 + $0x10] sm:$0xff] %v1524_v33  ;;  %v1493_v41 = vmin.f32 %v1461_v35, 6.0  ;;  %v1398_v36 = vsel %vm1393_vm0, %v4600_v40, %v1306_v34  ;;  %v1633_v19 = vmul.f32 %v1524_v33, %v1524_v33 }
 0x1ad   : > { %1558 = vst [vmem:[%s4689_s14] sm:$0xff] %v1522_v37  ;;  %v1491_v43 = vmin.f32 %v1459_v39, 6.0  ;;  %v1430_v45 = vadd.f32 3.0, %v1398_v36  ;;  %v1308_v47 = vpop.permute.xlu1 %1307  ;;  %v1631_v61 = vmul.f32 %v1522_v37, %v1522_v37 }
 0x1ae   : > { %v1525_v49 = vmul.f32 0.16666667, %v1493_v41  ;;  %v1399_v51 = vsel %vm1393_vm0, %v4605_v44, %v1308_v47 }
 0x1af   : > { %v1523_v53 = vmul.f32 0.16666667, %v1491_v43  ;;  %v1462_v55 = vmax.f32 %v1430_v45, 0.0  ;;  %v1431_v57 = vadd.f32 3.0, %v1399_v51  ;;  %v1310_v59 = vpop.permute.xlu0 %1309 }
 0x1b0   : > { %1561 = vst [vmem:[%s4689_s14 + $0x18] sm:$0xff] %v1525_v49  ;;  %v1400_v63 = vsel %vm1393_vm0, %v4598_v38, %v1310_v59  ;;  %v1634_v26 = vmul.f32 %v1525_v49, %v1525_v49 }
 0x1b1   : > { %1559 = vst [vmem:[%s4689_s14 + $0x8] sm:$0xff] %v1523_v53  ;;  %v1591_v1 = vadd.f32 %v1523_v53, %v1522_v37  ;;  %v1632_v40 = vmul.f32 %v1523_v53, %v1523_v53  ;;  %v1494_v3 = vmin.f32 %v1462_v55, 6.0  ;;  %v1463_v17 = vmax.f32 %v1431_v57, 0.0  ;;  %v1312_v18 = vpop.permute.xlu1 %1311 }
 0x1b2   : > { %v1432_v20 = vadd.f32 3.0, %v1400_v63  ;;  %v1401_v44 = vsel %vm1393_vm0, %v4603_v42, %v1312_v18 }
 0x1b3   : > { %v1592_v21 = vadd.f32 %v1591_v1, %v1524_v33  ;;  %v1663_v22 = vadd.f32 %v1632_v40, %v1631_v61  ;;  %v1526_v23 = vmul.f32 0.16666667, %v1494_v3  ;;  %v1495_v24 = vmin.f32 %v1463_v17, 6.0  ;;  %v1314_v25 = vpop.permute.xlu0 %1313 }
 0x1b4   : > { %v1464_v38 = vmax.f32 %v1432_v20, 0.0  ;;  %v1433_v27 = vadd.f32 3.0, %v1401_v44  ;;  %v1402_v28 = vsel %vm1393_vm0, %v4612_v48, %v1314_v25 }
 0x1b5   : > { %v1664_v29 = vadd.f32 %v1663_v22, %v1633_v19  ;;  %1562 = vst [vmem:[%s4689_s14 + $0x20] sm:$0xff] %v1526_v23  ;;  %v1593_v31 = vadd.f32 %v1592_v21, %v1525_v49  ;;  %v1635_v30 = vmul.f32 %v1526_v23, %v1526_v23  ;;  %v1527_v32 = vmul.f32 0.16666667, %v1495_v24  ;;  %v1316_v35 = vpop.permute.xlu1 %1315 }
 0x1b6   : > { %v1496_v37 = vmin.f32 %v1464_v38, 6.0  ;;  %v1465_v42 = vmax.f32 %v1433_v27, 0.0  ;;  %v1434_v33 = vadd.f32 3.0, %v1402_v28  ;;  %v1403_v39 = vsel %vm1393_vm0, %v4617_v52, %v1316_v35 }
 0x1b7   : > { %v1594_v34 = vadd.f32 %v1593_v31, %v1526_v23  ;;  %v1665_v41 = vadd.f32 %v1664_v29, %v1634_v26  ;;  %1563 = vst [vmem:[%s4689_s14 + $0x28] sm:$0xff] %v1527_v32  ;;  %v1636_v36 = vmul.f32 %v1527_v32, %v1527_v32  ;;  %v1435_v43 = vadd.f32 3.0, %v1403_v39  ;;  %v1318_v45 = vpop.permute.xlu0 %1317 }
 0x1b8   : > { %v1528_v48 = vmul.f32 0.16666667, %v1496_v37  ;;  %v1497_v47 = vmin.f32 %v1465_v42, 6.0  ;;  %v1466_v51 = vmax.f32 %v1434_v33, 0.0  ;;  %v1404_v49 = vsel %vm1393_vm0, %v4610_v46, %v1318_v45 }
 0x1b9   : > { %v1666_v53 = vadd.f32 %v1665_v41, %v1635_v30  ;;  %v1595_v55 = vadd.f32 %v1594_v34, %v1527_v32  ;;  %v1467_v57 = vmax.f32 %v1435_v43, 0.0  ;;  %v1436_v59 = vadd.f32 3.0, %v1404_v49  ;;  %v1320_v61 = vpop.permute.xlu1 %1319 }
 0x1ba   : > { %1564 = vst [vmem:[%s4689_s14 + $0x30] sm:$0xff] %v1528_v48  ;;  %v1637_v52 = vmul.f32 %v1528_v48, %v1528_v48  ;;  %v1529_v63 = vmul.f32 0.16666667, %v1497_v47  ;;  %v1498_v1 = vmin.f32 %v1466_v51, 6.0  ;;  %v1405_v40 = vsel %vm1393_vm0, %v4615_v50, %v1320_v61 }
 0x1bb   : > { %v1667_v3 = vadd.f32 %v1666_v53, %v1636_v36  ;;  %v1596_v17 = vadd.f32 %v1595_v55, %v1528_v48  ;;  %v1499_v18 = vmin.f32 %v1467_v57, 6.0  ;;  %v1468_v19 = vmax.f32 %v1436_v59, 0.0  ;;  %v1322_v20 = vpop.permute.xlu0 %1321 }
 0x1bc   : > { %1565 = vst [vmem:[%s4689_s14 + $0x38] sm:$0xff] %v1529_v63  ;;  %v1638_v46 = vmul.f32 %v1529_v63, %v1529_v63  ;;  %v1530_v44 = vmul.f32 0.16666667, %v1498_v1  ;;  %v1437_v21 = vadd.f32 3.0, %v1405_v40  ;;  %v1406_v22 = vsel %vm1393_vm0, %v4624_v56, %v1322_v20 }
 0x1bd   : > { %v1668_v23 = vadd.f32 %v1667_v3, %v1637_v52  ;;  %v1597_v24 = vadd.f32 %v1596_v17, %v1529_v63  ;;  %v1531_v25 = vmul.f32 0.16666667, %v1499_v18  ;;  %v1500_v26 = vmin.f32 %v1468_v19, 6.0  ;;  %v1324_v38 = vpop.permute.xlu1 %1323 }
 0x1be   : > { %1566 = vst [vmem:[%s4689_s14 + $0x40] sm:$0xff] %v1530_v44  ;;  %v1639_v50 = vmul.f32 %v1530_v44, %v1530_v44  ;;  %v1469_v27 = vmax.f32 %v1437_v21, 0.0  ;;  %v1438_v28 = vadd.f32 3.0, %v1406_v22  ;;  %v1407_v29 = vsel %vm1393_vm0, %v4629_v60, %v1324_v38 }
 0x1bf   : > { %v1669_v31 = vadd.f32 %v1668_v23, %v1638_v46  ;;  %v1598_v30 = vadd.f32 %v1597_v24, %v1530_v44  ;;  %1567 = vst [vmem:[%s4689_s14 + $0x48] sm:$0xff] %v1531_v25  ;;  %v1640_v32 = vmul.f32 %v1531_v25, %v1531_v25  ;;  %v1532_v35 = vmul.f32 0.16666667, %v1500_v26  ;;  %v1326_v37 = vpop.permute.xlu0 %1325 }
 0x1c0   : > { %v1501_v56 = vmin.f32 %v1469_v27, 6.0  ;;  %v1470_v42 = vmax.f32 %v1438_v28, 0.0  ;;  %v1439_v33 = vadd.f32 3.0, %v1407_v29  ;;  %v1408_v39 = vsel %vm1393_vm0, %v4622_v54, %v1326_v37 }
 0x1c1   : > { %v1670_v34 = vadd.f32 %v1669_v31, %v1639_v50  ;;  %v1599_v41 = vadd.f32 %v1598_v30, %v1531_v25  ;;  %1568 = vst [vmem:[%s4689_s14 + $0x50] sm:$0xff] %v1532_v35  ;;  %v1641_v36 = vmul.f32 %v1532_v35, %v1532_v35  ;;  %v1440_v43 = vadd.f32 3.0, %v1408_v39  ;;  %v1328_v45 = vpop.permute.xlu1 %1327 }
 0x1c2   : > { %v1533_v60 = vmul.f32 0.16666667, %v1501_v56  ;;  %v1502_v48 = vmin.f32 %v1470_v42, 6.0  ;;  %v1471_v47 = vmax.f32 %v1439_v33, 0.0  ;;  %v1409_v51 = vsel %vm1393_vm0, %v4627_v58, %v1328_v45 }
 0x1c3   : > { %v1671_v49 = vadd.f32 %v1670_v34, %v1640_v32  ;;  %v1600_v53 = vadd.f32 %v1599_v41, %v1532_v35  ;;  %v1472_v55 = vmax.f32 %v1440_v43, 0.0  ;;  %v1441_v57 = vadd.f32 3.0, %v1409_v51  ;;  %v1330_v59 = vpop.permute.xlu0 %1329 }
 0x1c4   : > { %1569 = vst [vmem:[%s4689_s14 + $0x58] sm:$0xff] %v1533_v60  ;;  %v1642_v54 = vmul.f32 %v1533_v60, %v1533_v60  ;;  %v1534_v61 = vmul.f32 0.16666667, %v1502_v48  ;;  %v1503_v52 = vmin.f32 %v1471_v47, 6.0  ;;  %v1410_v63 = vsel %vm1393_vm0, %v4636_v0, %v1330_v59 }
 0x1c5   : > { %v1672_v1 = vadd.f32 %v1671_v49, %v1641_v36  ;;  %v1601_v40 = vadd.f32 %v1600_v53, %v1533_v60  ;;  %v1504_v3 = vmin.f32 %v1472_v55, 6.0  ;;  %v1473_v17 = vmax.f32 %v1441_v57, 0.0  ;;  %v1332_v18 = vpop.permute.xlu1 %1331 }
 0x1c6   : > { %1570 = vst [vmem:[%s4689_s14 + $0x60] sm:$0xff] %v1534_v61  ;;  %v1643_v58 = vmul.f32 %v1534_v61, %v1534_v61  ;;  %v1535_v19 = vmul.f32 0.16666667, %v1503_v52  ;;  %v1442_v20 = vadd.f32 3.0, %v1410_v63  ;;  %v1411_v46 = vsel %vm1393_vm0, %v4641_v4, %v1332_v18 }
 0x1c7   : > { %v1673_v44 = vadd.f32 %v1672_v1, %v1642_v54  ;;  %v1602_v21 = vadd.f32 %v1601_v40, %v1534_v61  ;;  %v1536_v22 = vmul.f32 0.16666667, %v1504_v3  ;;  %v1505_v23 = vmin.f32 %v1473_v17, 6.0  ;;  %v1334_v24 = vpop.permute.xlu0 %1333 }
 0x1c8   : > { %1571 = vst [vmem:[%s4689_s14 + $0x68] sm:$0xff] %v1535_v19  ;;  %v1644_v0 = vmul.f32 %v1535_v19, %v1535_v19  ;;  %v1474_v25 = vmax.f32 %v1442_v20, 0.0  ;;  %v1443_v26 = vadd.f32 3.0, %v1411_v46  ;;  %v1412_v38 = vsel %vm1393_vm0, %v4634_v62, %v1334_v24 }
 0x1c9   : > { %v1674_v50 = vadd.f32 %v1673_v44, %v1643_v58  ;;  %v1603_v27 = vadd.f32 %v1602_v21, %v1535_v19  ;;  %1572 = vst [vmem:[%s4689_s14 + $0x70] sm:$0xff] %v1536_v22  ;;  %v1645_v28 = vmul.f32 %v1536_v22, %v1536_v22  ;;  %v1537_v29 = vmul.f32 0.16666667, %v1505_v23  ;;  %v1336_v31 = vpop.permute.xlu1 %1335 }
 0x1ca   : > { %v1506_v4 = vmin.f32 %v1474_v25, 6.0  ;;  %v1475_v30 = vmax.f32 %v1443_v26, 0.0  ;;  %v1444_v32 = vadd.f32 3.0, %v1412_v38  ;;  %v1413_v35 = vsel %vm1393_vm0, %v4639_v2, %v1336_v31 }
 0x1cb   : > { %v1675_v37 = vadd.f32 %v1674_v50, %v1644_v0  ;;  %v1604_v56 = vadd.f32 %v1603_v27, %v1536_v22  ;;  %1573 = vst [vmem:[%s4689_s14 + $0x78] sm:$0xff] %v1537_v29  ;;  %v1646_v42 = vmul.f32 %v1537_v29, %v1537_v29  ;;  %v1445_v33 = vadd.f32 3.0, %v1413_v35  ;;  %v1338_v39 = vpop.permute.xlu0 %1337 }
 0x1cc   : > { %v1538_v62 = vmul.f32 0.16666667, %v1506_v4  ;;  %v1507_v34 = vmin.f32 %v1475_v30, 6.0  ;;  %v1476_v41 = vmax.f32 %v1444_v32, 0.0  ;;  %v1414_v36 = vsel %vm1393_vm0, %v4648_v6, %v1338_v39 }
 0x1cd   : > { %v1676_v43 = vadd.f32 %v1675_v37, %v1645_v28  ;;  %v1605_v45 = vadd.f32 %v1604_v56, %v1537_v29  ;;  %v1477_v60 = vmax.f32 %v1445_v33, 0.0  ;;  %v1446_v48 = vadd.f32 3.0, %v1414_v36  ;;  %v1340_v47 = vpop.permute.xlu1 %1339 }
 0x1ce   : > { %1574 = vst [vmem:[%s4689_s14 + $0x80] sm:$0xff] %v1538_v62  ;;  %v1647_v2 = vmul.f32 %v1538_v62, %v1538_v62  ;;  %v1539_v51 = vmul.f32 0.16666667, %v1507_v34  ;;  %v1508_v49 = vmin.f32 %v1476_v41, 6.0  ;;  %v1415_v53 = vsel %vm1393_vm0, %v4652_v8, %v1340_v47 }
 0x1cf   : > { %v1677_v55 = vadd.f32 %v1676_v43, %v1646_v42  ;;  %v1606_v57 = vadd.f32 %v1605_v45, %v1538_v62  ;;  %v1509_v59 = vmin.f32 %v1477_v60, 6.0  ;;  %v1478_v54 = vmax.f32 %v1446_v48, 0.0  ;;  %v1342_v61 = vpop.permute.xlu0 %1341 }
 0x1d0   : > { %1575 = vst [vmem:[%s4689_s14 + $0x88] sm:$0xff] %v1539_v51  ;;  %v1648_v6 = vmul.f32 %v1539_v51, %v1539_v51  ;;  %v1540_v52 = vmul.f32 0.16666667, %v1508_v49  ;;  %v1447_v63 = vadd.f32 3.0, %v1415_v53  ;;  %v1416_v1 = vsel %vm1393_vm0, %v4646_v5, %v1342_v61 }
 0x1d1   : > { %v1678_v40 = vadd.f32 %v1677_v55, %v1647_v2  ;;  %v1607_v3 = vadd.f32 %v1606_v57, %v1539_v51  ;;  %v1541_v17 = vmul.f32 0.16666667, %v1509_v59  ;;  %v1510_v18 = vmin.f32 %v1478_v54, 6.0  ;;  %v1344_v58 = vpop.permute.xlu1 %1343 }
 0x1d2   : > { %1576 = vst [vmem:[%s4689_s14 + $0x90] sm:$0xff] %v1540_v52  ;;  %v1649_v8 = vmul.f32 %v1540_v52, %v1540_v52  ;;  %v1479_v19 = vmax.f32 %v1447_v63, 0.0  ;;  %v1448_v20 = vadd.f32 3.0, %v1416_v1  ;;  %v1417_v46 = vsel %vm1393_vm0, %v4650_v7, %v1344_v58 }
 0x1d3   : > { %v1679_v44 = vadd.f32 %v1678_v40, %v1648_v6  ;;  %v1608_v21 = vadd.f32 %v1607_v3, %v1540_v52  ;;  %1577 = vst [vmem:[%s4689_s14 + $0x98] sm:$0xff] %v1541_v17  ;;  %v1650_v22 = vmul.f32 %v1541_v17, %v1541_v17  ;;  %v1542_v23 = vmul.f32 0.16666667, %v1510_v18  ;;  %v1346_v24 = vpop.permute.xlu0 %1345 }
 0x1d4   : > { %v1511_v5 = vmin.f32 %v1479_v19, 6.0  ;;  %v1480_v0 = vmax.f32 %v1448_v20, 0.0  ;;  %v1449_v25 = vadd.f32 3.0, %v1417_v46  ;;  %v1418_v26 = vsel %vm1393_vm0, %v4656_v10, %v1346_v24 }
 0x1d5   : > { %v1680_v38 = vadd.f32 %v1679_v44, %v1649_v8  ;;  %v1609_v50 = vadd.f32 %v1608_v21, %v1541_v17  ;;  %1578 = vst [vmem:[%s4689_s14 + $0xa0] sm:$0xff] %v1542_v23  ;;  %v1651_v27 = vmul.f32 %v1542_v23, %v1542_v23  ;;  %v1450_v28 = vadd.f32 3.0, %v1418_v26  ;;  %v1348_v29 = vpop.permute.xlu1 %1347 }
 0x1d6   : > { %v1543_v7 = vmul.f32 0.16666667, %v1511_v5  ;;  %v1512_v31 = vmin.f32 %v1480_v0, 6.0  ;;  %v1481_v4 = vmax.f32 %v1449_v25, 0.0  ;;  %v1419_v30 = vsel %vm1393_vm0, %v4660_v12, %v1348_v29 }
 0x1d7   : > { %v1681_v32 = vadd.f32 %v1680_v38, %v1650_v22  ;;  %v1610_v35 = vadd.f32 %v1609_v50, %v1542_v23  ;;  %v1482_v37 = vmax.f32 %v1450_v28, 0.0  ;;  %v1451_v56 = vadd.f32 3.0, %v1419_v30  ;;  %v1350_v42 = vpop.permute.xlu0 %1349 }
 0x1d8   : > { %1579 = vst [vmem:[%s4689_s14 + $0xa8] sm:$0xff] %v1543_v7  ;;  %v1652_v10 = vmul.f32 %v1543_v7, %v1543_v7  ;;  %v1544_v33 = vmul.f32 0.16666667, %v1512_v31  ;;  %v1513_v39 = vmin.f32 %v1481_v4, 6.0  ;;  %v1420_v62 = vsel %vm1393_vm0, %v4654_v9, %v1350_v42 }
 0x1d9   : > { %v1682_v34 = vadd.f32 %v1681_v32, %v1651_v27  ;;  %v1611_v41 = vadd.f32 %v1610_v35, %v1543_v7  ;;  %v1514_v36 = vmin.f32 %v1482_v37, 6.0  ;;  %v1483_v43 = vmax.f32 %v1451_v56, 0.0  ;;  %v1352_v45 = vpop.permute.xlu1 %1351 }
 0x1da   : > { %1580 = vst [vmem:[%s4689_s14 + $0xb0] sm:$0xff] %v1544_v33  ;;  %v1653_v12 = vmul.f32 %v1544_v33, %v1544_v33  ;;  %v1545_v60 = vmul.f32 0.16666667, %v1513_v39  ;;  %v1452_v48 = vadd.f32 3.0, %v1420_v62  ;;  %v1421_v47 = vsel %vm1393_vm0, %v4658_v11, %v1352_v45 }
 0x1db   : > { %v1683_v2 = vadd.f32 %v1682_v34, %v1652_v10  ;;  %v1612_v51 = vadd.f32 %v1611_v41, %v1544_v33  ;;  %v1546_v49 = vmul.f32 0.16666667, %v1514_v36  ;;  %v1515_v53 = vmin.f32 %v1483_v43, 6.0  ;;  %v1354_v55 = vpop.permute.xlu0 %1353 }
 0x1dc   : > { %1581 = vst [vmem:[%s4689_s14 + $0xb8] sm:$0xff] %v1545_v60  ;;  %v1654_v9 = vmul.f32 %v1545_v60, %v1545_v60  ;;  %v1484_v57 = vmax.f32 %v1452_v48, 0.0  ;;  %v1453_v59 = vadd.f32 3.0, %v1421_v47  ;;  %v1422_v54 = vsel %vm1393_vm0, %v4666_v14, %v1354_v55 }
 0x1dd   : > { %v1684_v61 = vadd.f32 %v1683_v2, %v1653_v12  ;;  %v1613_v6 = vadd.f32 %v1612_v51, %v1545_v60  ;;  %1582 = vst [vmem:[%s4689_s14 + $0xc0] sm:$0xff] %v1546_v49  ;;  %v1655_v52 = vmul.f32 %v1546_v49, %v1546_v49  ;;  %v1547_v63 = vmul.f32 0.16666667, %v1515_v53  ;;  %v1356_v1 = vpop.permute.xlu1 %1355 }
 0x1de   : > { %v1516_v11 = vmin.f32 %v1484_v57, 6.0  ;;  %v1485_v40 = vmax.f32 %v1453_v59, 0.0  ;;  %v1454_v3 = vadd.f32 3.0, %v1422_v54  ;;  %v1423_v17 = vsel %vm1393_vm0, %v4674_v16, %v1356_v1 }
 0x1df   : > { %v1685_v18 = vadd.f32 %v1684_v61, %v1654_v9  ;;  %v1614_v58 = vadd.f32 %v1613_v6, %v1546_v49  ;;  %1583 = vst [vmem:[%s4689_s14 + $0xc8] sm:$0xff] %v1547_v63  ;;  %v1656_v8 = vmul.f32 %v1547_v63, %v1547_v63  ;;  %v1455_v19 = vadd.f32 3.0, %v1423_v17  ;;  %v1358_v20 = vpop.permute.xlu0 %1357  ;;  %v1590_v61 = vld [vmem:[#allocation2] sm:$0x1] }
 0x1e0   : > { %v1548_v14 = vmul.f32 0.16666667, %v1516_v11  ;;  %v1517_v46 = vmin.f32 %v1485_v40, 6.0  ;;  %v1486_v44 = vmax.f32 %v1454_v3, 0.0  ;;  %v1424_v21 = vsel %vm1393_vm0, %v4664_v13, %v1358_v20 }
 0x1e1   : > { %v1686_v22 = vadd.f32 %v1685_v18, %v1655_v52  ;;  %v1615_v23 = vadd.f32 %v1614_v58, %v1547_v63  ;;  %v1487_v24 = vmax.f32 %v1455_v19, 0.0  ;;  %v1456_v5 = vadd.f32 3.0, %v1424_v21  ;;  %v1360_v0 = vpop.permute.xlu1 %1359  ;;  %v1630_v63 = vld [vmem:[#allocation3] sm:$0x1] }
 0x1e2   : > { %1584 = vst [vmem:[%s4689_s14 + $0xd0] sm:$0xff] %v1548_v14  ;;  %v1657_v16 = vmul.f32 %v1548_v14, %v1548_v14  ;;  %v1549_v25 = vmul.f32 0.16666667, %v1517_v46  ;;  %v1518_v26 = vmin.f32 %v1486_v44, 6.0  ;;  %v1425_v38 = vsel %vm1393_vm0, %v4672_v15, %v1360_v0 }
 0x1e3   : > { %v1687_v50 = vadd.f32 %v1686_v22, %v1656_v8  ;;  %v1616_v27 = vadd.f32 %v1615_v23, %v1548_v14  ;;  %v1519_v28 = vmin.f32 %v1487_v24, 6.0  ;;  %v1488_v29 = vmax.f32 %v1456_v5, 0.0 }
 0x1e4   : > { %1585 = vst [vmem:[%s4689_s14 + $0xd8] sm:$0xff] %v1549_v25  ;;  %v1658_v13 = vmul.f32 %v1549_v25, %v1549_v25  ;;  %v1550_v7 = vmul.f32 0.16666667, %v1518_v26  ;;  %v1457_v31 = vadd.f32 3.0, %v1425_v38 }
 0x1e5   : > { %v1688_v4 = vadd.f32 %v1687_v50, %v1657_v16  ;;  %v1617_v30 = vadd.f32 %v1616_v27, %v1549_v25  ;;  %v1551_v32 = vmul.f32 0.16666667, %v1519_v28  ;;  %v1520_v35 = vmin.f32 %v1488_v29, 6.0 }
 0x1e6   : > { %1586 = vst [vmem:[%s4689_s14 + $0xe0] sm:$0xff] %v1550_v7  ;;  %v1659_v37 = vmul.f32 %v1550_v7, %v1550_v7  ;;  %v1489_v56 = vmax.f32 %v1457_v31, 0.0 }
 0x1e7   : > { %v1689_v42 = vadd.f32 %v1688_v4, %v1658_v13  ;;  %v1618_v15 = vadd.f32 %v1617_v30, %v1550_v7  ;;  %1587 = vst [vmem:[%s4689_s14 + $0xe8] sm:$0xff] %v1551_v32  ;;  %v1552_v10 = vmul.f32 0.16666667, %v1520_v35  ;;  %v1660_v34 = vmul.f32 %v1551_v32, %v1551_v32 }
 0x1e8   : > { %v1521_v33 = vmin.f32 %v1489_v56, 6.0 }
 0x1e9   : > { %v1690_v39 = vadd.f32 %v1689_v42, %v1659_v37  ;;  %v1619_v62 = vadd.f32 %v1618_v15, %v1551_v32  ;;  %1588 = vst [vmem:[%s4689_s14 + $0xf0] sm:$0xff] %v1552_v10  ;;  %v1661_v45 = vmul.f32 %v1552_v10, %v1552_v10 }
 0x1ea   : > { %v1553_v41 = vmul.f32 0.16666667, %v1521_v33 }
 0x1eb   : > { %v1691_v36 = vadd.f32 %v1690_v39, %v1660_v34  ;;  %v1620_v43 = vadd.f32 %v1619_v62, %v1552_v10 }
 0x1ec   : > { %1589 = vst [vmem:[%s4689_s14 + $0xf8] sm:$0xff] %v1553_v41  ;;  %v1662_v48 = vmul.f32 %v1553_v41, %v1553_v41 }
 0x1ed   : > { %v1692_v12 = vadd.f32 %v1691_v36, %v1661_v45  ;;  %v1621_v60 = vadd.f32 %v1620_v43, %v1553_v41 }
 0x1ef   : > { %v1622_v47 = vrot.slane %v1621_v60, 4  ;;  %v1693_v2 = vadd.f32 %v1692_v12, %v1662_v48 }
 0x1f1   : > { %v1623_v51 = vadd.f32 %v1622_v47, %v1621_v60  ;;  %v1694_v49 = vrot.slane %v1693_v2, 4 }
 0x1f3   : > { %v1624_v53 = vrot.slane %v1623_v51, 2  ;;  %v1695_v55 = vadd.f32 %v1694_v49, %v1693_v2 }
 0x1f5   : > { %v1625_v9 = vadd.f32 %v1624_v53, %v1623_v51  ;;  %v1696_v57 = vrot.slane %v1695_v55, 2 }
 0x1f7   : > { %v1626_v59 = vrot.slane %v1625_v9, 1  ;;  %v1697_v54 = vadd.f32 %v1696_v57, %v1695_v55 }
 0x1f9   : > { %v1627_v6 = vadd.f32 %v1626_v59, %v1625_v9  ;;  %v1698_v52 = vrot.slane %v1697_v54, 1  ;;  %1707 = sbr.rel (%p4668_p2) target bundleno = 1198 (0x4ae), region = 89 }
 0x1fb   : > { %v1628_v1 = vadd.f32 %v1627_v6, %v1590_v61  ;;  %v1699_v11 = vadd.f32 %v1698_v52, %v1697_v54 }
 0x1fd   : > { %1629 = vst [vmem:[#allocation2] sm:$0x1] %v1628_v1  ;;  %v1700_v40 = vadd.f32 %v1699_v11, %v1630_v63 }
 0x1ff   : > { %1701 = vst [vmem:[#allocation3] sm:$0x1] %v1700_v40 }
 0x200   : > { %s4351_s15 = smov 64   ;;  %v4352_v18 = vmov 0.0|0.0   ;;  %v1722_v58 = vld [vmem:[%s6421_s2] sm:$0xff]  ;;  %v1723_v8 = vld [vmem:[%s6421_s2 + $0x8] sm:$0xff]  ;;  %v1724_v19 = vld [vmem:[%s6421_s2 + $0x10] sm:$0xff]  ;;  %vm4353_vm1 = vmmov 0  }
 0x201   : > { %4017 = vmatprep.subr.bf16.mxu0 %v4352_v18  ;;  %v1734_v20 = vand.u32 4294901760, %v1722_v58  ;;  %v1737_v14 = vand.u32 4294901760, %v1723_v8  ;;  %4089 = vmatprep.subr.bf16.mxu1 %v4352_v18  ;;  %v1725_v46 = vld [vmem:[%s6421_s2 + $0x18] sm:$0xff]  ;;  %v1740_v44 = vand.u32 4294901760, %v1724_v19  ;;  %v1726_v21 = vld [vmem:[%s6421_s2 + $0x20] sm:$0xff]  ;;  %v1727_v22 = vld [vmem:[%s6421_s2 + $0x28] sm:$0xff] }
 0x202   : > { %v4354_v23 = vmov 0.0   ;;  %v1743_v24 = vand.u32 4294901760, %v1725_v46  ;;  %v1746_v5 = vand.u32 4294901760, %v1726_v21  ;;  %v1749_v0 = vand.u32 4294901760, %v1727_v22  ;;  %v1728_v16 = vld [vmem:[%s6421_s2 + $0x30] sm:$0xff]  ;;  %v1729_v25 = vld [vmem:[%s6421_s2 + $0x38] sm:$0xff] }
 0x203   : > { %3805 = vmatprep.mubr.msk.f32.mxu0 %vm4353_vm1, %v4354_v23  ;;  %3919 = vmatprep.mubr.msk.f32.mxu1 %vm4353_vm1, %v4354_v23  ;;  %v4817_v26 = vpack.c.bf16 %v1737_v14, %v1734_v20  ;;  %v1752_v38 = vand.u32 4294901760, %v1728_v16  ;;  %v1818_v50 = vsub.f32 %v1722_v58, %v1734_v20  ;;  %v1755_v28 = vand.u32 4294901760, %v1729_v25 }
 0x204   : > { %v4781_v3 = vld [vmem:[#allocation2] sm:$0x1]  ;;  %v4821_v27 = vpack.c.bf16 %v1743_v24, %v1740_v44  ;;  %v1825_v29 = vsub.f32 %v1723_v8, %v1737_v14  ;;  %v1832_v13 = vsub.f32 %v1724_v19, %v1740_v44  ;;  %v4825_v7 = vpack.c.bf16 %v1749_v0, %v1746_v5 }
 0x205   : > { %1711 = vrot.lane.b32.xlu0 %v4781_v3, %s4351_s15  ;;  %4019 = vmatpush3.bf16.msra.mxu0 %v4817_v26  ;;  %v1819_v31 = vand.u32 4294901760, %v1818_v50  ;;  %v1839_v4 = vsub.f32 %v1725_v46, %v1743_v24  ;;  %v1846_v30 = vsub.f32 %v1726_v21, %v1746_v5  ;;  %v1853_v37 = vsub.f32 %v1727_v22, %v1749_v0 }
 0x206   : > { %v4783_v17 = vld [vmem:[#allocation3] sm:$0x1]  ;;  %4091 = vmatpush3.bf16.msra.mxu1 %v4817_v26  ;;  %4020 = vmatprep.subr.bf16.mxu0 %v4352_v18  ;;  %v1826_v32 = vand.u32 4294901760, %v1825_v29  ;;  %v1833_v35 = vand.u32 4294901760, %v1832_v13  ;;  %v1860_v56 = vsub.f32 %v1728_v16, %v1752_v38  ;;  %v1867_v33 = vsub.f32 %v1729_v25, %v1755_v28 }
 0x207   : > { %4092 = vmatprep.subr.bf16.mxu1 %v4352_v18  ;;  %v1820_v42 = vsub.f32 %v1818_v50, %v1819_v31  ;;  %v1840_v15 = vand.u32 4294901760, %v1839_v4  ;;  %v1847_v10 = vand.u32 4294901760, %v1846_v30  ;;  %v1854_v34 = vand.u32 4294901760, %v1853_v37 }
 0x208   : > { %v1827_v39 = vsub.f32 %v1825_v29, %v1826_v32  ;;  %v1834_v62 = vsub.f32 %v1832_v13, %v1833_v35  ;;  %v1861_v41 = vand.u32 4294901760, %v1860_v56  ;;  %v1868_v12 = vand.u32 4294901760, %v1867_v33 }
 0x209   : > { %1716 = vrot.lane.b32.xlu0 %v4783_v17, %s4351_s15  ;;  %4022 = vmatpush3.bf16.msra.mxu0 %v4821_v27  ;;  %v1821_v36 = vand.u32 4294901760, %v1820_v42  ;;  %v1841_v43 = vsub.f32 %v1839_v4, %v1840_v15  ;;  %v1848_v45 = vsub.f32 %v1846_v30, %v1847_v10  ;;  %v1855_v47 = vsub.f32 %v1853_v37, %v1854_v34 }
 0x20a   : > { %4094 = vmatpush3.bf16.msra.mxu1 %v4821_v27  ;;  %4023 = vmatprep.subr.bf16.mxu0 %v4352_v18  ;;  %v1828_v60 = vand.u32 4294901760, %v1827_v39  ;;  %v1835_v48 = vand.u32 4294901760, %v1834_v62  ;;  %v1862_v2 = vsub.f32 %v1860_v56, %v1861_v41  ;;  %v1869_v53 = vsub.f32 %v1867_v33, %v1868_v12 }
 0x20b   : > { %4095 = vmatprep.subr.bf16.mxu1 %v4352_v18  ;;  %v1842_v51 = vand.u32 4294901760, %v1841_v43  ;;  %v1849_v49 = vand.u32 4294901760, %v1848_v45  ;;  %v1856_v9 = vand.u32 4294901760, %v1855_v47  ;;  %v4834_v59 = vpack.c.bf16 %v1755_v28, %v1752_v38  ;;  %v2836_v43 = vld [vmem:[%s6424_s5] sm:$0xff]  ;;  %v2837_v45 = vld [vmem:[%s6424_s5 + $0x8] sm:$0xff] }
 0x20c   : > { %v4030_v55 = vpack.c.bf16 %v1828_v60, %v1821_v36  ;;  %v1863_v57 = vand.u32 4294901760, %v1862_v2  ;;  %v1870_v61 = vand.u32 4294901760, %v1869_v53  ;;  %v4042_v63 = vpack.c.bf16 %v1825_v29, %v1818_v50  ;;  %v2838_v60 = vld [vmem:[%s6424_s5 + $0x10] sm:$0xff]  ;;  %v2840_v47 = vld [vmem:[%s6424_s5 + $0x20] sm:$0xff]  ;;  %v2841_v2 = vld [vmem:[%s6424_s5 + $0x28] sm:$0xff] }
 0x20d   : > { %4025 = vmatpush3.bf16.msra.mxu0 %v4825_v7  ;;  %v4033_v54 = vpack.c.bf16 %v1842_v51, %v1835_v48  ;;  %v4036_v6 = vpack.c.bf16 %v1856_v9, %v1849_v49  ;;  %v4045_v1 = vpack.c.bf16 %v1839_v4, %v1832_v13  ;;  %v4048_v11 = vpack.c.bf16 %v1853_v37, %v1846_v30  ;;  %v2839_v48 = vld [vmem:[%s6424_s5 + $0x18] sm:$0xff]  ;;  %v2842_v49 = vld [vmem:[%s6424_s5 + $0x30] sm:$0xff]  ;;  %v2845_v9 = vld [vmem:[%s6424_s5 + $0x48] sm:$0xff] }
 0x20e   : > { %4097 = vmatpush3.bf16.msra.mxu1 %v4825_v7  ;;  %4026 = vmatprep.subr.bf16.mxu0 %v4352_v18  ;;  %v4039_v52 = vpack.c.bf16 %v1870_v61, %v1863_v57  ;;  %v4051_v40 = vpack.c.bf16 %v1867_v33, %v1860_v56  ;;  %v4843_v58 = vpack.c.bf16 %v1826_v32, %v1819_v31  ;;  %v2828_v42 = vlaneseq  ;;  %v2819_v33 = vld [vmem:[%s6423_s4] sm:$0x1]  ;;  %v2843_v53 = vld [vmem:[%s6424_s5 + $0x38] sm:$0xff]  ;;  %v2846_v57 = vld [vmem:[%s6424_s5 + $0x50] sm:$0xff] }
 0x20f   : > { %4098 = vmatprep.subr.bf16.mxu1 %v4352_v18  ;;  %v4845_v8 = vpack.c.bf16 %v1840_v15, %v1833_v35  ;;  %v4847_v19 = vpack.c.bf16 %v1854_v34, %v1847_v10  ;;  %v4849_v20 = vpack.c.bf16 %v1868_v12, %v1861_v41  ;;  %v2849_v61 = vld [vmem:[%s6424_s5 + $0x68] sm:$0xff] }
 0x211   : > { %4028 = vmatpush3.bf16.msra.mxu0 %v4834_v59 }
 0x212   : > { %4100 = vmatpush3.bf16.msra.mxu1 %v4834_v59  ;;  %4029 = vmatprep.subr.bf16.mxu0 %v4352_v18 }
 0x213   : > { %4101 = vmatprep.subr.bf16.mxu1 %v4352_v18 }
 0x277   : > { %v1712_v14 = vpop.permute.xlu0 %1711 }
 0x278   : > { %v1714_v46 = vadd.f32 %v1712_v14, %v4781_v3  ;;  %v2858_v14 = vld [vmem:[%s6424_s5 + $0xb0] sm:$0xff] }
 0x27a   : > { %v3531_v44 = vadd.f32 -479.5, %v1714_v46  ;;  %v2859_v46 = vld [vmem:[%s6424_s5 + $0xb8] sm:$0xff] }
 0x27b   : > { %v1717_v21 = vpop.permute.xlu0 %1716 }
 0x27c   : > { %v1731_v22 = vsel %vm1393_vm0, %v3531_v44, 0  ;;  %v1719_v24 = vadd.f32 %v1717_v21, %v4783_v17  ;;  %v2860_v44 = vld [vmem:[%s6424_s5 + $0xc0] sm:$0xff]  ;;  %v2861_v21 = vld [vmem:[%s6424_s5 + $0xc8] sm:$0xff] }
 0x27d   : > { %v4854_v5 = vand.u32 4294901760, %v1731_v22 }
 0x27e   : > { %v3532_v0 = vadd.f32 -239.75, %v1719_v24 }
 0x27f   : > { %v4857_v16 = vsub.f32 %v1731_v22, %v4854_v5 }
 0x280   : > { %v2271_v25 = vsel %vm1393_vm0, %v3532_v0, 0 }
 0x281   : > { %v4860_v38 = vand.u32 4294901760, %v2271_v25  ;;  %v1808_v50 = vand.u32 4294901760, %v4857_v16 }
 0x283   : > { %v4864_v3 = vsub.f32 %v2271_v25, %v4860_v38  ;;  %v1809_v28 = vsub.f32 %v4857_v16, %v1808_v50  ;;  %v2863_v25 = vld [vmem:[%s6424_s5 + $0xd8] sm:$0xff] }
 0x285   : > { %v1810_v17 = vand.u32 4294901760, %v1809_v28  ;;  %v2348_v29 = vand.u32 4294901760, %v4864_v3 }
 0x287   : > { %3806 = vmatmul.mubr.f32.vlgmr.msra.gmra.mrb[0].mxu0 %v1810_v17  ;;  %v2349_v13 = vsub.f32 %v4864_v3, %v2348_v29 }
 0x288   : > { %4031 = vmatpush3.bf16.msra.mxu0 %v4030_v55  ;;  %3824 = vmatprep.mubr.msk.f32.mxu0 %vm4353_vm1, %v4354_v23 }
 0x289   : > { %4032 = vmatprep.subr.bf16.mxu0 %v4352_v18  ;;  %v2350_v31 = vand.u32 4294901760, %v2349_v13  ;;  %v2866_v13 = vld [vmem:[%s6424_s5 + $0xf0] sm:$0xff] }
 0x28b   : > { %3920 = vmatmul.mubr.f32.vlgmr.msra.gmra.mrb[0].mxu1 %v2350_v31  ;;  %v2867_v31 = vld [vmem:[%s6424_s5 + $0xf8] sm:$0xff] }
 0x28c   : > { %4034 = vmatpush3.bf16.msra.mxu0 %v4033_v54  ;;  %4103 = vmatpush3.bf16.msra.mxu1 %v4030_v55  ;;  %v2844_v55 = vld [vmem:[%s6424_s5 + $0x40] sm:$0xff] }
 0x28d   : > { %4035 = vmatprep.subr.bf16.mxu0 %v4352_v18  ;;  %4104 = vmatprep.subr.bf16.mxu1 %v4352_v18 }
 0x28e   : > { %3938 = vmatprep.mubr.msk.f32.mxu1 %vm4353_vm1, %v4354_v23 }
 0x290   : > { %4037 = vmatpush3.bf16.msra.mxu0 %v4036_v6  ;;  %4106 = vmatpush3.bf16.msra.mxu1 %v4033_v54  ;;  %v2848_v54 = vld [vmem:[%s6424_s5 + $0x60] sm:$0xff] }
 0x291   : > { %4038 = vmatprep.subr.bf16.mxu0 %v4352_v18  ;;  %4107 = vmatprep.subr.bf16.mxu1 %v4352_v18 }
 0x294   : > { %4040 = vmatpush3.bf16.msra.mxu0 %v4039_v52  ;;  %4109 = vmatpush3.bf16.msra.mxu1 %v4036_v6  ;;  %v2850_v6 = vld [vmem:[%s6424_s5 + $0x70] sm:$0xff] }
 0x295   : > { %4041 = vmatprep.subr.bf16.mxu0 %v4352_v18  ;;  %4110 = vmatprep.subr.bf16.mxu1 %v4352_v18 }
 0x297   : > { %3825 = vmatmul.mubr.f32.vlgmr.msra.gmra.mrb[0].mxu0 %v4854_v5 }
 0x298   : > { %4043 = vmatpush3.bf16.msra.mxu0 %v4042_v63  ;;  %4112 = vmatpush3.bf16.msra.mxu1 %v4039_v52  ;;  %v2851_v52 = vld [vmem:[%s6424_s5 + $0x78] sm:$0xff] }
 0x299   : > { %4044 = vmatprep.subr.bf16.mxu0 %v4352_v18  ;;  %4113 = vmatprep.subr.bf16.mxu1 %v4352_v18 }
 0x29a   : > { %3843 = vmatprep.mubr.msk.f32.mxu0 %vm4353_vm1, %v4354_v23 }
 0x29b   : > { %3939 = vmatmul.mubr.f32.vlgmr.msra.gmra.mrb[0].mxu1 %v4860_v38 }
 0x29c   : > { %4046 = vmatpush3.bf16.msra.mxu0 %v4045_v1  ;;  %4115 = vmatpush3.bf16.msra.mxu1 %v4042_v63  ;;  %v2852_v63 = vld [vmem:[%s6424_s5 + $0x80] sm:$0xff] }
 0x29d   : > { %4047 = vmatprep.subr.bf16.mxu0 %v4352_v18  ;;  %4116 = vmatprep.subr.bf16.mxu1 %v4352_v18 }
 0x29e   : > { %3957 = vmatprep.mubr.msk.f32.mxu1 %vm4353_vm1, %v4354_v23 }
 0x2a0   : > { %4049 = vmatpush3.bf16.msra.mxu0 %v4048_v11  ;;  %4118 = vmatpush3.bf16.msra.mxu1 %v4045_v1  ;;  %v2853_v1 = vld [vmem:[%s6424_s5 + $0x88] sm:$0xff] }
 0x2a1   : > { %4050 = vmatprep.subr.bf16.mxu0 %v4352_v18  ;;  %4119 = vmatprep.subr.bf16.mxu1 %v4352_v18 }
 0x2a4   : > { %4052 = vmatpush3.bf16.msra.mxu0 %v4051_v40  ;;  %4121 = vmatpush3.bf16.msra.mxu1 %v4048_v11  ;;  %v2854_v11 = vld [vmem:[%s6424_s5 + $0x90] sm:$0xff] }
 0x2a5   : > { %4053 = vmatprep.subr.bf16.mxu0 %v4352_v18  ;;  %4122 = vmatprep.subr.bf16.mxu1 %v4352_v18 }
 0x2a7   : > { %3844 = vmatmul.mubr.f32.vlgmr.msra.gmra.mrb[0].mxu0 %v4857_v16  ;;  %v2862_v16 = vld [vmem:[%s6424_s5 + $0xd0] sm:$0xff] }
 0x2a8   : > { %4055 = vmatpush3.bf16.msra.mxu0 %v4817_v26  ;;  %4124 = vmatpush3.bf16.msra.mxu1 %v4051_v40  ;;  %v2855_v40 = vld [vmem:[%s6424_s5 + $0x98] sm:$0xff] }
 0x2a9   : > { %4056 = vmatprep.subr.bf16.mxu0 %v4352_v18  ;;  %4125 = vmatprep.subr.bf16.mxu1 %v4352_v18 }
 0x2aa   : > { %3862 = vmatprep.mubr.msk.f32.mxu0 %vm4353_vm1, %v4354_v23 }
 0x2ab   : > { %3958 = vmatmul.mubr.f32.vlgmr.msra.gmra.mrb[0].mxu1 %v4864_v3 }
 0x2ac   : > { %4058 = vmatpush3.bf16.msra.mxu0 %v4821_v27  ;;  %4127 = vmatpush3.bf16.msra.mxu1 %v4817_v26 }
 0x2ad   : > { %4059 = vmatprep.subr.bf16.mxu0 %v4352_v18  ;;  %4128 = vmatprep.subr.bf16.mxu1 %v4352_v18 }
 0x2ae   : > { %3976 = vmatprep.mubr.msk.f32.mxu1 %vm4353_vm1, %v4354_v23 }
 0x2b0   : > { %4061 = vmatpush3.bf16.msra.mxu0 %v4825_v7  ;;  %4130 = vmatpush3.bf16.msra.mxu1 %v4821_v27 }
 0x2b1   : > { %4062 = vmatprep.subr.bf16.mxu0 %v4352_v18  ;;  %4131 = vmatprep.subr.bf16.mxu1 %v4352_v18 }
 0x2b4   : > { %4064 = vmatpush3.bf16.msra.mxu0 %v4834_v59  ;;  %4133 = vmatpush3.bf16.msra.mxu1 %v4825_v7 }
 0x2b5   : > { %4065 = vmatprep.subr.bf16.mxu0 %v4352_v18  ;;  %4134 = vmatprep.subr.bf16.mxu1 %v4352_v18 }
 0x2b7   : > { %3863 = vmatmul.mubr.f32.vlgmr.msra.gmra.mrb[0].mxu0 %v1808_v50  ;;  %v2865_v50 = vld [vmem:[%s6424_s5 + $0xe8] sm:$0xff] }
 0x2b8   : > { %4067 = vmatpush3.bf16.msra.mxu0 %v4843_v58  ;;  %4136 = vmatpush3.bf16.msra.mxu1 %v4834_v59 }
 0x2b9   : > { %4068 = vmatprep.subr.bf16.mxu0 %v4352_v18  ;;  %4137 = vmatprep.subr.bf16.mxu1 %v4352_v18 }
 0x2ba   : > { %3881 = vmatprep.mubr.msk.f32.mxu0 %vm4353_vm1, %v4354_v23 }
 0x2bb   : > { %3977 = vmatmul.mubr.f32.vlgmr.msra.gmra.mrb[0].mxu1 %v2348_v29 }
 0x2bc   : > { %4070 = vmatpush3.bf16.msra.mxu0 %v4845_v8  ;;  %4139 = vmatpush3.bf16.msra.mxu1 %v4843_v58  ;;  %v2856_v58 = vld [vmem:[%s6424_s5 + $0xa0] sm:$0xff] }
 0x2bd   : > { %4071 = vmatprep.subr.bf16.mxu0 %v4352_v18  ;;  %4140 = vmatprep.subr.bf16.mxu1 %v4352_v18 }
 0x2be   : > { %3995 = vmatprep.mubr.msk.f32.mxu1 %vm4353_vm1, %v4354_v23 }
 0x2c0   : > { %4073 = vmatpush3.bf16.msra.mxu0 %v4847_v19  ;;  %4142 = vmatpush3.bf16.msra.mxu1 %v4845_v8  ;;  %v2857_v8 = vld [vmem:[%s6424_s5 + $0xa8] sm:$0xff] }
 0x2c1   : > { %4074 = vmatprep.subr.bf16.mxu0 %v4352_v18  ;;  %4143 = vmatprep.subr.bf16.mxu1 %v4352_v18 }
 0x2c4   : > { %4076 = vmatpush3.bf16.msra.mxu0 %v4849_v20  ;;  %4145 = vmatpush3.bf16.msra.mxu1 %v4847_v19 }
 0x2c5   : > { %4077 = vmatprep.subr.bf16.mxu0 %v4352_v18  ;;  %4146 = vmatprep.subr.bf16.mxu1 %v4352_v18 }
 0x2c7   : > { %3882 = vmatmul.mubr.f32.vlgmr.msra.gmra.mrb[0].mxu0 %v4854_v5 }
 0x2c8   : > { %4079 = vmatpush3.bf16.msra.mxu0 %v4817_v26  ;;  %4148 = vmatpush3.bf16.msra.mxu1 %v4849_v20 }
 0x2c9   : > { %4080 = vmatprep.subr.bf16.mxu0 %v4352_v18  ;;  %4149 = vmatprep.subr.bf16.mxu1 %v4352_v18 }
 0x2ca   : > { %3900 = vmatprep.mubr.msk.f32.mxu0 %vm4353_vm1, %v4354_v23 }
 0x2cb   : > { %3996 = vmatmul.mubr.f32.vlgmr.msra.gmra.mrb[0].mxu1 %v4860_v38 }
 0x2cc   : > { %4082 = vmatpush3.bf16.msra.mxu0 %v4821_v27  ;;  %4151 = vmatpush3.bf16.msra.mxu1 %v4817_v26 }
 0x2cd   : > { %4083 = vmatprep.subr.bf16.mxu0 %v4352_v18  ;;  %4152 = vmatprep.subr.bf16.mxu1 %v4352_v18 }
 0x2ce   : > { %4014 = vmatprep.mubr.msk.f32.mxu1 %vm4353_vm1, %v4354_v23 }
 0x2d0   : > { %4085 = vmatpush3.bf16.msra.mxu0 %v4825_v7  ;;  %4154 = vmatpush3.bf16.msra.mxu1 %v4821_v27 }
 0x2d1   : > { %4086 = vmatprep.subr.bf16.mxu0 %v4352_v18  ;;  %4155 = vmatprep.subr.bf16.mxu1 %v4352_v18 }
 0x2d4   : > { %4088 = vmatpush3.bf16.msra.mxu0 %v4834_v59  ;;  %4157 = vmatpush3.bf16.msra.mxu1 %v4825_v7  ;;  %v2829_v7 = vshrl.u32 %v2828_v42, 7  ;;  %v2873_v42 = vld [vmem:[%s6424_s5 + $0x128] sm:$0xff] }
 0x2d5   : > { %4158 = vmatprep.subr.bf16.mxu1 %v4352_v18  ;;  %v2817_v18 = vld [vmem:[%s6422_s3] sm:$0x1] }
 0x2d6   : > { %v4974_v62 = vsub.s32 0, %v2829_v7 }
 0x2d7   : > { %3901 = vmatmul.mubr.f32.vlgmr.msra.gmra.mrb[0].mxu0 %v4854_v5 }
 0x2d8   : > { %4160 = vmatpush3.bf16.msra.mxu1 %v4834_v59  ;;  %v2847_v59 = vld [vmem:[%s6424_s5 + $0x58] sm:$0xff] }
 0x2db   : > { %4015 = vmatmul.mubr.f32.vlgmr.msra.gmra.mrb[0].mxu1 %v4860_v38  ;;  %v2864_v38 = vld [vmem:[%s6424_s5 + $0xe0] sm:$0xff] }
 0x3aa   : > { %v2266_v23 = vpop.f32.mrb[0].mxu0 }
 0x3ab   : > { %v2811_v26 = vmul.f32 0.000114784205, %v2266_v23  ;;  %v3902_v4 = vpop.f32.mrb[1].mxu0  ;;  %v2868_v23 = vld [vmem:[%s6424_s5 + $0x100] sm:$0xff] }
 0x3ad   : > { %v2813_v30 = vmul.f32 %v2811_v26, %v2811_v26 }
 0x3ae   : > { %v2806_v27 = vpop.f32.mrb[0].mxu1 }
 0x3af   : > { %v2812_v32 = vmul.f32 0.000114784205, %v2806_v27  ;;  %v4016_v35 = vpop.f32.mrb[1].mxu1 }
 0x3b0   : > { %v2870_v35 = vld [vmem:[%s6424_s5 + $0x110] sm:$0xff] }
 0x3b1   : > { %v2814_v37 = vsub.f32 %v2812_v32, %v2813_v30 }
 0x3b3   : > { %v2815_v56 = vadd.f32 1e-05, %v2814_v37  ;;  %v2871_v37 = vld [vmem:[%s6424_s5 + $0x118] sm:$0xff] }
 0x3b5   : > { %4291 = vrsqrt.f32 %v2815_v56  ;;  %v2872_v56 = vld [vmem:[%s6424_s5 + $0x120] sm:$0xff] }
 0x3bf   : > { %v4292_v15 = vpop.eup %4291 }
 0x3c0   : > { %v2818_v10 = vmul.f32 %v4292_v15, %v2817_v18 }
 0x3c2   : > { %2823 = vrot.lane.b32.xlu1 %v2818_v10, %s4351_s15  ;;  %v2820_v39 = vmul.f32 %v2818_v10, %v2811_v26  ;;  %v2869_v26 = vld [vmem:[%s6424_s5 + $0x108] sm:$0xff] }
 0x3c4   : > { %v4976_v34 = vsub.f32 %v2819_v33, %v2820_v39  ;;  %v2874_v33 = vld [vmem:[%s6424_s5 + $0x130] sm:$0xff]  ;;  %v2875_v39 = vld [vmem:[%s6424_s5 + $0x138] sm:$0xff] }
 0x3c6   : > { %v2831_v41 = vrot.slane %v4976_v34, %v4974_v62 }
 0x3c8   : > { %2832 = vrot.lane.b32.xlu1 %v2831_v41, %s4351_s15  ;;  %v2876_v41 = vld [vmem:[%s6424_s5 + $0x140] sm:$0xff] }
 0x434   : > { %v2824_v36 = vpop.permute.xlu1 %2823 }
 0x435   : > { %v2826_v12 = vsel %vm1393_vm0, %v2818_v10, %v2824_v36  ;;  %v2877_v36 = vld [vmem:[%s6424_s5 + $0x148] sm:$0xff] }
 0x436   : > { %v5001_v51 = vrot.slane %v2826_v12, %v4974_v62 }
 0x438   : > { %v5052_v19 = vmul.f32 %v5001_v51, %v2836_v43  ;;  %v5055_v20 = vmul.f32 %v5001_v51, %v2837_v45  ;;  %v5070_v22 = vmul.f32 %v5001_v51, %v2838_v60  ;;  %v5073_v24 = vmul.f32 %v5001_v51, %v2839_v48  ;;  %v2878_v48 = vld [vmem:[%s6424_s5 + $0x150] sm:$0xff] }
 0x439   : > { %v5076_v5 = vmul.f32 %v5001_v51, %v2840_v47  ;;  %v5079_v0 = vmul.f32 %v5001_v51, %v2841_v2  ;;  %v5094_v3 = vmul.f32 %v5001_v51, %v2842_v49  ;;  %v5097_v28 = vmul.f32 %v5001_v51, %v2843_v53  ;;  %v2879_v47 = vld [vmem:[%s6424_s5 + $0x158] sm:$0xff]  ;;  %v2880_v2 = vld [vmem:[%s6424_s5 + $0x160] sm:$0xff]  ;;  %v2881_v49 = vld [vmem:[%s6424_s5 + $0x168] sm:$0xff] }
 0x43a   : > { %v5100_v17 = vmul.f32 %v5001_v51, %v2844_v55  ;;  %v5103_v29 = vmul.f32 %v5001_v51, %v2845_v9  ;;  %v5118_v4 = vmul.f32 %v5001_v51, %v2846_v57  ;;  %v5121_v27 = vmul.f32 %v5001_v51, %v2847_v59  ;;  %v2882_v59 = vld [vmem:[%s6424_s5 + $0x170] sm:$0xff] }
 0x43b   : > { %v5124_v30 = vmul.f32 %v5001_v51, %v2848_v54  ;;  %v5127_v32 = vmul.f32 %v5001_v51, %v2849_v61  ;;  %v5142_v18 = vmul.f32 %v5001_v51, %v2850_v6  ;;  %v5145_v7 = vmul.f32 %v5001_v51, %v2851_v52  ;;  %v2883_v54 = vld [vmem:[%s6424_s5 + $0x178] sm:$0xff]  ;;  %v2884_v61 = vld [vmem:[%s6424_s5 + $0x180] sm:$0xff]  ;;  %v2885_v6 = vld [vmem:[%s6424_s5 + $0x188] sm:$0xff] }
 0x43c   : > { %v5148_v15 = vmul.f32 %v5001_v51, %v2852_v63  ;;  %v5151_v10 = vmul.f32 %v5001_v51, %v2853_v1  ;;  %v5166_v43 = vmul.f32 %v5001_v51, %v2854_v11  ;;  %v5169_v45 = vmul.f32 %v5001_v51, %v2855_v40  ;;  %v2886_v40 = vld [vmem:[%s6424_s5 + $0x190] sm:$0xff] }
 0x43d   : > { %v5172_v12 = vmul.f32 %v5001_v51, %v2856_v58  ;;  %v5175_v60 = vmul.f32 %v5001_v51, %v2857_v8  ;;  %v5190_v53 = vmul.f32 %v5001_v51, %v2858_v14  ;;  %v5193_v55 = vmul.f32 %v5001_v51, %v2859_v46  ;;  %v2887_v58 = vld [vmem:[%s6424_s5 + $0x198] sm:$0xff]  ;;  %v2888_v8 = vld [vmem:[%s6424_s5 + $0x1a0] sm:$0xff]  ;;  %v2889_v14 = vld [vmem:[%s6424_s5 + $0x1a8] sm:$0xff] }
 0x43e   : > { %v5196_v9 = vmul.f32 %v5001_v51, %v2860_v44  ;;  %v5199_v57 = vmul.f32 %v5001_v51, %v2861_v21  ;;  %v5214_v52 = vmul.f32 %v5001_v51, %v2862_v16  ;;  %v5217_v63 = vmul.f32 %v5001_v51, %v2863_v25  ;;  %v2890_v25 = vld [vmem:[%s6424_s5 + $0x1b0] sm:$0xff] }
 0x43f   : > { %v5220_v1 = vmul.f32 %v5001_v51, %v2864_v38  ;;  %v5223_v11 = vmul.f32 %v5001_v51, %v2865_v50  ;;  %v5238_v46 = vmul.f32 %v5001_v51, %v2866_v13  ;;  %v5241_v44 = vmul.f32 %v5001_v51, %v2867_v31  ;;  %v2891_v38 = vld [vmem:[%s6424_s5 + $0x1b8] sm:$0xff]  ;;  %v2892_v50 = vld [vmem:[%s6424_s5 + $0x1c0] sm:$0xff]  ;;  %v2893_v13 = vld [vmem:[%s6424_s5 + $0x1c8] sm:$0xff] }
 0x440   : > { %v5244_v21 = vmul.f32 %v5001_v51, %v2868_v23  ;;  %v5247_v16 = vmul.f32 %v5001_v51, %v2869_v26  ;;  %v5262_v31 = vmul.f32 %v5001_v51, %v2870_v35  ;;  %v5265_v23 = vmul.f32 %v5001_v51, %v2871_v37  ;;  %v2896_v35 = vld [vmem:[%s6424_s5 + $0x1e0] sm:$0xff]  ;;  %v2897_v37 = vld [vmem:[%s6424_s5 + $0x1e8] sm:$0xff] }
 0x441   : > { %6426 = vst [vmem:[#allocation5_spill] sm:$0xff] %v5241_v44  ;;  %v5268_v26 = vmul.f32 %v5001_v51, %v2872_v56  ;;  %v2895_v44 = vld [vmem:[%s6424_s5 + $0x1d8] sm:$0xff]  ;;  %v5286_v56 = vmul.f32 %v5001_v51, %v2874_v33  ;;  %v2900_v33 = vld [vmem:[%s6424_s5 + $0x200] sm:$0xff] }
 0x442   : > { %6427 = vst [vmem:[#allocation6_spill] sm:$0xff] %v5244_v21  ;;  %6428 = vst [vmem:[#allocation7_spill] sm:$0xff] %v5247_v16  ;;  %v5271_v16 = vmul.f32 %v5001_v51, %v2873_v42  ;;  %v2894_v21 = vld [vmem:[%s6424_s5 + $0x1d0] sm:$0xff]  ;;  %v5289_v42 = vmul.f32 %v5001_v51, %v2875_v39  ;;  %v2901_v39 = vld [vmem:[%s6424_s5 + $0x208] sm:$0xff] }
 0x443   : > { %6429 = vst [vmem:[#allocation8_spill] sm:$0xff] %v5262_v31  ;;  %6430 = vst [vmem:[#allocation9_spill] sm:$0xff] %v5265_v23  ;;  %v2898_v23 = vld [vmem:[%s6424_s5 + $0x1f0] sm:$0xff]  ;;  %v2899_v31 = vld [vmem:[%s6424_s5 + $0x1f8] sm:$0xff] }
 0x444   : > { %6431 = vst [vmem:[#allocation10_spill] sm:$0xff] %v5268_v26  ;;  %6432 = vst [vmem:[#allocation11_spill] sm:$0xff] %v5271_v16  ;;  %v5292_v16 = vmul.f32 %v5001_v51, %v2876_v41  ;;  %v5295_v26 = vmul.f32 %v5001_v51, %v2877_v36  ;;  %v5310_v41 = vmul.f32 %v5001_v51, %v2878_v48  ;;  %v2904_v48 = vld [vmem:[%s6424_s5 + $0x220] sm:$0xff] }
 0x445   : > { %6433 = vst [vmem:[#allocation12_spill] sm:$0xff] %v5286_v56  ;;  %6434 = vst [vmem:[#allocation13_spill] sm:$0xff] %v5289_v42  ;;  %v5313_v36 = vmul.f32 %v5001_v51, %v2879_v47  ;;  %v2902_v42 = vld [vmem:[%s6424_s5 + $0x210] sm:$0xff]  ;;  %v2903_v56 = vld [vmem:[%s6424_s5 + $0x218] sm:$0xff] }
 0x446   : > { %6435 = vst [vmem:[#allocation14_spill] sm:$0xff] %v5292_v16  ;;  %6436 = vst [vmem:[#allocation15_spill] sm:$0xff] %v5295_v26  ;;  %v5316_v26 = vmul.f32 %v5001_v51, %v2880_v2  ;;  %v5319_v16 = vmul.f32 %v5001_v51, %v2881_v49  ;;  %v2905_v47 = vld [vmem:[%s6424_s5 + $0x228] sm:$0xff]  ;;  %v5334_v2 = vmul.f32 %v5001_v51, %v2882_v59  ;;  %v2908_v59 = vld [vmem:[%s6424_s5 + $0x240] sm:$0xff] }
 0x447   : > { %6437 = vst [vmem:[#allocation16_spill] sm:$0xff] %v5310_v41  ;;  %6438 = vst [vmem:[#allocation17_spill] sm:$0xff] %v5313_v36  ;;  %v5337_v49 = vmul.f32 %v5001_v51, %v2883_v54  ;;  %v2906_v36 = vld [vmem:[%s6424_s5 + $0x230] sm:$0xff]  ;;  %v2907_v41 = vld [vmem:[%s6424_s5 + $0x238] sm:$0xff] }
 0x448   : > { %6439 = vst [vmem:[#allocation18_spill] sm:$0xff] %v5316_v26  ;;  %6440 = vst [vmem:[#allocation19_spill] sm:$0xff] %v5319_v16  ;;  %v5340_v16 = vmul.f32 %v5001_v51, %v2884_v61  ;;  %v5343_v26 = vmul.f32 %v5001_v51, %v2885_v6  ;;  %v2909_v54 = vld [vmem:[%s6424_s5 + $0x248] sm:$0xff]  ;;  %v5358_v61 = vmul.f32 %v5001_v51, %v2886_v40  ;;  %v2912_v40 = vld [vmem:[%s6424_s5 + $0x260] sm:$0xff] }
 0x449   : > { %6441 = vst [vmem:[#allocation20_spill] sm:$0xff] %v5334_v2  ;;  %6442 = vst [vmem:[#allocation21_spill] sm:$0xff] %v5337_v49  ;;  %v5361_v6 = vmul.f32 %v5001_v51, %v2887_v58  ;;  %v2910_v49 = vld [vmem:[%s6424_s5 + $0x250] sm:$0xff]  ;;  %v2911_v2 = vld [vmem:[%s6424_s5 + $0x258] sm:$0xff] }
 0x44a   : > { %6443 = vst [vmem:[#allocation22_spill] sm:$0xff] %v5340_v16  ;;  %6444 = vst [vmem:[#allocation23_spill] sm:$0xff] %v5343_v26  ;;  %v5364_v26 = vmul.f32 %v5001_v51, %v2888_v8  ;;  %v5367_v16 = vmul.f32 %v5001_v51, %v2889_v14  ;;  %v2913_v58 = vld [vmem:[%s6424_s5 + $0x268] sm:$0xff]  ;;  %v5382_v8 = vmul.f32 %v5001_v51, %v2890_v25  ;;  %v2916_v25 = vld [vmem:[%s6424_s5 + $0x280] sm:$0xff] }
 0x44b   : > { %6445 = vst [vmem:[#allocation24_spill] sm:$0xff] %v5358_v61  ;;  %6446 = vst [vmem:[#allocation25_spill] sm:$0xff] %v5361_v6  ;;  %v5385_v14 = vmul.f32 %v5001_v51, %v2891_v38  ;;  %v2914_v6 = vld [vmem:[%s6424_s5 + $0x270] sm:$0xff]  ;;  %v2915_v61 = vld [vmem:[%s6424_s5 + $0x278] sm:$0xff] }
 0x44c   : > { %6447 = vst [vmem:[#allocation26_spill] sm:$0xff] %v5364_v26  ;;  %6448 = vst [vmem:[#allocation27_spill] sm:$0xff] %v5367_v16  ;;  %v5388_v16 = vmul.f32 %v5001_v51, %v2892_v50  ;;  %v5391_v26 = vmul.f32 %v5001_v51, %v2893_v13  ;;  %v2917_v38 = vld [vmem:[%s6424_s5 + $0x288] sm:$0xff]  ;;  %v5406_v50 = vmul.f32 %v5001_v51, %v2894_v21  ;;  %v2920_v21 = vld [vmem:[%s6424_s5 + $0x2a0] sm:$0xff] }
 0x44d   : > { %6449 = vst [vmem:[#allocation28_spill] sm:$0xff] %v5382_v8  ;;  %6450 = vst [vmem:[#allocation29_spill] sm:$0xff] %v5385_v14  ;;  %v5409_v13 = vmul.f32 %v5001_v51, %v2895_v44  ;;  %v2918_v14 = vld [vmem:[%s6424_s5 + $0x290] sm:$0xff]  ;;  %v2919_v8 = vld [vmem:[%s6424_s5 + $0x298] sm:$0xff] }
 0x44e   : > { %6451 = vst [vmem:[#allocation30_spill] sm:$0xff] %v5388_v16  ;;  %6452 = vst [vmem:[#allocation31_spill] sm:$0xff] %v5391_v26  ;;  %v5412_v26 = vmul.f32 %v5001_v51, %v2896_v35  ;;  %v5415_v16 = vmul.f32 %v5001_v51, %v2897_v37  ;;  %v2921_v44 = vld [vmem:[%s6424_s5 + $0x2a8] sm:$0xff]  ;;  %v5430_v35 = vmul.f32 %v5001_v51, %v2898_v23  ;;  %v2924_v23 = vld [vmem:[%s6424_s5 + $0x2c0] sm:$0xff] }
 0x44f   : > { %6453 = vst [vmem:[#allocation32_spill] sm:$0xff] %v5406_v50  ;;  %6454 = vst [vmem:[#allocation33_spill] sm:$0xff] %v5409_v13  ;;  %v5433_v37 = vmul.f32 %v5001_v51, %v2899_v31  ;;  %v2922_v13 = vld [vmem:[%s6424_s5 + $0x2b0] sm:$0xff]  ;;  %v2923_v50 = vld [vmem:[%s6424_s5 + $0x2b8] sm:$0xff] }
 0x450   : > { %6455 = vst [vmem:[#allocation34_spill] sm:$0xff] %v5412_v26  ;;  %6456 = vst [vmem:[#allocation35_spill] sm:$0xff] %v5415_v16  ;;  %v5436_v16 = vmul.f32 %v5001_v51, %v2900_v33  ;;  %v5439_v26 = vmul.f32 %v5001_v51, %v2901_v39  ;;  %v2925_v31 = vld [vmem:[%s6424_s5 + $0x2c8] sm:$0xff]  ;;  %v5454_v33 = vmul.f32 %v5001_v51, %v2902_v42  ;;  %v2928_v42 = vld [vmem:[%s6424_s5 + $0x2e0] sm:$0xff] }
 0x451   : > { %6457 = vst [vmem:[#allocation36_spill] sm:$0xff] %v5430_v35  ;;  %6458 = vst [vmem:[#allocation37_spill] sm:$0xff] %v5433_v37  ;;  %v5457_v39 = vmul.f32 %v5001_v51, %v2903_v56  ;;  %v2926_v37 = vld [vmem:[%s6424_s5 + $0x2d0] sm:$0xff]  ;;  %v2927_v35 = vld [vmem:[%s6424_s5 + $0x2d8] sm:$0xff] }
 0x452   : > { %6459 = vst [vmem:[#allocation38_spill] sm:$0xff] %v5436_v16  ;;  %6460 = vst [vmem:[#allocation39_spill] sm:$0xff] %v5439_v26  ;;  %v5460_v26 = vmul.f32 %v5001_v51, %v2904_v48  ;;  %v5463_v16 = vmul.f32 %v5001_v51, %v2905_v47  ;;  %v2929_v56 = vld [vmem:[%s6424_s5 + $0x2e8] sm:$0xff]  ;;  %v5478_v48 = vmul.f32 %v5001_v51, %v2906_v36  ;;  %v2932_v36 = vld [vmem:[%s6424_s5 + $0x300] sm:$0xff] }
 0x453   : > { %6461 = vst [vmem:[#allocation40_spill] sm:$0xff] %v5454_v33  ;;  %6462 = vst [vmem:[#allocation41_spill] sm:$0xff] %v5457_v39  ;;  %v5481_v47 = vmul.f32 %v5001_v51, %v2907_v41  ;;  %v2930_v39 = vld [vmem:[%s6424_s5 + $0x2f0] sm:$0xff]  ;;  %v2931_v33 = vld [vmem:[%s6424_s5 + $0x2f8] sm:$0xff] }
 0x454   : > { %6463 = vst [vmem:[#allocation42_spill] sm:$0xff] %v5460_v26  ;;  %6464 = vst [vmem:[#allocation43_spill] sm:$0xff] %v5463_v16  ;;  %v5484_v16 = vmul.f32 %v5001_v51, %v2908_v59  ;;  %v5487_v26 = vmul.f32 %v5001_v51, %v2909_v54  ;;  %v2933_v41 = vld [vmem:[%s6424_s5 + $0x308] sm:$0xff]  ;;  %v5502_v59 = vmul.f32 %v5001_v51, %v2910_v49  ;;  %v2936_v49 = vld [vmem:[%s6424_s5 + $0x320] sm:$0xff] }
 0x455   : > { %6465 = vst [vmem:[#allocation44_spill] sm:$0xff] %v5478_v48  ;;  %6466 = vst [vmem:[#allocation45_spill] sm:$0xff] %v5481_v47  ;;  %v5505_v54 = vmul.f32 %v5001_v51, %v2911_v2  ;;  %v2934_v47 = vld [vmem:[%s6424_s5 + $0x310] sm:$0xff]  ;;  %v2935_v48 = vld [vmem:[%s6424_s5 + $0x318] sm:$0xff]  ;;  %v5523_v2 = vmul.f32 %v5001_v51, %v2914_v6 }
 0x456   : > { %6467 = vst [vmem:[#allocation46_spill] sm:$0xff] %v5484_v16  ;;  %6468 = vst [vmem:[#allocation47_spill] sm:$0xff] %v5487_v26  ;;  %v5508_v26 = vmul.f32 %v5001_v51, %v2912_v40  ;;  %v5511_v16 = vmul.f32 %v5001_v51, %v2913_v58  ;;  %v5526_v40 = vmul.f32 %v5001_v51, %v2915_v61  ;;  %v2939_v6 = vld [vmem:[%s6424_s5 + $0x338] sm:$0xff] }
 0x457   : > { %6469 = vst [vmem:[#allocation48_spill] sm:$0xff] %v5505_v54  ;;  %v5529_v58 = vmul.f32 %v5001_v51, %v2916_v25  ;;  %v2938_v54 = vld [vmem:[%s6424_s5 + $0x330] sm:$0xff]  ;;  %v5544_v61 = vmul.f32 %v5001_v51, %v2918_v14  ;;  %v5547_v25 = vmul.f32 %v5001_v51, %v2919_v8  ;;  %v5565_v8 = vmul.f32 %v5001_v51, %v2922_v13  ;;  %v2945_v13 = vld [vmem:[%s6424_s5 + $0x368] sm:$0xff] }
 0x458   : > { %6470 = vst [vmem:[#allocation49_spill] sm:$0xff] %v5508_v26  ;;  %6471 = vst [vmem:[#allocation50_spill] sm:$0xff] %v5511_v16  ;;  %v5532_v16 = vmul.f32 %v5001_v51, %v2917_v38  ;;  %v2937_v26 = vld [vmem:[%s6424_s5 + $0x328] sm:$0xff]  ;;  %v5550_v38 = vmul.f32 %v5001_v51, %v2920_v21  ;;  %v2942_v14 = vld [vmem:[%s6424_s5 + $0x350] sm:$0xff]  ;;  %v5568_v21 = vmul.f32 %v5001_v51, %v2923_v50 }
 0x459   : > { %6472 = vst [vmem:[#allocation51_spill] sm:$0xff] %v5526_v40  ;;  %6473 = vst [vmem:[#allocation52_spill] sm:$0xff] %v5529_v58  ;;  %v2940_v58 = vld [vmem:[%s6424_s5 + $0x340] sm:$0xff]  ;;  %v2941_v40 = vld [vmem:[%s6424_s5 + $0x348] sm:$0xff]  ;;  %v5586_v50 = vmul.f32 %v5001_v51, %v2926_v37 }
 0x45a   : > { %6474 = vst [vmem:[#allocation53_spill] sm:$0xff] %v5532_v16  ;;  %6475 = vst [vmem:[#allocation54_spill] sm:$0xff] %v5547_v25  ;;  %v5553_v16 = vmul.f32 %v5001_v51, %v2921_v44  ;;  %v5571_v44 = vmul.f32 %v5001_v51, %v2924_v23  ;;  %v2944_v25 = vld [vmem:[%s6424_s5 + $0x360] sm:$0xff]  ;;  %v5589_v23 = vmul.f32 %v5001_v51, %v2927_v35 }
 0x45b   : > { %6476 = vst [vmem:[#allocation55_spill] sm:$0xff] %v5550_v38  ;;  %6478 = vst [vmem:[#allocation57_spill] sm:$0xff] %v5568_v21  ;;  %v2943_v38 = vld [vmem:[%s6424_s5 + $0x358] sm:$0xff]  ;;  %v2948_v37 = vld [vmem:[%s6424_s5 + $0x380] sm:$0xff]  ;;  %v5607_v35 = vmul.f32 %v5001_v51, %v2930_v39 }
 0x45c   : > { %6477 = vst [vmem:[#allocation56_spill] sm:$0xff] %v5553_v16  ;;  %6479 = vst [vmem:[#allocation58_spill] sm:$0xff] %v5571_v44  ;;  %v5574_v16 = vmul.f32 %v5001_v51, %v2925_v31  ;;  %v5592_v31 = vmul.f32 %v5001_v51, %v2928_v42  ;;  %v2946_v44 = vld [vmem:[%s6424_s5 + $0x370] sm:$0xff]  ;;  %v2947_v21 = vld [vmem:[%s6424_s5 + $0x378] sm:$0xff]  ;;  %v5610_v42 = vmul.f32 %v5001_v51, %v2931_v33 }
 0x45d   : > { %6481 = vst [vmem:[#allocation60_spill] sm:$0xff] %v5589_v23  ;;  %v2950_v23 = vld [vmem:[%s6424_s5 + $0x390] sm:$0xff]  ;;  %v2951_v39 = vld [vmem:[%s6424_s5 + $0x398] sm:$0xff]  ;;  %v5628_v33 = vmul.f32 %v5001_v51, %v2934_v47 }
 0x45e   : > { %6480 = vst [vmem:[#allocation59_spill] sm:$0xff] %v5574_v16  ;;  %6482 = vst [vmem:[#allocation61_spill] sm:$0xff] %v5592_v31  ;;  %v5595_v16 = vmul.f32 %v5001_v51, %v2929_v56  ;;  %v5613_v56 = vmul.f32 %v5001_v51, %v2932_v36  ;;  %v2949_v31 = vld [vmem:[%s6424_s5 + $0x388] sm:$0xff]  ;;  %v5631_v36 = vmul.f32 %v5001_v51, %v2935_v48  ;;  %v2954_v47 = vld [vmem:[%s6424_s5 + $0x3b0] sm:$0xff] }
 0x45f   : > { %6484 = vst [vmem:[#allocation63_spill] sm:$0xff] %v5610_v42  ;;  %v2953_v42 = vld [vmem:[%s6424_s5 + $0x3a8] sm:$0xff]  ;;  %v5649_v48 = vmul.f32 %v5001_v51, %v2938_v54 }
 0x460   : > { %6483 = vst [vmem:[#allocation62_spill] sm:$0xff] %v5595_v16  ;;  %6485 = vst [vmem:[#allocation64_spill] sm:$0xff] %v5613_v56  ;;  %v5616_v16 = vmul.f32 %v5001_v51, %v2933_v41  ;;  %v5634_v41 = vmul.f32 %v5001_v51, %v2936_v49  ;;  %v2952_v56 = vld [vmem:[%s6424_s5 + $0x3a0] sm:$0xff]  ;;  %v5652_v49 = vmul.f32 %v5001_v51, %v2939_v6  ;;  %v2957_v54 = vld [vmem:[%s6424_s5 + $0x3c8] sm:$0xff] }
 0x461   : > { %6487 = vst [vmem:[#allocation66_spill] sm:$0xff] %v5631_v36  ;;  %6490 = vst [vmem:[#allocation69_spill] sm:$0xff] %v5649_v48  ;;  %v2956_v36 = vld [vmem:[%s6424_s5 + $0x3c0] sm:$0xff]  ;;  %v5670_v6 = vmul.f32 %v5001_v51, %v2942_v14  ;;  %v2959_v48 = vld [vmem:[%s6424_s5 + $0x3d8] sm:$0xff]  ;;  %v5691_v14 = vmul.f32 %v5001_v51, %v2946_v44 }
 0x462   : > { %6486 = vst [vmem:[#allocation65_spill] sm:$0xff] %v5616_v16  ;;  %6488 = vst [vmem:[#allocation67_spill] sm:$0xff] %v5634_v41  ;;  %v5637_v16 = vmul.f32 %v5001_v51, %v2937_v26  ;;  %v5655_v26 = vmul.f32 %v5001_v51, %v2940_v58  ;;  %v2955_v41 = vld [vmem:[%s6424_s5 + $0x3b8] sm:$0xff]  ;;  %v5673_v58 = vmul.f32 %v5001_v51, %v2943_v38  ;;  %v2960_v38 = vld [vmem:[%s6424_s5 + $0x3e0] sm:$0xff] }
 0x463   : > { %6491 = vst [vmem:[#allocation70_spill] sm:$0xff] %v5652_v49  ;;  %v2958_v49 = vld [vmem:[%s6424_s5 + $0x3d0] sm:$0xff]  ;;  %6497 = vst [vmem:[#allocation76_spill] sm:$0xff] %v5691_v14  ;;  %v2963_v44 = vld [vmem:[%s6424_s5 + $0x3f8] sm:$0xff]  ;;  %v5730_v14 = vmul.f32 %v5001_v51, %v2956_v36 }
 0x464   : > { %6489 = vst [vmem:[#allocation68_spill] sm:$0xff] %v5637_v16  ;;  %6492 = vst [vmem:[#allocation71_spill] sm:$0xff] %v5655_v26  ;;  %v5658_v16 = vmul.f32 %v5001_v51, %v2941_v40  ;;  %v5676_v40 = vmul.f32 %v5001_v51, %v2944_v25  ;;  %v2833_v26 = vpop.permute.xlu1 %2832  ;;  %v5694_v25 = vmul.f32 %v5001_v51, %v2947_v21 }
 0x465   : > { %6494 = vst [vmem:[#allocation73_spill] sm:$0xff] %v5673_v58  ;;  %v2962_v58 = vld [vmem:[%s6424_s5 + $0x3f0] sm:$0xff]  ;;  %v5712_v21 = vmul.f32 %v5001_v51, %v2950_v23  ;;  %v2835_v23 = vsel %vm1393_vm0, %v4976_v34, %v2833_v26  ;;  %v5756_v26 = vmul.f32 %v5001_v51, %v2963_v44  ;;  %v6505_v44 = vld [vmem:[#allocation9_spill] sm:$0xff] }
 0x466   : > { %6493 = vst [vmem:[#allocation72_spill] sm:$0xff] %v5658_v16  ;;  %6495 = vst [vmem:[#allocation74_spill] sm:$0xff] %v5676_v40  ;;  %v5679_v16 = vmul.f32 %v5001_v51, %v2945_v13  ;;  %v5697_v13 = vmul.f32 %v5001_v51, %v2948_v37  ;;  %v2961_v40 = vld [vmem:[%s6424_s5 + $0x3e8] sm:$0xff]  ;;  %v5715_v37 = vmul.f32 %v5001_v51, %v2951_v39 }
 0x467   : > { %6498 = vst [vmem:[#allocation77_spill] sm:$0xff] %v5694_v25  ;;  %v5727_v25 = vmul.f32 %v5001_v51, %v2955_v41  ;;  %v5735_v39 = vmul.f32 %v5001_v51, %v2957_v54  ;;  %v5747_v41 = vmul.f32 %v5001_v51, %v2960_v38  ;;  %v5750_v36 = vmul.f32 %v5001_v51, %v2961_v40 }
 0x468   : > { %6496 = vst [vmem:[#allocation75_spill] sm:$0xff] %v5679_v16  ;;  %6499 = vst [vmem:[#allocation78_spill] sm:$0xff] %v5697_v13  ;;  %v5700_v16 = vmul.f32 %v5001_v51, %v2949_v31  ;;  %v5718_v31 = vmul.f32 %v5001_v51, %v2952_v56  ;;  %v5724_v13 = vmul.f32 %v5001_v51, %v2954_v47 }
 0x469   : > { %v5738_v56 = vmul.f32 %v5001_v51, %v2958_v49  ;;  %v5744_v47 = vrot.slane %v2835_v23, %v4974_v62  ;;  %v5753_v34 = vmul.f32 %v5001_v51, %v2962_v58 }
 0x46a   : > { %6500 = vst [vmem:[#allocation79_spill] sm:$0xff] %v5700_v16  ;;  %v5721_v16 = vmul.f32 %v5001_v51, %v2953_v42  ;;  %v5741_v42 = vmul.f32 %v5001_v51, %v2959_v48 }
 0x46b   : > { %v3100_v49 = vadd.f32 %v5744_v47, %v5052_v19  ;;  %v3101_v48 = vadd.f32 %v5744_v47, %v5055_v20  ;;  %v3102_v62 = vadd.f32 %v5744_v47, %v5070_v22  ;;  %v3103_v54 = vadd.f32 %v5744_v47, %v5073_v24 }
 0x46c   : > { %v3104_v40 = vadd.f32 %v5744_v47, %v5076_v5  ;;  %v3105_v58 = vadd.f32 %v5744_v47, %v5079_v0  ;;  %v3106_v51 = vadd.f32 %v5744_v47, %v5094_v3  ;;  %v3107_v19 = vadd.f32 %v5744_v47, %v5097_v28 }
 0x46d   : > { %v3108_v20 = vadd.f32 %v5744_v47, %v5100_v17  ;;  %v3109_v22 = vadd.f32 %v5744_v47, %v5103_v29  ;;  %v3110_v24 = vadd.f32 %v5744_v47, %v5118_v4  ;;  %v3111_v5 = vadd.f32 %v5744_v47, %v5121_v27  ;;  %3228 = vst [vmem:[%s6424_s5] sm:$0xff] %v3100_v49  ;;  %v6506_v49 = vld [vmem:[#allocation10_spill] sm:$0xff] }
 0x46e   : > { %3229 = vst [vmem:[%s6424_s5 + $0x8] sm:$0xff] %v3101_v48  ;;  %3230 = vst [vmem:[%s6424_s5 + $0x10] sm:$0xff] %v3102_v62  ;;  %v3112_v0 = vadd.f32 %v5744_v47, %v5124_v30  ;;  %v3113_v3 = vadd.f32 %v5744_v47, %v5127_v32  ;;  %v3114_v28 = vadd.f32 %v5744_v47, %v5142_v18  ;;  %v6507_v62 = vld [vmem:[#allocation11_spill] sm:$0xff] }
 0x46f   : > { %3231 = vst [vmem:[%s6424_s5 + $0x18] sm:$0xff] %v3103_v54  ;;  %v3115_v17 = vadd.f32 %v5744_v47, %v5145_v7  ;;  %3232 = vst [vmem:[%s6424_s5 + $0x20] sm:$0xff] %v3104_v40  ;;  %v3116_v29 = vadd.f32 %v5744_v47, %v5148_v15  ;;  %v3117_v4 = vadd.f32 %v5744_v47, %v5151_v10  ;;  %v6508_v40 = vld [vmem:[#allocation12_spill] sm:$0xff] }
 0x470   : > { %3233 = vst [vmem:[%s6424_s5 + $0x28] sm:$0xff] %v3105_v58  ;;  %3234 = vst [vmem:[%s6424_s5 + $0x30] sm:$0xff] %v3106_v51  ;;  %v3118_v27 = vadd.f32 %v5744_v47, %v5166_v43  ;;  %v3119_v30 = vadd.f32 %v5744_v47, %v5169_v45  ;;  %v3120_v32 = vadd.f32 %v5744_v47, %v5172_v12  ;;  %v6509_v51 = vld [vmem:[#allocation13_spill] sm:$0xff] }
 0x471   : > { %3235 = vst [vmem:[%s6424_s5 + $0x38] sm:$0xff] %v3107_v19  ;;  %3236 = vst [vmem:[%s6424_s5 + $0x40] sm:$0xff] %v3108_v20  ;;  %v3121_v18 = vadd.f32 %v5744_v47, %v5175_v60  ;;  %v3122_v7 = vadd.f32 %v5744_v47, %v5190_v53  ;;  %v3123_v15 = vadd.f32 %v5744_v47, %v5193_v55  ;;  %v6510_v20 = vld [vmem:[#allocation14_spill] sm:$0xff] }
 0x472   : > { %3237 = vst [vmem:[%s6424_s5 + $0x48] sm:$0xff] %v3109_v22  ;;  %3238 = vst [vmem:[%s6424_s5 + $0x50] sm:$0xff] %v3110_v24  ;;  %v3124_v10 = vadd.f32 %v5744_v47, %v5196_v9  ;;  %v3125_v43 = vadd.f32 %v5744_v47, %v5199_v57  ;;  %v3126_v45 = vadd.f32 %v5744_v47, %v5214_v52  ;;  %v6501_v9 = vld [vmem:[#allocation5_spill] sm:$0xff]  ;;  %v6502_v52 = vld [vmem:[#allocation6_spill] sm:$0xff] }
 0x473   : > { %3239 = vst [vmem:[%s6424_s5 + $0x58] sm:$0xff] %v3111_v5  ;;  %3240 = vst [vmem:[%s6424_s5 + $0x60] sm:$0xff] %v3112_v0  ;;  %v3127_v12 = vadd.f32 %v5744_v47, %v5217_v63  ;;  %v3128_v60 = vadd.f32 %v5744_v47, %v5220_v1  ;;  %v3129_v53 = vadd.f32 %v5744_v47, %v5223_v11  ;;  %v6503_v1 = vld [vmem:[#allocation7_spill] sm:$0xff]  ;;  %v6512_v0 = vld [vmem:[#allocation16_spill] sm:$0xff] }
 0x474   : > { %3241 = vst [vmem:[%s6424_s5 + $0x68] sm:$0xff] %v3113_v3  ;;  %3242 = vst [vmem:[%s6424_s5 + $0x70] sm:$0xff] %v3114_v28  ;;  %v3130_v55 = vadd.f32 %v5744_v47, %v5238_v46  ;;  %v3131_v57 = vadd.f32 %v5744_v47, %v6501_v9  ;;  %v3132_v63 = vadd.f32 %v5744_v47, %v6502_v52  ;;  %v6504_v46 = vld [vmem:[#allocation8_spill] sm:$0xff]  ;;  %v6511_v24 = vld [vmem:[#allocation15_spill] sm:$0xff] }
 0x475   : > { %3243 = vst [vmem:[%s6424_s5 + $0x78] sm:$0xff] %v3115_v17  ;;  %3244 = vst [vmem:[%s6424_s5 + $0x80] sm:$0xff] %v3116_v29  ;;  %v3133_v11 = vadd.f32 %v5744_v47, %v6503_v1  ;;  %v3134_v38 = vadd.f32 %v5744_v47, %v6504_v46  ;;  %v3135_v23 = vadd.f32 %v5744_v47, %v6505_v44  ;;  %v6513_v28 = vld [vmem:[#allocation17_spill] sm:$0xff]  ;;  %v6514_v29 = vld [vmem:[#allocation18_spill] sm:$0xff] }
 0x476   : > { %3245 = vst [vmem:[%s6424_s5 + $0x88] sm:$0xff] %v3117_v4  ;;  %3246 = vst [vmem:[%s6424_s5 + $0x90] sm:$0xff] %v3118_v27  ;;  %v3136_v48 = vadd.f32 %v5744_v47, %v6506_v49  ;;  %v3137_v54 = vadd.f32 %v5744_v47, %v6507_v62  ;;  %v3138_v58 = vadd.f32 %v5744_v47, %v6508_v40  ;;  %v6515_v27 = vld [vmem:[#allocation19_spill] sm:$0xff] }
 0x477   : > { %3247 = vst [vmem:[%s6424_s5 + $0x98] sm:$0xff] %v3119_v30  ;;  %3248 = vst [vmem:[%s6424_s5 + $0xa0] sm:$0xff] %v3120_v32  ;;  %v3139_v19 = vadd.f32 %v5744_v47, %v6509_v51  ;;  %v3140_v22 = vadd.f32 %v5744_v47, %v6510_v20  ;;  %v3141_v5 = vadd.f32 %v5744_v47, %v6511_v24  ;;  %v6516_v32 = vld [vmem:[#allocation20_spill] sm:$0xff] }
 0x478   : > { %3249 = vst [vmem:[%s6424_s5 + $0xa8] sm:$0xff] %v3121_v18  ;;  %3250 = vst [vmem:[%s6424_s5 + $0xb0] sm:$0xff] %v3122_v7  ;;  %v3142_v3 = vadd.f32 %v5744_v47, %v6512_v0  ;;  %v3143_v17 = vadd.f32 %v5744_v47, %v6513_v28  ;;  %v3144_v4 = vadd.f32 %v5744_v47, %v6514_v29  ;;  %v6517_v7 = vld [vmem:[#allocation21_spill] sm:$0xff] }
 0x479   : > { %3251 = vst [vmem:[%s6424_s5 + $0xb8] sm:$0xff] %v3123_v15  ;;  %3252 = vst [vmem:[%s6424_s5 + $0xc0] sm:$0xff] %v3124_v10  ;;  %v3145_v30 = vadd.f32 %v5744_v47, %v6515_v27  ;;  %v3146_v18 = vadd.f32 %v5744_v47, %v6516_v32  ;;  %v3147_v15 = vadd.f32 %v5744_v47, %v6517_v7  ;;  %v6518_v10 = vld [vmem:[#allocation22_spill] sm:$0xff] }
 0x47a   : > { %3253 = vst [vmem:[%s6424_s5 + $0xc8] sm:$0xff] %v3125_v43  ;;  %3254 = vst [vmem:[%s6424_s5 + $0xd0] sm:$0xff] %v3126_v45  ;;  %v3148_v43 = vadd.f32 %v5744_v47, %v6518_v10  ;;  %v6519_v45 = vld [vmem:[#allocation23_spill] sm:$0xff] }
 0x47b   : > { %3255 = vst [vmem:[%s6424_s5 + $0xd8] sm:$0xff] %v3127_v12  ;;  %3256 = vst [vmem:[%s6424_s5 + $0xe0] sm:$0xff] %v3128_v60  ;;  %v3149_v12 = vadd.f32 %v5744_v47, %v6519_v45  ;;  %v6520_v60 = vld [vmem:[#allocation24_spill] sm:$0xff] }
 0x47c   : > { %3257 = vst [vmem:[%s6424_s5 + $0xe8] sm:$0xff] %v3129_v53  ;;  %3258 = vst [vmem:[%s6424_s5 + $0xf0] sm:$0xff] %v3130_v55  ;;  %v3150_v53 = vadd.f32 %v5744_v47, %v6520_v60  ;;  %v6521_v55 = vld [vmem:[#allocation25_spill] sm:$0xff] }
 0x47d   : > { %3259 = vst [vmem:[%s6424_s5 + $0xf8] sm:$0xff] %v3131_v57  ;;  %3260 = vst [vmem:[%s6424_s5 + $0x100] sm:$0xff] %v3132_v63  ;;  %v3151_v9 = vadd.f32 %v5744_v47, %v6521_v55  ;;  %v6522_v57 = vld [vmem:[#allocation26_spill] sm:$0xff]  ;;  %v6523_v63 = vld [vmem:[#allocation27_spill] sm:$0xff] }
 0x47e   : > { %3261 = vst [vmem:[%s6424_s5 + $0x108] sm:$0xff] %v3133_v11  ;;  %3262 = vst [vmem:[%s6424_s5 + $0x110] sm:$0xff] %v3134_v38  ;;  %v3152_v52 = vadd.f32 %v5744_v47, %v6522_v57  ;;  %v3153_v1 = vadd.f32 %v5744_v47, %v6523_v63  ;;  %v6524_v11 = vld [vmem:[#allocation28_spill] sm:$0xff]  ;;  %v6525_v38 = vld [vmem:[#allocation29_spill] sm:$0xff] }
 0x47f   : > { %3263 = vst [vmem:[%s6424_s5 + $0x118] sm:$0xff] %v3135_v23  ;;  %3264 = vst [vmem:[%s6424_s5 + $0x120] sm:$0xff] %v3136_v48  ;;  %v3154_v46 = vadd.f32 %v5744_v47, %v6524_v11  ;;  %v3155_v44 = vadd.f32 %v5744_v47, %v6525_v38  ;;  %v6526_v23 = vld [vmem:[#allocation30_spill] sm:$0xff]  ;;  %v6527_v48 = vld [vmem:[#allocation31_spill] sm:$0xff] }
 0x480   : > { %3265 = vst [vmem:[%s6424_s5 + $0x128] sm:$0xff] %v3137_v54  ;;  %3266 = vst [vmem:[%s6424_s5 + $0x130] sm:$0xff] %v3138_v58  ;;  %v3156_v49 = vadd.f32 %v5744_v47, %v6526_v23  ;;  %v3157_v62 = vadd.f32 %v5744_v47, %v6527_v48  ;;  %v6528_v54 = vld [vmem:[#allocation32_spill] sm:$0xff]  ;;  %v6529_v58 = vld [vmem:[#allocation33_spill] sm:$0xff] }
 0x481   : > { %3267 = vst [vmem:[%s6424_s5 + $0x138] sm:$0xff] %v3139_v19  ;;  %3268 = vst [vmem:[%s6424_s5 + $0x140] sm:$0xff] %v3140_v22  ;;  %v3158_v40 = vadd.f32 %v5744_v47, %v6528_v54  ;;  %v3159_v51 = vadd.f32 %v5744_v47, %v6529_v58  ;;  %v6530_v19 = vld [vmem:[#allocation34_spill] sm:$0xff]  ;;  %v6531_v22 = vld [vmem:[#allocation35_spill] sm:$0xff] }
 0x482   : > { %3269 = vst [vmem:[%s6424_s5 + $0x148] sm:$0xff] %v3141_v5  ;;  %3270 = vst [vmem:[%s6424_s5 + $0x150] sm:$0xff] %v3142_v3  ;;  %v3160_v20 = vadd.f32 %v5744_v47, %v6530_v19  ;;  %v3161_v24 = vadd.f32 %v5744_v47, %v6531_v22  ;;  %v6532_v5 = vld [vmem:[#allocation36_spill] sm:$0xff]  ;;  %v6533_v3 = vld [vmem:[#allocation37_spill] sm:$0xff] }
 0x483   : > { %3271 = vst [vmem:[%s6424_s5 + $0x158] sm:$0xff] %v3143_v17  ;;  %3272 = vst [vmem:[%s6424_s5 + $0x160] sm:$0xff] %v3144_v4  ;;  %v3162_v0 = vadd.f32 %v5744_v47, %v6532_v5  ;;  %v3163_v28 = vadd.f32 %v5744_v47, %v6533_v3  ;;  %v6534_v17 = vld [vmem:[#allocation38_spill] sm:$0xff]  ;;  %v6535_v4 = vld [vmem:[#allocation39_spill] sm:$0xff] }
 0x484   : > { %3273 = vst [vmem:[%s6424_s5 + $0x168] sm:$0xff] %v3145_v30  ;;  %3274 = vst [vmem:[%s6424_s5 + $0x170] sm:$0xff] %v3146_v18  ;;  %v3164_v29 = vadd.f32 %v5744_v47, %v6534_v17  ;;  %v3165_v27 = vadd.f32 %v5744_v47, %v6535_v4  ;;  %v6536_v30 = vld [vmem:[#allocation40_spill] sm:$0xff]  ;;  %v6537_v18 = vld [vmem:[#allocation41_spill] sm:$0xff] }
 0x485   : > { %3275 = vst [vmem:[%s6424_s5 + $0x178] sm:$0xff] %v3147_v15  ;;  %3276 = vst [vmem:[%s6424_s5 + $0x180] sm:$0xff] %v3148_v43  ;;  %v3166_v32 = vadd.f32 %v5744_v47, %v6536_v30  ;;  %v3167_v7 = vadd.f32 %v5744_v47, %v6537_v18  ;;  %v6538_v15 = vld [vmem:[#allocation42_spill] sm:$0xff]  ;;  %v6539_v43 = vld [vmem:[#allocation43_spill] sm:$0xff] }
 0x486   : > { %3277 = vst [vmem:[%s6424_s5 + $0x188] sm:$0xff] %v3149_v12  ;;  %3278 = vst [vmem:[%s6424_s5 + $0x190] sm:$0xff] %v3150_v53  ;;  %v3168_v10 = vadd.f32 %v5744_v47, %v6538_v15  ;;  %v3169_v45 = vadd.f32 %v5744_v47, %v6539_v43  ;;  %v6540_v12 = vld [vmem:[#allocation44_spill] sm:$0xff]  ;;  %v6541_v53 = vld [vmem:[#allocation45_spill] sm:$0xff] }
 0x487   : > { %3279 = vst [vmem:[%s6424_s5 + $0x198] sm:$0xff] %v3151_v9  ;;  %3280 = vst [vmem:[%s6424_s5 + $0x1a0] sm:$0xff] %v3152_v52  ;;  %v3170_v60 = vadd.f32 %v5744_v47, %v6540_v12  ;;  %v3171_v55 = vadd.f32 %v5744_v47, %v6541_v53  ;;  %v6542_v9 = vld [vmem:[#allocation46_spill] sm:$0xff]  ;;  %v6543_v52 = vld [vmem:[#allocation47_spill] sm:$0xff] }
 0x488   : > { %3281 = vst [vmem:[%s6424_s5 + $0x1a8] sm:$0xff] %v3153_v1  ;;  %3282 = vst [vmem:[%s6424_s5 + $0x1b0] sm:$0xff] %v3154_v46  ;;  %v3172_v57 = vadd.f32 %v5744_v47, %v6542_v9  ;;  %v3173_v63 = vadd.f32 %v5744_v47, %v6543_v52  ;;  %v3174_v1 = vadd.f32 %v5744_v47, %v5502_v59  ;;  %v6544_v11 = vld [vmem:[#allocation48_spill] sm:$0xff]  ;;  %v6545_v59 = vld [vmem:[#allocation49_spill] sm:$0xff] }
 0x489   : > { %3283 = vst [vmem:[%s6424_s5 + $0x1b8] sm:$0xff] %v3155_v44  ;;  %3284 = vst [vmem:[%s6424_s5 + $0x1c0] sm:$0xff] %v3156_v49  ;;  %v3175_v46 = vadd.f32 %v5744_v47, %v6544_v11  ;;  %v3176_v38 = vadd.f32 %v5744_v47, %v6545_v59  ;;  %v6546_v44 = vld [vmem:[#allocation50_spill] sm:$0xff]  ;;  %v3178_v49 = vadd.f32 %v5744_v47, %v5523_v2  ;;  %v6547_v48 = vld [vmem:[#allocation51_spill] sm:$0xff] }
 0x48a   : > { %3285 = vst [vmem:[%s6424_s5 + $0x1c8] sm:$0xff] %v3157_v62  ;;  %3286 = vst [vmem:[%s6424_s5 + $0x1d0] sm:$0xff] %v3158_v40  ;;  %v3177_v23 = vadd.f32 %v5744_v47, %v6546_v44  ;;  %v3179_v62 = vadd.f32 %v5744_v47, %v6547_v48  ;;  %v6548_v2 = vld [vmem:[#allocation52_spill] sm:$0xff]  ;;  %v6549_v40 = vld [vmem:[#allocation53_spill] sm:$0xff] }
 0x48b   : > { %3287 = vst [vmem:[%s6424_s5 + $0x1d8] sm:$0xff] %v3159_v51  ;;  %3288 = vst [vmem:[%s6424_s5 + $0x1e0] sm:$0xff] %v3160_v20  ;;  %v3180_v54 = vadd.f32 %v5744_v47, %v6548_v2  ;;  %v3181_v58 = vadd.f32 %v5744_v47, %v6549_v40  ;;  %v3182_v51 = vadd.f32 %v5744_v47, %v5544_v61  ;;  %v6550_v19 = vld [vmem:[#allocation54_spill] sm:$0xff]  ;;  %v6551_v61 = vld [vmem:[#allocation55_spill] sm:$0xff] }
 0x48c   : > { %3289 = vst [vmem:[%s6424_s5 + $0x1e8] sm:$0xff] %v3161_v24  ;;  %3290 = vst [vmem:[%s6424_s5 + $0x1f0] sm:$0xff] %v3162_v0  ;;  %v3183_v20 = vadd.f32 %v5744_v47, %v6550_v19  ;;  %v3184_v22 = vadd.f32 %v5744_v47, %v6551_v61  ;;  %v6552_v24 = vld [vmem:[#allocation56_spill] sm:$0xff]  ;;  %v3186_v0 = vadd.f32 %v5744_v47, %v5565_v8  ;;  %v6553_v3 = vld [vmem:[#allocation57_spill] sm:$0xff] }
 0x48d   : > { %3291 = vst [vmem:[%s6424_s5 + $0x1f8] sm:$0xff] %v3163_v28  ;;  %3292 = vst [vmem:[%s6424_s5 + $0x200] sm:$0xff] %v3164_v29  ;;  %v3185_v5 = vadd.f32 %v5744_v47, %v6552_v24  ;;  %v3187_v28 = vadd.f32 %v5744_v47, %v6553_v3  ;;  %v6554_v8 = vld [vmem:[#allocation58_spill] sm:$0xff]  ;;  %v6555_v29 = vld [vmem:[#allocation59_spill] sm:$0xff] }
 0x48e   : > { %3293 = vst [vmem:[%s6424_s5 + $0x208] sm:$0xff] %v3165_v27  ;;  %3294 = vst [vmem:[%s6424_s5 + $0x210] sm:$0xff] %v3166_v32  ;;  %v3188_v17 = vadd.f32 %v5744_v47, %v6554_v8  ;;  %v3189_v4 = vadd.f32 %v5744_v47, %v6555_v29  ;;  %v3190_v27 = vadd.f32 %v5744_v47, %v5586_v50  ;;  %v6556_v30 = vld [vmem:[#allocation60_spill] sm:$0xff]  ;;  %v6557_v50 = vld [vmem:[#allocation61_spill] sm:$0xff] }
 0x48f   : > { %3295 = vst [vmem:[%s6424_s5 + $0x218] sm:$0xff] %v3167_v7  ;;  %3296 = vst [vmem:[%s6424_s5 + $0x220] sm:$0xff] %v3168_v10  ;;  %v3191_v32 = vadd.f32 %v5744_v47, %v6556_v30  ;;  %v3192_v18 = vadd.f32 %v5744_v47, %v6557_v50  ;;  %v6558_v7 = vld [vmem:[#allocation62_spill] sm:$0xff]  ;;  %v3194_v10 = vadd.f32 %v5744_v47, %v5607_v35  ;;  %v6559_v43 = vld [vmem:[#allocation63_spill] sm:$0xff] }
 0x490   : > { %3297 = vst [vmem:[%s6424_s5 + $0x228] sm:$0xff] %v3169_v45  ;;  %3298 = vst [vmem:[%s6424_s5 + $0x230] sm:$0xff] %v3170_v60  ;;  %v3193_v15 = vadd.f32 %v5744_v47, %v6558_v7  ;;  %v3195_v45 = vadd.f32 %v5744_v47, %v6559_v43  ;;  %v6560_v35 = vld [vmem:[#allocation64_spill] sm:$0xff]  ;;  %v6561_v60 = vld [vmem:[#allocation65_spill] sm:$0xff]  ;;  %v3215_v8 = vadd.f32 %v5744_v47, %v5715_v37 }
 0x491   : > { %3299 = vst [vmem:[%s6424_s5 + $0x238] sm:$0xff] %v3171_v55  ;;  %3300 = vst [vmem:[%s6424_s5 + $0x240] sm:$0xff] %v3172_v57  ;;  %v3196_v12 = vadd.f32 %v5744_v47, %v6560_v35  ;;  %v3197_v53 = vadd.f32 %v5744_v47, %v6561_v60  ;;  %v3198_v55 = vadd.f32 %v5744_v47, %v5628_v33  ;;  %v6562_v9 = vld [vmem:[#allocation66_spill] sm:$0xff]  ;;  %v6563_v33 = vld [vmem:[#allocation67_spill] sm:$0xff] }
 0x492   : > { %3301 = vst [vmem:[%s6424_s5 + $0x248] sm:$0xff] %v3173_v63  ;;  %3302 = vst [vmem:[%s6424_s5 + $0x250] sm:$0xff] %v3174_v1  ;;  %v3199_v57 = vadd.f32 %v5744_v47, %v6562_v9  ;;  %v3200_v52 = vadd.f32 %v5744_v47, %v6563_v33  ;;  %v6564_v63 = vld [vmem:[#allocation68_spill] sm:$0xff]  ;;  %v6565_v11 = vld [vmem:[#allocation69_spill] sm:$0xff]  ;;  %v3217_v37 = vadd.f32 %v5744_v47, %v5721_v16 }
 0x493   : > { %3303 = vst [vmem:[%s6424_s5 + $0x258] sm:$0xff] %v3175_v46  ;;  %3304 = vst [vmem:[%s6424_s5 + $0x260] sm:$0xff] %v3176_v38  ;;  %v3201_v1 = vadd.f32 %v5744_v47, %v6564_v63  ;;  %v3202_v46 = vadd.f32 %v5744_v47, %v6565_v11  ;;  %v6566_v59 = vld [vmem:[#allocation70_spill] sm:$0xff]  ;;  %v6567_v44 = vld [vmem:[#allocation71_spill] sm:$0xff]  ;;  %v3219_v29 = vadd.f32 %v5744_v47, %v5727_v25 }
 0x494   : > { %3305 = vst [vmem:[%s6424_s5 + $0x268] sm:$0xff] %v3177_v23  ;;  %3306 = vst [vmem:[%s6424_s5 + $0x270] sm:$0xff] %v3178_v49  ;;  %v3203_v38 = vadd.f32 %v5744_v47, %v6566_v59  ;;  %v3204_v23 = vadd.f32 %v5744_v47, %v6567_v44  ;;  %v6568_v49 = vld [vmem:[#allocation72_spill] sm:$0xff]  ;;  %v6569_v2 = vld [vmem:[#allocation73_spill] sm:$0xff]  ;;  %v3220_v16 = vadd.f32 %v5744_v47, %v5730_v14 }
 0x495   : > { %3307 = vst [vmem:[%s6424_s5 + $0x278] sm:$0xff] %v3179_v62  ;;  %3308 = vst [vmem:[%s6424_s5 + $0x280] sm:$0xff] %v3180_v54  ;;  %v3205_v48 = vadd.f32 %v5744_v47, %v6568_v49  ;;  %v3206_v62 = vadd.f32 %v5744_v47, %v5670_v6  ;;  %v3207_v54 = vadd.f32 %v5744_v47, %v6569_v2  ;;  %v6570_v6 = vld [vmem:[#allocation74_spill] sm:$0xff]  ;;  %v6572_v19 = vld [vmem:[#allocation76_spill] sm:$0xff] }
 0x496   : > { %3309 = vst [vmem:[%s6424_s5 + $0x288] sm:$0xff] %v3181_v58  ;;  %3310 = vst [vmem:[%s6424_s5 + $0x290] sm:$0xff] %v3182_v51  ;;  %v3208_v40 = vadd.f32 %v5744_v47, %v6570_v6  ;;  %v6571_v58 = vld [vmem:[#allocation75_spill] sm:$0xff]  ;;  %v6573_v61 = vld [vmem:[#allocation77_spill] sm:$0xff]  ;;  %v3221_v25 = vadd.f32 %v5744_v47, %v5735_v39  ;;  %v3224_v14 = vadd.f32 %v5744_v47, %v5747_v41 }
 0x497   : > { %3311 = vst [vmem:[%s6424_s5 + $0x298] sm:$0xff] %v3183_v20  ;;  %3312 = vst [vmem:[%s6424_s5 + $0x2a0] sm:$0xff] %v3184_v22  ;;  %v3209_v51 = vadd.f32 %v5744_v47, %v6571_v58  ;;  %v3210_v20 = vadd.f32 %v5744_v47, %v6572_v19  ;;  %v3211_v22 = vadd.f32 %v5744_v47, %v6573_v61  ;;  %v6574_v24 = vld [vmem:[#allocation78_spill] sm:$0xff] }
 0x498   : > { %3313 = vst [vmem:[%s6424_s5 + $0x2a8] sm:$0xff] %v3185_v5  ;;  %3314 = vst [vmem:[%s6424_s5 + $0x2b0] sm:$0xff] %v3186_v0  ;;  %v3212_v5 = vadd.f32 %v5744_v47, %v6574_v24  ;;  %v6575_v0 = vld [vmem:[#allocation79_spill] sm:$0xff]  ;;  %v3225_v39 = vadd.f32 %v5744_v47, %v5750_v36 }
 0x499   : > { %3315 = vst [vmem:[%s6424_s5 + $0x2b8] sm:$0xff] %v3187_v28  ;;  %3316 = vst [vmem:[%s6424_s5 + $0x2c0] sm:$0xff] %v3188_v17  ;;  %v3213_v3 = vadd.f32 %v5744_v47, %v6575_v0  ;;  %v3214_v28 = vadd.f32 %v5744_v47, %v5712_v21  ;;  %v3216_v21 = vadd.f32 %v5744_v47, %v5718_v31 }
 0x49a   : > { %3317 = vst [vmem:[%s6424_s5 + $0x2c8] sm:$0xff] %v3189_v4  ;;  %3318 = vst [vmem:[%s6424_s5 + $0x2d0] sm:$0xff] %v3190_v27  ;;  %v3218_v17 = vadd.f32 %v5744_v47, %v5724_v13  ;;  %v3222_v13 = vadd.f32 %v5744_v47, %v5738_v56  ;;  %v3223_v31 = vadd.f32 %v5744_v47, %v5741_v42 }
 0x49b   : > { %3319 = vst [vmem:[%s6424_s5 + $0x2d8] sm:$0xff] %v3191_v32  ;;  %3320 = vst [vmem:[%s6424_s5 + $0x2e0] sm:$0xff] %v3192_v18  ;;  %v3226_v56 = vadd.f32 %v5744_v47, %v5753_v34  ;;  %v3227_v42 = vadd.f32 %v5744_v47, %v5756_v26 }
 0x49c   : > { %3321 = vst [vmem:[%s6424_s5 + $0x2e8] sm:$0xff] %v3193_v15  ;;  %3322 = vst [vmem:[%s6424_s5 + $0x2f0] sm:$0xff] %v3194_v10 }
 0x49d   : > { %3323 = vst [vmem:[%s6424_s5 + $0x2f8] sm:$0xff] %v3195_v45  ;;  %3324 = vst [vmem:[%s6424_s5 + $0x300] sm:$0xff] %v3196_v12 }
 0x49e   : > { %3325 = vst [vmem:[%s6424_s5 + $0x308] sm:$0xff] %v3197_v53  ;;  %3326 = vst [vmem:[%s6424_s5 + $0x310] sm:$0xff] %v3198_v55 }
 0x49f   : > { %3327 = vst [vmem:[%s6424_s5 + $0x318] sm:$0xff] %v3199_v57  ;;  %3328 = vst [vmem:[%s6424_s5 + $0x320] sm:$0xff] %v3200_v52 }
 0x4a0   : > { %3329 = vst [vmem:[%s6424_s5 + $0x328] sm:$0xff] %v3201_v1  ;;  %3330 = vst [vmem:[%s6424_s5 + $0x330] sm:$0xff] %v3202_v46 }
 0x4a1   : > { %3331 = vst [vmem:[%s6424_s5 + $0x338] sm:$0xff] %v3203_v38  ;;  %3332 = vst [vmem:[%s6424_s5 + $0x340] sm:$0xff] %v3204_v23 }
 0x4a2   : > { %3333 = vst [vmem:[%s6424_s5 + $0x348] sm:$0xff] %v3205_v48  ;;  %3334 = vst [vmem:[%s6424_s5 + $0x350] sm:$0xff] %v3206_v62 }
 0x4a3   : > { %3335 = vst [vmem:[%s6424_s5 + $0x358] sm:$0xff] %v3207_v54  ;;  %3336 = vst [vmem:[%s6424_s5 + $0x360] sm:$0xff] %v3208_v40 }
 0x4a4   : > { %3337 = vst [vmem:[%s6424_s5 + $0x368] sm:$0xff] %v3209_v51  ;;  %3338 = vst [vmem:[%s6424_s5 + $0x370] sm:$0xff] %v3210_v20 }
 0x4a5   : > { %3339 = vst [vmem:[%s6424_s5 + $0x378] sm:$0xff] %v3211_v22  ;;  %3340 = vst [vmem:[%s6424_s5 + $0x380] sm:$0xff] %v3212_v5 }
 0x4a6   : > { %3341 = vst [vmem:[%s6424_s5 + $0x388] sm:$0xff] %v3213_v3  ;;  %3342 = vst [vmem:[%s6424_s5 + $0x390] sm:$0xff] %v3214_v28 }
 0x4a7   : > { %3343 = vst [vmem:[%s6424_s5 + $0x398] sm:$0xff] %v3215_v8  ;;  %3344 = vst [vmem:[%s6424_s5 + $0x3a0] sm:$0xff] %v3216_v21 }
 0x4a8   : > { %3345 = vst [vmem:[%s6424_s5 + $0x3a8] sm:$0xff] %v3217_v37  ;;  %3346 = vst [vmem:[%s6424_s5 + $0x3b0] sm:$0xff] %v3218_v17 }
 0x4a9   : > { %3347 = vst [vmem:[%s6424_s5 + $0x3b8] sm:$0xff] %v3219_v29  ;;  %3348 = vst [vmem:[%s6424_s5 + $0x3c0] sm:$0xff] %v3220_v16 }
 0x4aa   : > { %3349 = vst [vmem:[%s6424_s5 + $0x3c8] sm:$0xff] %v3221_v25  ;;  %3350 = vst [vmem:[%s6424_s5 + $0x3d0] sm:$0xff] %v3222_v13 }
 0x4ab   : > { %3351 = vst [vmem:[%s6424_s5 + $0x3d8] sm:$0xff] %v3223_v31  ;;  %3352 = vst [vmem:[%s6424_s5 + $0x3e0] sm:$0xff] %v3224_v14 }
 0x4ac   : > { %3353 = vst [vmem:[%s6424_s5 + $0x3e8] sm:$0xff] %v3225_v39  ;;  %3354 = vst [vmem:[%s6424_s5 + $0x3f0] sm:$0xff] %v3226_v56 }
 0x4ad   : > { %3355 = vst [vmem:[%s6424_s5 + $0x3f8] sm:$0xff] %v3227_v42 }
 0x4ae PF: > { %s15_s24 = sadd.s32 1, %s4347_s24   ;;  %s6576_s18 = smov %s4327_s19 }
 0x4af   : > { %p12_p3 = scmp.ge.s32.totalorder %s15_s24, 6   ;;  %s6577_s19 = smov %s4436_s6 }
 0x4b0   : > { %s6578_s20 = smov %s4339_s22  ;;  %s6579_s21 = smov %s4343_s23 }
 0x4b1   : > { %s6580_s22 = smov %s6583_s25  ;;  %s6581_s23 = smov %s6587_s26 }
 0x4b2   :  { %14 = sbr.rel (!%p12_p3) target bundleno = 4 (0x4), region = 126 }

</bundles_post_ra>
